<compile_context>
chip_gen: v6e
topology: v6e:2x2x1
jax: 0.10.0
libtpu: 0.0.40
codegen_flags: <defaults>
</compile_context>

<pallas_src>
import math

import jax
import jax.numpy as jnp
from jax.experimental import pallas as pl
from jax.experimental.pallas import tpu as pltpu


def _make_kernel(nhead: int, nb: int, L: int, S: int, S_pad: int, E: int,
                 eps: float = 1e-5):
    """Builds the per-batch-block decoder-layer kernel (all sizes static)."""
    hd = E // nhead
    inv_nhead = 1.0 / nhead
    bf16 = jnp.bfloat16
    f32 = jnp.float32

    def layer_norm(x2d, w_ref, b_ref):
        # x2d: (nb*L, E); LayerNorm over last dim, f32 throughout.
        mu = jnp.mean(x2d, axis=-1, keepdims=True)
        xc = x2d - mu
        var = jnp.mean(xc * xc, axis=-1, keepdims=True)
        return xc * jax.lax.rsqrt(var + eps) * w_ref[0] + b_ref[0]

    def attention(q2d, k2d, v2d, ow_ref, ob_ref, score_bias, want_weights):
        # q2d: (nb*L, E) bf16 (scaling already folded into the q weights);
        # k2d / v2d: (nb*Sk, E) bf16.  Matmuls are batched over nb; heads are
        # a static (unrolled) loop.
        Sk = k2d.shape[0] // nb
        q3 = q2d.reshape(nb, L, E)
        k3 = k2d.reshape(nb, Sk, E)
        v3 = v2d.reshape(nb, Sk, E)
        ctx = []
        w_sum = None
        for h in range(nhead):
            sl = slice(h * hd, (h + 1) * hd)
            s = jnp.einsum('nld,nsd->nls', q3[..., sl], k3[..., sl],
                           preferred_element_type=f32)          # (nb, L, Sk) f32
            if score_bias is not None:
                s = s + score_bias                               # mask padded keys
            s = s - jnp.max(s, axis=-1, keepdims=True)
            p = jnp.exp(s)
            denom = jnp.sum(p, axis=-1, keepdims=True)
            if want_weights:
                # probabilities are a public output -> exact reciprocal
                p = p * pl.reciprocal(denom, approx=False)
            else:
                p = p * pl.reciprocal(denom, approx=True)
            ctx.append(jnp.einsum('nls,nsd->nld', p.astype(bf16), v3[..., sl],
                                  preferred_element_type=f32))   # (nb, L, hd) f32
            if want_weights:
                w_sum = p if w_sum is None else w_sum + p
        ctx2d = jnp.concatenate(ctx, axis=-1).reshape(nb * L, E)
        out = jnp.dot(ctx2d.astype(bf16), ow_ref[...],
                      preferred_element_type=f32) + ob_ref[0]
        if want_weights:
            w_sum = w_sum * inv_nhead      # PyTorch head-averaged attention weights
        return out, w_sum

    def kernel(tgt_ref, mem_ref,
               sa_in_wt_ref, sa_in_b_ref, sa_out_wt_ref, sa_out_b_ref,
               ca_q_wt_ref, ca_q_b_ref, ca_kv_wt_ref, ca_kv_b_ref,
               ca_out_wt_ref, ca_out_b_ref,
               w1t_ref, b1_ref, w2t_ref, b2_ref,
               n1w_ref, n1b_ref, n2w_ref, n2b_ref, n3w_ref, n3b_ref,
               out_ref, attn_ref):
        x = tgt_ref[...].reshape(nb * L, E)          # (nb*L, E) f32
        mem = mem_ref[...].reshape(nb * S_pad, E)    # (nb*S_pad, E) f32

        # additive score mask for padded memory columns (built once, hoisted)
        if S_pad != S:
            col = jax.lax.broadcasted_iota(jnp.int32, (1, 1, S_pad), 2)
            mem_bias = jnp.where(col < S, 0.0, -1e30).astype(f32)
            mem_bias = jnp.broadcast_to(mem_bias, (nb, L, S_pad))
        else:
            mem_bias = None

        # 1) self-attention + residual + LayerNorm1   (dropout1 = identity in eval)
        qkv = jnp.dot(x.astype(bf16), sa_in_wt_ref[...],
                      preferred_element_type=f32) + sa_in_b_ref[0]
        q = qkv[:, :E].astype(bf16)          # 1/sqrt(hd) folded into weights/bias
        k = qkv[:, E:2 * E].astype(bf16)
        v = qkv[:, 2 * E:].astype(bf16)
        sa_out, _ = attention(q, k, v, sa_out_wt_ref, sa_out_b_ref,
                              score_bias=None, want_weights=False)
        x = layer_norm(x + sa_out, n1w_ref, n1b_ref)

        # 2) cross-attention + residual + LayerNorm2  (dropout2 = identity)
        q = (jnp.dot(x.astype(bf16), ca_q_wt_ref[...],
                     preferred_element_type=f32) + ca_q_b_ref[0]).astype(bf16)
        kv = jnp.dot(mem.astype(bf16), ca_kv_wt_ref[...],
                     preferred_element_type=f32) + ca_kv_b_ref[0]
        ca_out, aw = attention(q, kv[:, :E].astype(bf16), kv[:, E:].astype(bf16),
                               ca_out_wt_ref, ca_out_b_ref,
                               score_bias=mem_bias, want_weights=True)
        x = layer_norm(x + ca_out, n2w_ref, n2b_ref)

        # 3) feed-forward (relu) + residual + LayerNorm3  (dropout/dropout3 = identity)
        h = jnp.maximum(
            jnp.dot(x.astype(bf16), w1t_ref[...],
                    preferred_element_type=f32) + b1_ref[0], 0.0)
        ff = jnp.dot(h.astype(bf16), w2t_ref[...],
                     preferred_element_type=f32) + b2_ref[0]
        x = layer_norm(x + ff, n3w_ref, n3b_ref)

        out_ref[...] = x.reshape(nb, L, E)
        attn_ref[...] = aw                   # (nb, L, S_pad), lane-dense store

    return kernel


def transformer_decoder_final_layer(tgt, memory, params, nhead, block_n=None):
    """tgt: (L, N, E), memory: (S, N, E) float32 -> (out (L,N,E), attn (N,L,S))."""
    L, N, E = tgt.shape
    S = memory.shape[0]
    hd = E // nhead
    scaling = 1.0 / math.sqrt(hd)
    f32, bf16 = jnp.float32, jnp.bfloat16

    if block_n is None:
        block_n = N
        # prefer >=2 grid steps (v7x megacore) while keeping per-block MXU M
        # (nb*L) large enough to fill the 256x256 MXU.
        if N % 2 == 0 and (N // 2) * L >= 256:
            block_n = N // 2
    assert N % block_n == 0, "block_n must divide the batch size"
    nb = block_n

    # Boundary layout change to batch-major (one-time XLA transpose outside the
    # hot loop); attention weights are emitted directly as (N, L, S_pad).
    tgt_b = jnp.transpose(tgt, (1, 0, 2))      # (N, L, E)
    mem_b = jnp.transpose(memory, (1, 0, 2))   # (N, S, E)

    # Pad the memory length so the attention-weight output last dim is a
    # multiple of 128 (lane-dense stores); padded keys are masked in-kernel.
    S_pad = ((S + 127) // 128) * 128
    if S_pad != S:
        mem_b = jnp.pad(mem_b, ((0, 0), (0, S_pad - S), (0, 0)))

    kernel = _make_kernel(nhead, nb, L, S, S_pad, E)

    # Pre-transpose / pre-split all weights once at trace time, fold the
    # 1/sqrt(hd) q-scaling into the q projection, and cast matmul weights to
    # bf16 (biases / LayerNorm params stay f32).
    scale_vec = jnp.concatenate([jnp.full((E,), scaling, f32),
                                 jnp.ones((2 * E,), f32)])
    param_list = [
        (params["sa_in_w"] * scale_vec[:, None]).T.astype(bf16),        # (E,3E)
        (params["sa_in_b"] * scale_vec).reshape(1, -1),                  # (1,3E)
        params["sa_out_w"].T.astype(bf16), params["sa_out_b"].reshape(1, -1),
        (params["ca_in_w"][:E] * scaling).T.astype(bf16),                # (E,E)
        (params["ca_in_b"][:E] * scaling).reshape(1, -1),                # (1,E)
        params["ca_in_w"][E:].T.astype(bf16),                            # (E,2E)
        params["ca_in_b"][E:].reshape(1, -1),                            # (1,2E)
        params["ca_out_w"].T.astype(bf16), params["ca_out_b"].reshape(1, -1),
        params["w1"].T.astype(bf16), params["b1"].reshape(1, -1),        # (E,FF)
        params["w2"].T.astype(bf16), params["b2"].reshape(1, -1),        # (FF,E)
        params["n1_w"].reshape(1, -1), params["n1_b"].reshape(1, -1),
        params["n2_w"].reshape(1, -1), params["n2_b"].reshape(1, -1),
        params["n3_w"].reshape(1, -1), params["n3_b"].reshape(1, -1),
    ]

    def const_spec(shape):
        nd = len(shape)
        return pl.BlockSpec(shape, lambda b, _nd=nd: (0,) * _nd)

    in_specs = [
        pl.BlockSpec((nb, L, E), lambda b: (b, 0, 0)),
        pl.BlockSpec((nb, S_pad, E), lambda b: (b, 0, 0)),
    ] + [const_spec(p.shape) for p in param_list]

    out_specs = [
        pl.BlockSpec((nb, L, E), lambda b: (b, 0, 0)),
        pl.BlockSpec((nb, L, S_pad), lambda b: (b, 0, 0)),
    ]
    out_shape = [
        jax.ShapeDtypeStruct((N, L, E), jnp.float32),
        jax.ShapeDtypeStruct((N, L, S_pad), jnp.float32),
    ]

    out_b, attn_full = pl.pallas_call(
        kernel,
        grid=(N // nb,),
        in_specs=in_specs,
        out_specs=out_specs,
        out_shape=out_shape,
        compiler_params=pltpu.CompilerParams(
            dimension_semantics=("parallel",),        # batch blocks independent
            vmem_limit_bytes=64 * 1024 * 1024),
    )(tgt_b, mem_b, *param_list)

    attn = attn_full[:, :, :S] if S_pad != S else attn_full
    return jnp.transpose(out_b, (1, 0, 2)), attn


# ----------------------------- pure-JAX reference -----------------------------
def _ref_forward(tgt, memory, params, nhead, eps=1e-5):
    def ln(x, w, b):
        mu = x.mean(-1, keepdims=True)
        var = ((x - mu) ** 2).mean(-1, keepdims=True)
        return (x - mu) / jnp.sqrt(var + eps) * w + b

    def mha_single(q_in, kv_in, w, b, ow, ob):
        E = q_in.shape[-1]
        hd = E // nhead
        q = q_in @ w[:E].T + b[:E]
        k = kv_in @ w[E:2 * E].T + b[E:2 * E]
        v = kv_in @ w[2 * E:].T + b[2 * E:]
        q = q / math.sqrt(hd)
        outs, wsum = [], 0.0
        for h in range(nhead):
            sl = slice(h * hd, (h + 1) * hd)
            p = jax.nn.softmax(q[:, sl] @ k[:, sl].T, axis=-1)
            outs.append(p @ v[:, sl])
            wsum = wsum + p
        return jnp.concatenate(outs, -1) @ ow.T + ob, wsum / nhead

    def single(x, mem):
        sa, _ = mha_single(x, x, params["sa_in_w"], params["sa_in_b"],
                           params["sa_out_w"], params["sa_out_b"])
        x = ln(x + sa, params["n1_w"], params["n1_b"])
        ca, aw = mha_single(x, mem, params["ca_in_w"], params["ca_in_b"],
                            params["ca_out_w"], params["ca_out_b"])
        x = ln(x + ca, params["n2_w"], params["n2_b"])
        ff = jnp.maximum(x @ params["w1"].T + params["b1"], 0.0) @ params["w2"].T + params["b2"]
        x = ln(x + ff, params["n3_w"], params["n3_b"])
        return x, aw

    out_b, attn = jax.vmap(single)(jnp.transpose(tgt, (1, 0, 2)),
                                   jnp.transpose(memory, (1, 0, 2)))
    return jnp.transpose(out_b, (1, 0, 2)), attn


if __name__ == "__main__":
    # Small shapes consistent with the module's forward.
    L, S, N = 8, 16, 2          # tgt len, memory len, batch
    E, NHEAD, FF = 32, 4, 64    # d_model, nhead, dim_feedforward

    key = jax.random.PRNGKey(0)
    ks = jax.random.split(key, 16)
    f32 = jnp.float32
    params = {
        "sa_in_w": 0.05 * jax.random.normal(ks[0], (3 * E, E), f32),
        "sa_in_b": 0.01 * jax.random.normal(ks[1], (3 * E,), f32),
        "sa_out_w": 0.05 * jax.random.normal(ks[2], (E, E), f32),
        "sa_out_b": 0.01 * jax.random.normal(ks[3], (E,), f32),
        "ca_in_w": 0.05 * jax.random.normal(ks[4], (3 * E, E), f32),
        "ca_in_b": 0.01 * jax.random.normal(ks[5], (3 * E,), f32),
        "ca_out_w": 0.05 * jax.random.normal(ks[6], (E, E), f32),
        "ca_out_b": 0.01 * jax.random.normal(ks[7], (E,), f32),
        "w1": 0.05 * jax.random.normal(ks[8], (FF, E), f32),
        "b1": 0.01 * jax.random.normal(ks[9], (FF,), f32),
        "w2": 0.05 * jax.random.normal(ks[10], (E, FF), f32),
        "b2": 0.01 * jax.random.normal(ks[11], (E,), f32),
        "n1_w": jnp.ones((E,), f32), "n1_b": jnp.zeros((E,), f32),
        "n2_w": jnp.ones((E,), f32), "n2_b": jnp.zeros((E,), f32),
        "n3_w": jnp.ones((E,), f32), "n3_b": jnp.zeros((E,), f32),
    }

    tgt = jax.random.normal(ks[12], (L, N, E), f32)      # PyTorch seq-first layout
    memory = jax.random.normal(ks[13], (S, N, E), f32)

    out, attn = transformer_decoder_final_layer(tgt, memory, params, NHEAD)
    out = jax.block_until_ready(out)
    attn = jax.block_until_ready(attn)

    assert out.shape == (L, N, E) and attn.shape == (N, L, S)

    # bf16 MXU operands (f32 accumulation) -> compare against the f32 reference
    # at a correspondingly looser (but still tight) tolerance.
    ref_out, ref_attn = _ref_forward(tgt, memory, params, NHEAD)
    assert jnp.allclose(out, ref_out, rtol=1e-2, atol=1e-2)
    assert jnp.allclose(attn, ref_attn, rtol=1e-2, atol=1e-2)

    print("KERNEL_OK")
</pallas_src>

<mosaic_0001>
module attributes {stable_mosaic.version = 11 : i64} {
  func.func @kernel(%arg0: i32, %arg1: memref<2x8x32xf32, #tpu.memory_space<vmem>>, %arg2: memref<2x128x32xf32, #tpu.memory_space<vmem>>, %arg3: memref<32x96xbf16, #tpu.memory_space<vmem>>, %arg4: memref<1x96xf32, #tpu.memory_space<vmem>>, %arg5: memref<32x32xbf16, #tpu.memory_space<vmem>>, %arg6: memref<1x32xf32, #tpu.memory_space<vmem>>, %arg7: memref<32x32xbf16, #tpu.memory_space<vmem>>, %arg8: memref<1x32xf32, #tpu.memory_space<vmem>>, %arg9: memref<32x64xbf16, #tpu.memory_space<vmem>>, %arg10: memref<1x64xf32, #tpu.memory_space<vmem>>, %arg11: memref<32x32xbf16, #tpu.memory_space<vmem>>, %arg12: memref<1x32xf32, #tpu.memory_space<vmem>>, %arg13: memref<32x64xbf16, #tpu.memory_space<vmem>>, %arg14: memref<1x64xf32, #tpu.memory_space<vmem>>, %arg15: memref<64x32xbf16, #tpu.memory_space<vmem>>, %arg16: memref<1x32xf32, #tpu.memory_space<vmem>>, %arg17: memref<1x32xf32, #tpu.memory_space<vmem>>, %arg18: memref<1x32xf32, #tpu.memory_space<vmem>>, %arg19: memref<1x32xf32, #tpu.memory_space<vmem>>, %arg20: memref<1x32xf32, #tpu.memory_space<vmem>>, %arg21: memref<1x32xf32, #tpu.memory_space<vmem>>, %arg22: memref<1x32xf32, #tpu.memory_space<vmem>>, %arg23: memref<2x8x32xf32, #tpu.memory_space<vmem>>, %arg24: memref<2x8x128xf32, #tpu.memory_space<vmem>>) attributes {dimension_semantics = [#tpu.dimension_semantics<parallel>], iteration_bounds = array<i64: 1>, scalar_prefetch = 0 : i64, scratch_operands = 0 : i64, tpu.core_type = #tpu.core_type<tc>, window_params = [{transform_indices = @transform_0, window_bounds = array<i64: 2, 8, 32>}, {transform_indices = @transform_1, window_bounds = array<i64: 2, 128, 32>}, {pipeline_mode = #tpu.pipeline_mode<synchronous>, transform_indices = @transform_2, window_bounds = array<i64: 32, 96>}, {pipeline_mode = #tpu.pipeline_mode<synchronous>, transform_indices = @transform_3, window_bounds = array<i64: 1, 96>}, {pipeline_mode = #tpu.pipeline_mode<synchronous>, transform_indices = @transform_4, window_bounds = array<i64: 32, 32>}, {pipeline_mode = #tpu.pipeline_mode<synchronous>, transform_indices = @transform_5, window_bounds = array<i64: 1, 32>}, {pipeline_mode = #tpu.pipeline_mode<synchronous>, transform_indices = @transform_6, window_bounds = array<i64: 32, 32>}, {pipeline_mode = #tpu.pipeline_mode<synchronous>, transform_indices = @transform_7, window_bounds = array<i64: 1, 32>}, {pipeline_mode = #tpu.pipeline_mode<synchronous>, transform_indices = @transform_8, window_bounds = array<i64: 32, 64>}, {pipeline_mode = #tpu.pipeline_mode<synchronous>, transform_indices = @transform_9, window_bounds = array<i64: 1, 64>}, {pipeline_mode = #tpu.pipeline_mode<synchronous>, transform_indices = @transform_10, window_bounds = array<i64: 32, 32>}, {pipeline_mode = #tpu.pipeline_mode<synchronous>, transform_indices = @transform_11, window_bounds = array<i64: 1, 32>}, {pipeline_mode = #tpu.pipeline_mode<synchronous>, transform_indices = @transform_12, window_bounds = array<i64: 32, 64>}, {pipeline_mode = #tpu.pipeline_mode<synchronous>, transform_indices = @transform_13, window_bounds = array<i64: 1, 64>}, {pipeline_mode = #tpu.pipeline_mode<synchronous>, transform_indices = @transform_14, window_bounds = array<i64: 64, 32>}, {pipeline_mode = #tpu.pipeline_mode<synchronous>, transform_indices = @transform_15, window_bounds = array<i64: 1, 32>}, {pipeline_mode = #tpu.pipeline_mode<synchronous>, transform_indices = @transform_16, window_bounds = array<i64: 1, 32>}, {pipeline_mode = #tpu.pipeline_mode<synchronous>, transform_indices = @transform_17, window_bounds = array<i64: 1, 32>}, {pipeline_mode = #tpu.pipeline_mode<synchronous>, transform_indices = @transform_18, window_bounds = array<i64: 1, 32>}, {pipeline_mode = #tpu.pipeline_mode<synchronous>, transform_indices = @transform_19, window_bounds = array<i64: 1, 32>}, {pipeline_mode = #tpu.pipeline_mode<synchronous>, transform_indices = @transform_20, window_bounds = array<i64: 1, 32>}, {pipeline_mode = #tpu.pipeline_mode<synchronous>, transform_indices = @transform_21, window_bounds = array<i64: 1, 32>}, {transform_indices = @transform_22, window_bounds = array<i64: 2, 8, 32>}, {transform_indices = @transform_23, window_bounds = array<i64: 2, 8, 128>}]} {
    %c0 = arith.constant 0 : index
    %c0_0 = arith.constant 0 : index
    %c0_1 = arith.constant 0 : index
    %0 = vector.load %arg1[%c0, %c0_0, %c0_1] : memref<2x8x32xf32, #tpu.memory_space<vmem>>, vector<2x8x32xf32>
    %1 = vector.shape_cast %0 : vector<2x8x32xf32> to vector<16x32xf32>
    %c0_2 = arith.constant 0 : index
    %c0_3 = arith.constant 0 : index
    %c0_4 = arith.constant 0 : index
    %2 = vector.load %arg2[%c0_2, %c0_3, %c0_4] : memref<2x128x32xf32, #tpu.memory_space<vmem>>, vector<2x128x32xf32>
    %3 = vector.shape_cast %2 : vector<2x128x32xf32> to vector<256x32xf32>
    %4 = tpu.iota {dimensions = array<i32: 2>} : vector<1x1x128xi32>
    %c16_i32 = arith.constant 16 : i32
    %5 = vector.broadcast %c16_i32 : i32 to vector<1x1x128xi32>
    %6 = arith.cmpi slt, %4, %5 : vector<1x1x128xi32>
    %cst = arith.constant 0.000000e+00 : f32
    %cst_5 = arith.constant -1.000000e+30 : f32
    %7 = vector.broadcast %cst : f32 to vector<1x1x128xf32>
    %8 = vector.broadcast %cst_5 : f32 to vector<1x1x128xf32>
    %9 = arith.select %6, %7, %8 : vector<1x1x128xi1>, vector<1x1x128xf32>
    %10 = vector.shape_cast %9 : vector<1x1x128xf32> to vector<1x1x128xf32>
    %11 = vector.broadcast %10 : vector<1x1x128xf32> to vector<2x8x128xf32>
    %12 = arith.truncf %1 : vector<16x32xf32> to vector<16x32xbf16>
    %c0_6 = arith.constant 0 : index
    %c0_7 = arith.constant 0 : index
    %13 = vector.load %arg3[%c0_6, %c0_7] : memref<32x96xbf16, #tpu.memory_space<vmem>>, vector<32x96xbf16>
    %cst_8 = arith.constant dense<0.000000e+00> : vector<16x96xf32>
    %14 = tpu.matmul %12, %13, %cst_8 {dimension_numbers = #tpu.dot_dimension_numbers<[1], [0], [0], [1], [0, 0, 1, 1], [], []>} : vector<16x32xbf16>, vector<32x96xbf16>, vector<16x96xf32> -> vector<16x96xf32>
    %c0_9 = arith.constant 0 : index
    %c0_10 = arith.constant 0 : index
    %15 = vector.load %arg4[%c0_9, %c0_10] : memref<1x96xf32, #tpu.memory_space<vmem>>, vector<1x96xf32>
    %16 = vector.shape_cast %15 : vector<1x96xf32> to vector<96xf32>
    %17 = vector.shape_cast %16 : vector<96xf32> to vector<1x96xf32>
    %18 = vector.broadcast %17 : vector<1x96xf32> to vector<16x96xf32>
    %19 = arith.addf %14, %18 : vector<16x96xf32>
    %20 = vector.extract_strided_slice %19 {offsets = [0, 0], sizes = [16, 32], strides = [1, 1]} : vector<16x96xf32> to vector<16x32xf32>
    %21 = arith.truncf %20 : vector<16x32xf32> to vector<16x32xbf16>
    %22 = vector.extract_strided_slice %19 {offsets = [0, 32], sizes = [16, 32], strides = [1, 1]} : vector<16x96xf32> to vector<16x32xf32>
    %23 = arith.truncf %22 : vector<16x32xf32> to vector<16x32xbf16>
    %24 = vector.extract_strided_slice %19 {offsets = [0, 64], sizes = [16, 32], strides = [1, 1]} : vector<16x96xf32> to vector<16x32xf32>
    %25 = arith.truncf %24 : vector<16x32xf32> to vector<16x32xbf16>
    %26 = vector.shape_cast %21 : vector<16x32xbf16> to vector<2x8x32xbf16>
    %27 = vector.shape_cast %23 : vector<16x32xbf16> to vector<2x8x32xbf16>
    %28 = vector.shape_cast %25 : vector<16x32xbf16> to vector<2x8x32xbf16>
    %29 = vector.extract_strided_slice %26 {offsets = [0, 0, 0], sizes = [2, 8, 8], strides = [1, 1, 1]} : vector<2x8x32xbf16> to vector<2x8x8xbf16>
    %30 = vector.extract_strided_slice %27 {offsets = [0, 0, 0], sizes = [2, 8, 8], strides = [1, 1, 1]} : vector<2x8x32xbf16> to vector<2x8x8xbf16>
    "tpu.trace_start"() <{level = 10 : i32, message = "nld,nsd->nls"}> : () -> ()
    %cst_11 = arith.constant dense<0.000000e+00> : vector<2x8x8xf32>
    %31 = tpu.matmul %29, %30, %cst_11 {dimension_numbers = #tpu.dot_dimension_numbers<[2], [2], [1], [1], [0, 0, 0, 1, 1, 1], [0], [0]>} : vector<2x8x8xbf16>, vector<2x8x8xbf16>, vector<2x8x8xf32> -> vector<2x8x8xf32>
    "tpu.trace_stop"() : () -> ()
    %cst_12 = arith.constant dense<0xFF800000> : vector<2x8xf32>
    %32 = vector.multi_reduction <maximumf>, %31, %cst_12 [2] : vector<2x8x8xf32> to vector<2x8xf32>
    %33 = vector.shape_cast %32 : vector<2x8xf32> to vector<2x8x1xf32>
    %34 = vector.broadcast %33 : vector<2x8x1xf32> to vector<2x8x8xf32>
    %35 = arith.subf %31, %34 : vector<2x8x8xf32>
    %36 = math.exp %35 : vector<2x8x8xf32>
    %cst_13 = arith.constant dense<0.000000e+00> : vector<2x8xf32>
    %37 = vector.multi_reduction <add>, %36, %cst_13 [2] : vector<2x8x8xf32> to vector<2x8xf32>
    %38 = vector.shape_cast %37 : vector<2x8xf32> to vector<2x8x1xf32>
    %39 = tpu.reciprocal %38 {approx = true} : vector<2x8x1xf32> -> vector<2x8x1xf32>
    %40 = vector.broadcast %39 : vector<2x8x1xf32> to vector<2x8x8xf32>
    %41 = arith.mulf %36, %40 : vector<2x8x8xf32>
    %42 = arith.truncf %41 : vector<2x8x8xf32> to vector<2x8x8xbf16>
    %43 = vector.extract_strided_slice %28 {offsets = [0, 0, 0], sizes = [2, 8, 8], strides = [1, 1, 1]} : vector<2x8x32xbf16> to vector<2x8x8xbf16>
    "tpu.trace_start"() <{level = 10 : i32, message = "nls,nsd->nld"}> : () -> ()
    %cst_14 = arith.constant dense<0.000000e+00> : vector<2x8x8xf32>
    %44 = tpu.matmul %42, %43, %cst_14 {dimension_numbers = #tpu.dot_dimension_numbers<[2], [1], [1], [2], [0, 0, 0, 1, 1, 2], [0], [0]>} : vector<2x8x8xbf16>, vector<2x8x8xbf16>, vector<2x8x8xf32> -> vector<2x8x8xf32>
    "tpu.trace_stop"() : () -> ()
    %45 = vector.extract_strided_slice %26 {offsets = [0, 0, 8], sizes = [2, 8, 8], strides = [1, 1, 1]} : vector<2x8x32xbf16> to vector<2x8x8xbf16>
    %46 = vector.extract_strided_slice %27 {offsets = [0, 0, 8], sizes = [2, 8, 8], strides = [1, 1, 1]} : vector<2x8x32xbf16> to vector<2x8x8xbf16>
    "tpu.trace_start"() <{level = 10 : i32, message = "nld,nsd->nls"}> : () -> ()
    %cst_15 = arith.constant dense<0.000000e+00> : vector<2x8x8xf32>
    %47 = tpu.matmul %45, %46, %cst_15 {dimension_numbers = #tpu.dot_dimension_numbers<[2], [2], [1], [1], [0, 0, 0, 1, 1, 1], [0], [0]>} : vector<2x8x8xbf16>, vector<2x8x8xbf16>, vector<2x8x8xf32> -> vector<2x8x8xf32>
    "tpu.trace_stop"() : () -> ()
    %cst_16 = arith.constant dense<0xFF800000> : vector<2x8xf32>
    %48 = vector.multi_reduction <maximumf>, %47, %cst_16 [2] : vector<2x8x8xf32> to vector<2x8xf32>
    %49 = vector.shape_cast %48 : vector<2x8xf32> to vector<2x8x1xf32>
    %50 = vector.broadcast %49 : vector<2x8x1xf32> to vector<2x8x8xf32>
    %51 = arith.subf %47, %50 : vector<2x8x8xf32>
    %52 = math.exp %51 : vector<2x8x8xf32>
    %cst_17 = arith.constant dense<0.000000e+00> : vector<2x8xf32>
    %53 = vector.multi_reduction <add>, %52, %cst_17 [2] : vector<2x8x8xf32> to vector<2x8xf32>
    %54 = vector.shape_cast %53 : vector<2x8xf32> to vector<2x8x1xf32>
    %55 = tpu.reciprocal %54 {approx = true} : vector<2x8x1xf32> -> vector<2x8x1xf32>
    %56 = vector.broadcast %55 : vector<2x8x1xf32> to vector<2x8x8xf32>
    %57 = arith.mulf %52, %56 : vector<2x8x8xf32>
    %58 = arith.truncf %57 : vector<2x8x8xf32> to vector<2x8x8xbf16>
    %59 = vector.extract_strided_slice %28 {offsets = [0, 0, 8], sizes = [2, 8, 8], strides = [1, 1, 1]} : vector<2x8x32xbf16> to vector<2x8x8xbf16>
    "tpu.trace_start"() <{level = 10 : i32, message = "nls,nsd->nld"}> : () -> ()
    %cst_18 = arith.constant dense<0.000000e+00> : vector<2x8x8xf32>
    %60 = tpu.matmul %58, %59, %cst_18 {dimension_numbers = #tpu.dot_dimension_numbers<[2], [1], [1], [2], [0, 0, 0, 1, 1, 2], [0], [0]>} : vector<2x8x8xbf16>, vector<2x8x8xbf16>, vector<2x8x8xf32> -> vector<2x8x8xf32>
    "tpu.trace_stop"() : () -> ()
    %61 = vector.extract_strided_slice %26 {offsets = [0, 0, 16], sizes = [2, 8, 8], strides = [1, 1, 1]} : vector<2x8x32xbf16> to vector<2x8x8xbf16>
    %62 = vector.extract_strided_slice %27 {offsets = [0, 0, 16], sizes = [2, 8, 8], strides = [1, 1, 1]} : vector<2x8x32xbf16> to vector<2x8x8xbf16>
    "tpu.trace_start"() <{level = 10 : i32, message = "nld,nsd->nls"}> : () -> ()
    %cst_19 = arith.constant dense<0.000000e+00> : vector<2x8x8xf32>
    %63 = tpu.matmul %61, %62, %cst_19 {dimension_numbers = #tpu.dot_dimension_numbers<[2], [2], [1], [1], [0, 0, 0, 1, 1, 1], [0], [0]>} : vector<2x8x8xbf16>, vector<2x8x8xbf16>, vector<2x8x8xf32> -> vector<2x8x8xf32>
    "tpu.trace_stop"() : () -> ()
    %cst_20 = arith.constant dense<0xFF800000> : vector<2x8xf32>
    %64 = vector.multi_reduction <maximumf>, %63, %cst_20 [2] : vector<2x8x8xf32> to vector<2x8xf32>
    %65 = vector.shape_cast %64 : vector<2x8xf32> to vector<2x8x1xf32>
    %66 = vector.broadcast %65 : vector<2x8x1xf32> to vector<2x8x8xf32>
    %67 = arith.subf %63, %66 : vector<2x8x8xf32>
    %68 = math.exp %67 : vector<2x8x8xf32>
    %cst_21 = arith.constant dense<0.000000e+00> : vector<2x8xf32>
    %69 = vector.multi_reduction <add>, %68, %cst_21 [2] : vector<2x8x8xf32> to vector<2x8xf32>
    %70 = vector.shape_cast %69 : vector<2x8xf32> to vector<2x8x1xf32>
    %71 = tpu.reciprocal %70 {approx = true} : vector<2x8x1xf32> -> vector<2x8x1xf32>
    %72 = vector.broadcast %71 : vector<2x8x1xf32> to vector<2x8x8xf32>
    %73 = arith.mulf %68, %72 : vector<2x8x8xf32>
    %74 = arith.truncf %73 : vector<2x8x8xf32> to vector<2x8x8xbf16>
    %75 = vector.extract_strided_slice %28 {offsets = [0, 0, 16], sizes = [2, 8, 8], strides = [1, 1, 1]} : vector<2x8x32xbf16> to vector<2x8x8xbf16>
    "tpu.trace_start"() <{level = 10 : i32, message = "nls,nsd->nld"}> : () -> ()
    %cst_22 = arith.constant dense<0.000000e+00> : vector<2x8x8xf32>
    %76 = tpu.matmul %74, %75, %cst_22 {dimension_numbers = #tpu.dot_dimension_numbers<[2], [1], [1], [2], [0, 0, 0, 1, 1, 2], [0], [0]>} : vector<2x8x8xbf16>, vector<2x8x8xbf16>, vector<2x8x8xf32> -> vector<2x8x8xf32>
    "tpu.trace_stop"() : () -> ()
    %77 = vector.extract_strided_slice %26 {offsets = [0, 0, 24], sizes = [2, 8, 8], strides = [1, 1, 1]} : vector<2x8x32xbf16> to vector<2x8x8xbf16>
    %78 = vector.extract_strided_slice %27 {offsets = [0, 0, 24], sizes = [2, 8, 8], strides = [1, 1, 1]} : vector<2x8x32xbf16> to vector<2x8x8xbf16>
    "tpu.trace_start"() <{level = 10 : i32, message = "nld,nsd->nls"}> : () -> ()
    %cst_23 = arith.constant dense<0.000000e+00> : vector<2x8x8xf32>
    %79 = tpu.matmul %77, %78, %cst_23 {dimension_numbers = #tpu.dot_dimension_numbers<[2], [2], [1], [1], [0, 0, 0, 1, 1, 1], [0], [0]>} : vector<2x8x8xbf16>, vector<2x8x8xbf16>, vector<2x8x8xf32> -> vector<2x8x8xf32>
    "tpu.trace_stop"() : () -> ()
    %cst_24 = arith.constant dense<0xFF800000> : vector<2x8xf32>
    %80 = vector.multi_reduction <maximumf>, %79, %cst_24 [2] : vector<2x8x8xf32> to vector<2x8xf32>
    %81 = vector.shape_cast %80 : vector<2x8xf32> to vector<2x8x1xf32>
    %82 = vector.broadcast %81 : vector<2x8x1xf32> to vector<2x8x8xf32>
    %83 = arith.subf %79, %82 : vector<2x8x8xf32>
    %84 = math.exp %83 : vector<2x8x8xf32>
    %cst_25 = arith.constant dense<0.000000e+00> : vector<2x8xf32>
    %85 = vector.multi_reduction <add>, %84, %cst_25 [2] : vector<2x8x8xf32> to vector<2x8xf32>
    %86 = vector.shape_cast %85 : vector<2x8xf32> to vector<2x8x1xf32>
    %87 = tpu.reciprocal %86 {approx = true} : vector<2x8x1xf32> -> vector<2x8x1xf32>
    %88 = vector.broadcast %87 : vector<2x8x1xf32> to vector<2x8x8xf32>
    %89 = arith.mulf %84, %88 : vector<2x8x8xf32>
    %90 = arith.truncf %89 : vector<2x8x8xf32> to vector<2x8x8xbf16>
    %91 = vector.extract_strided_slice %28 {offsets = [0, 0, 24], sizes = [2, 8, 8], strides = [1, 1, 1]} : vector<2x8x32xbf16> to vector<2x8x8xbf16>
    "tpu.trace_start"() <{level = 10 : i32, message = "nls,nsd->nld"}> : () -> ()
    %cst_26 = arith.constant dense<0.000000e+00> : vector<2x8x8xf32>
    %92 = tpu.matmul %90, %91, %cst_26 {dimension_numbers = #tpu.dot_dimension_numbers<[2], [1], [1], [2], [0, 0, 0, 1, 1, 2], [0], [0]>} : vector<2x8x8xbf16>, vector<2x8x8xbf16>, vector<2x8x8xf32> -> vector<2x8x8xf32>
    "tpu.trace_stop"() : () -> ()
    %93 = tpu.concatenate %44, %60, %76, %92 in 2 : vector<2x8x8xf32>, vector<2x8x8xf32>, vector<2x8x8xf32>, vector<2x8x8xf32> -> vector<2x8x32xf32>
    %94 = vector.shape_cast %93 : vector<2x8x32xf32> to vector<16x32xf32>
    %95 = arith.truncf %94 : vector<16x32xf32> to vector<16x32xbf16>
    %c0_27 = arith.constant 0 : index
    %c0_28 = arith.constant 0 : index
    %96 = vector.load %arg5[%c0_27, %c0_28] : memref<32x32xbf16, #tpu.memory_space<vmem>>, vector<32x32xbf16>
    %cst_29 = arith.constant dense<0.000000e+00> : vector<16x32xf32>
    %97 = tpu.matmul %95, %96, %cst_29 {dimension_numbers = #tpu.dot_dimension_numbers<[1], [0], [0], [1], [0, 0, 1, 1], [], []>} : vector<16x32xbf16>, vector<32x32xbf16>, vector<16x32xf32> -> vector<16x32xf32>
    %c0_30 = arith.constant 0 : index
    %c0_31 = arith.constant 0 : index
    %98 = vector.load %arg6[%c0_30, %c0_31] : memref<1x32xf32, #tpu.memory_space<vmem>>, vector<1x32xf32>
    %99 = vector.shape_cast %98 : vector<1x32xf32> to vector<32xf32>
    %100 = vector.shape_cast %99 : vector<32xf32> to vector<1x32xf32>
    %101 = vector.broadcast %100 : vector<1x32xf32> to vector<16x32xf32>
    %102 = arith.addf %97, %101 : vector<16x32xf32>
    %103 = arith.addf %1, %102 : vector<16x32xf32>
    %cst_32 = arith.constant dense<0.000000e+00> : vector<16xf32>
    %104 = vector.multi_reduction <add>, %103, %cst_32 [1] : vector<16x32xf32> to vector<16xf32>
    %105 = vector.shape_cast %104 : vector<16xf32> to vector<16x1xf32>
    %cst_33 = arith.constant 3.200000e+01 : f32
    %106 = vector.broadcast %cst_33 : f32 to vector<16x1xf32>
    %107 = arith.divf %105, %106 : vector<16x1xf32>
    %108 = vector.broadcast %107 : vector<16x1xf32> to vector<16x32xf32>
    %109 = arith.subf %103, %108 : vector<16x32xf32>
    %110 = arith.mulf %109, %109 : vector<16x32xf32>
    %cst_34 = arith.constant dense<0.000000e+00> : vector<16xf32>
    %111 = vector.multi_reduction <add>, %110, %cst_34 [1] : vector<16x32xf32> to vector<16xf32>
    %112 = vector.shape_cast %111 : vector<16xf32> to vector<16x1xf32>
    %cst_35 = arith.constant 3.200000e+01 : f32
    %113 = vector.broadcast %cst_35 : f32 to vector<16x1xf32>
    %114 = arith.divf %112, %113 : vector<16x1xf32>
    %cst_36 = arith.constant 9.99999974E-6 : f32
    %115 = vector.broadcast %cst_36 : f32 to vector<16x1xf32>
    %116 = arith.addf %114, %115 : vector<16x1xf32>
    %117 = math.rsqrt %116 : vector<16x1xf32>
    %118 = vector.broadcast %117 : vector<16x1xf32> to vector<16x32xf32>
    %119 = arith.mulf %109, %118 : vector<16x32xf32>
    %c0_37 = arith.constant 0 : index
    %c0_38 = arith.constant 0 : index
    %120 = vector.load %arg17[%c0_37, %c0_38] : memref<1x32xf32, #tpu.memory_space<vmem>>, vector<1x32xf32>
    %121 = vector.shape_cast %120 : vector<1x32xf32> to vector<32xf32>
    %122 = vector.shape_cast %121 : vector<32xf32> to vector<1x32xf32>
    %123 = vector.broadcast %122 : vector<1x32xf32> to vector<16x32xf32>
    %124 = arith.mulf %119, %123 : vector<16x32xf32>
    %c0_39 = arith.constant 0 : index
    %c0_40 = arith.constant 0 : index
    %125 = vector.load %arg18[%c0_39, %c0_40] : memref<1x32xf32, #tpu.memory_space<vmem>>, vector<1x32xf32>
    %126 = vector.shape_cast %125 : vector<1x32xf32> to vector<32xf32>
    %127 = vector.shape_cast %126 : vector<32xf32> to vector<1x32xf32>
    %128 = vector.broadcast %127 : vector<1x32xf32> to vector<16x32xf32>
    %129 = arith.addf %124, %128 : vector<16x32xf32>
    %130 = arith.truncf %129 : vector<16x32xf32> to vector<16x32xbf16>
    %c0_41 = arith.constant 0 : index
    %c0_42 = arith.constant 0 : index
    %131 = vector.load %arg7[%c0_41, %c0_42] : memref<32x32xbf16, #tpu.memory_space<vmem>>, vector<32x32xbf16>
    %cst_43 = arith.constant dense<0.000000e+00> : vector<16x32xf32>
    %132 = tpu.matmul %130, %131, %cst_43 {dimension_numbers = #tpu.dot_dimension_numbers<[1], [0], [0], [1], [0, 0, 1, 1], [], []>} : vector<16x32xbf16>, vector<32x32xbf16>, vector<16x32xf32> -> vector<16x32xf32>
    %c0_44 = arith.constant 0 : index
    %c0_45 = arith.constant 0 : index
    %133 = vector.load %arg8[%c0_44, %c0_45] : memref<1x32xf32, #tpu.memory_space<vmem>>, vector<1x32xf32>
    %134 = vector.shape_cast %133 : vector<1x32xf32> to vector<32xf32>
    %135 = vector.shape_cast %134 : vector<32xf32> to vector<1x32xf32>
    %136 = vector.broadcast %135 : vector<1x32xf32> to vector<16x32xf32>
    %137 = arith.addf %132, %136 : vector<16x32xf32>
    %138 = arith.truncf %137 : vector<16x32xf32> to vector<16x32xbf16>
    %139 = arith.truncf %3 : vector<256x32xf32> to vector<256x32xbf16>
    %c0_46 = arith.constant 0 : index
    %c0_47 = arith.constant 0 : index
    %140 = vector.load %arg9[%c0_46, %c0_47] : memref<32x64xbf16, #tpu.memory_space<vmem>>, vector<32x64xbf16>
    %cst_48 = arith.constant dense<0.000000e+00> : vector<256x64xf32>
    %141 = tpu.matmul %139, %140, %cst_48 {dimension_numbers = #tpu.dot_dimension_numbers<[1], [0], [0], [1], [0, 0, 1, 1], [], []>} : vector<256x32xbf16>, vector<32x64xbf16>, vector<256x64xf32> -> vector<256x64xf32>
    %c0_49 = arith.constant 0 : index
    %c0_50 = arith.constant 0 : index
    %142 = vector.load %arg10[%c0_49, %c0_50] : memref<1x64xf32, #tpu.memory_space<vmem>>, vector<1x64xf32>
    %143 = vector.shape_cast %142 : vector<1x64xf32> to vector<64xf32>
    %144 = vector.shape_cast %143 : vector<64xf32> to vector<1x64xf32>
    %145 = vector.broadcast %144 : vector<1x64xf32> to vector<256x64xf32>
    %146 = arith.addf %141, %145 : vector<256x64xf32>
    %147 = vector.extract_strided_slice %146 {offsets = [0, 0], sizes = [256, 32], strides = [1, 1]} : vector<256x64xf32> to vector<256x32xf32>
    %148 = arith.truncf %147 : vector<256x32xf32> to vector<256x32xbf16>
    %149 = vector.extract_strided_slice %146 {offsets = [0, 32], sizes = [256, 32], strides = [1, 1]} : vector<256x64xf32> to vector<256x32xf32>
    %150 = arith.truncf %149 : vector<256x32xf32> to vector<256x32xbf16>
    %151 = vector.shape_cast %138 : vector<16x32xbf16> to vector<2x8x32xbf16>
    %152 = vector.shape_cast %148 : vector<256x32xbf16> to vector<2x128x32xbf16>
    %153 = vector.shape_cast %150 : vector<256x32xbf16> to vector<2x128x32xbf16>
    %154 = vector.extract_strided_slice %151 {offsets = [0, 0, 0], sizes = [2, 8, 8], strides = [1, 1, 1]} : vector<2x8x32xbf16> to vector<2x8x8xbf16>
    %155 = vector.extract_strided_slice %152 {offsets = [0, 0, 0], sizes = [2, 128, 8], strides = [1, 1, 1]} : vector<2x128x32xbf16> to vector<2x128x8xbf16>
    "tpu.trace_start"() <{level = 10 : i32, message = "nld,nsd->nls"}> : () -> ()
    %cst_51 = arith.constant dense<0.000000e+00> : vector<2x8x128xf32>
    %156 = tpu.matmul %154, %155, %cst_51 {dimension_numbers = #tpu.dot_dimension_numbers<[2], [2], [1], [1], [0, 0, 0, 1, 1, 1], [0], [0]>} : vector<2x8x8xbf16>, vector<2x128x8xbf16>, vector<2x8x128xf32> -> vector<2x8x128xf32>
    "tpu.trace_stop"() : () -> ()
    %157 = arith.addf %156, %11 : vector<2x8x128xf32>
    %cst_52 = arith.constant dense<0xFF800000> : vector<2x8xf32>
    %158 = vector.multi_reduction <maximumf>, %157, %cst_52 [2] : vector<2x8x128xf32> to vector<2x8xf32>
    %159 = vector.shape_cast %158 : vector<2x8xf32> to vector<2x8x1xf32>
    %160 = vector.broadcast %159 : vector<2x8x1xf32> to vector<2x8x128xf32>
    %161 = arith.subf %157, %160 : vector<2x8x128xf32>
    %162 = math.exp %161 : vector<2x8x128xf32>
    %cst_53 = arith.constant dense<0.000000e+00> : vector<2x8xf32>
    %163 = vector.multi_reduction <add>, %162, %cst_53 [2] : vector<2x8x128xf32> to vector<2x8xf32>
    %164 = vector.shape_cast %163 : vector<2x8xf32> to vector<2x8x1xf32>
    %165 = tpu.reciprocal %164 : vector<2x8x1xf32> -> vector<2x8x1xf32>
    %166 = vector.broadcast %165 : vector<2x8x1xf32> to vector<2x8x128xf32>
    %167 = arith.mulf %162, %166 : vector<2x8x128xf32>
    %168 = arith.truncf %167 : vector<2x8x128xf32> to vector<2x8x128xbf16>
    %169 = vector.extract_strided_slice %153 {offsets = [0, 0, 0], sizes = [2, 128, 8], strides = [1, 1, 1]} : vector<2x128x32xbf16> to vector<2x128x8xbf16>
    "tpu.trace_start"() <{level = 10 : i32, message = "nls,nsd->nld"}> : () -> ()
    %cst_54 = arith.constant dense<0.000000e+00> : vector<2x8x8xf32>
    %170 = tpu.matmul %168, %169, %cst_54 {dimension_numbers = #tpu.dot_dimension_numbers<[2], [1], [1], [2], [0, 0, 0, 1, 1, 2], [0], [0]>} : vector<2x8x128xbf16>, vector<2x128x8xbf16>, vector<2x8x8xf32> -> vector<2x8x8xf32>
    "tpu.trace_stop"() : () -> ()
    %171 = vector.extract_strided_slice %151 {offsets = [0, 0, 8], sizes = [2, 8, 8], strides = [1, 1, 1]} : vector<2x8x32xbf16> to vector<2x8x8xbf16>
    %172 = vector.extract_strided_slice %152 {offsets = [0, 0, 8], sizes = [2, 128, 8], strides = [1, 1, 1]} : vector<2x128x32xbf16> to vector<2x128x8xbf16>
    "tpu.trace_start"() <{level = 10 : i32, message = "nld,nsd->nls"}> : () -> ()
    %cst_55 = arith.constant dense<0.000000e+00> : vector<2x8x128xf32>
    %173 = tpu.matmul %171, %172, %cst_55 {dimension_numbers = #tpu.dot_dimension_numbers<[2], [2], [1], [1], [0, 0, 0, 1, 1, 1], [0], [0]>} : vector<2x8x8xbf16>, vector<2x128x8xbf16>, vector<2x8x128xf32> -> vector<2x8x128xf32>
    "tpu.trace_stop"() : () -> ()
    %174 = arith.addf %173, %11 : vector<2x8x128xf32>
    %cst_56 = arith.constant dense<0xFF800000> : vector<2x8xf32>
    %175 = vector.multi_reduction <maximumf>, %174, %cst_56 [2] : vector<2x8x128xf32> to vector<2x8xf32>
    %176 = vector.shape_cast %175 : vector<2x8xf32> to vector<2x8x1xf32>
    %177 = vector.broadcast %176 : vector<2x8x1xf32> to vector<2x8x128xf32>
    %178 = arith.subf %174, %177 : vector<2x8x128xf32>
    %179 = math.exp %178 : vector<2x8x128xf32>
    %cst_57 = arith.constant dense<0.000000e+00> : vector<2x8xf32>
    %180 = vector.multi_reduction <add>, %179, %cst_57 [2] : vector<2x8x128xf32> to vector<2x8xf32>
    %181 = vector.shape_cast %180 : vector<2x8xf32> to vector<2x8x1xf32>
    %182 = tpu.reciprocal %181 : vector<2x8x1xf32> -> vector<2x8x1xf32>
    %183 = vector.broadcast %182 : vector<2x8x1xf32> to vector<2x8x128xf32>
    %184 = arith.mulf %179, %183 : vector<2x8x128xf32>
    %185 = arith.truncf %184 : vector<2x8x128xf32> to vector<2x8x128xbf16>
    %186 = vector.extract_strided_slice %153 {offsets = [0, 0, 8], sizes = [2, 128, 8], strides = [1, 1, 1]} : vector<2x128x32xbf16> to vector<2x128x8xbf16>
    "tpu.trace_start"() <{level = 10 : i32, message = "nls,nsd->nld"}> : () -> ()
    %cst_58 = arith.constant dense<0.000000e+00> : vector<2x8x8xf32>
    %187 = tpu.matmul %185, %186, %cst_58 {dimension_numbers = #tpu.dot_dimension_numbers<[2], [1], [1], [2], [0, 0, 0, 1, 1, 2], [0], [0]>} : vector<2x8x128xbf16>, vector<2x128x8xbf16>, vector<2x8x8xf32> -> vector<2x8x8xf32>
    "tpu.trace_stop"() : () -> ()
    %188 = arith.addf %167, %184 : vector<2x8x128xf32>
    %189 = vector.extract_strided_slice %151 {offsets = [0, 0, 16], sizes = [2, 8, 8], strides = [1, 1, 1]} : vector<2x8x32xbf16> to vector<2x8x8xbf16>
    %190 = vector.extract_strided_slice %152 {offsets = [0, 0, 16], sizes = [2, 128, 8], strides = [1, 1, 1]} : vector<2x128x32xbf16> to vector<2x128x8xbf16>
    "tpu.trace_start"() <{level = 10 : i32, message = "nld,nsd->nls"}> : () -> ()
    %cst_59 = arith.constant dense<0.000000e+00> : vector<2x8x128xf32>
    %191 = tpu.matmul %189, %190, %cst_59 {dimension_numbers = #tpu.dot_dimension_numbers<[2], [2], [1], [1], [0, 0, 0, 1, 1, 1], [0], [0]>} : vector<2x8x8xbf16>, vector<2x128x8xbf16>, vector<2x8x128xf32> -> vector<2x8x128xf32>
    "tpu.trace_stop"() : () -> ()
    %192 = arith.addf %191, %11 : vector<2x8x128xf32>
    %cst_60 = arith.constant dense<0xFF800000> : vector<2x8xf32>
    %193 = vector.multi_reduction <maximumf>, %192, %cst_60 [2] : vector<2x8x128xf32> to vector<2x8xf32>
    %194 = vector.shape_cast %193 : vector<2x8xf32> to vector<2x8x1xf32>
    %195 = vector.broadcast %194 : vector<2x8x1xf32> to vector<2x8x128xf32>
    %196 = arith.subf %192, %195 : vector<2x8x128xf32>
    %197 = math.exp %196 : vector<2x8x128xf32>
    %cst_61 = arith.constant dense<0.000000e+00> : vector<2x8xf32>
    %198 = vector.multi_reduction <add>, %197, %cst_61 [2] : vector<2x8x128xf32> to vector<2x8xf32>
    %199 = vector.shape_cast %198 : vector<2x8xf32> to vector<2x8x1xf32>
    %200 = tpu.reciprocal %199 : vector<2x8x1xf32> -> vector<2x8x1xf32>
    %201 = vector.broadcast %200 : vector<2x8x1xf32> to vector<2x8x128xf32>
    %202 = arith.mulf %197, %201 : vector<2x8x128xf32>
    %203 = arith.truncf %202 : vector<2x8x128xf32> to vector<2x8x128xbf16>
    %204 = vector.extract_strided_slice %153 {offsets = [0, 0, 16], sizes = [2, 128, 8], strides = [1, 1, 1]} : vector<2x128x32xbf16> to vector<2x128x8xbf16>
    "tpu.trace_start"() <{level = 10 : i32, message = "nls,nsd->nld"}> : () -> ()
    %cst_62 = arith.constant dense<0.000000e+00> : vector<2x8x8xf32>
    %205 = tpu.matmul %203, %204, %cst_62 {dimension_numbers = #tpu.dot_dimension_numbers<[2], [1], [1], [2], [0, 0, 0, 1, 1, 2], [0], [0]>} : vector<2x8x128xbf16>, vector<2x128x8xbf16>, vector<2x8x8xf32> -> vector<2x8x8xf32>
    "tpu.trace_stop"() : () -> ()
    %206 = arith.addf %188, %202 : vector<2x8x128xf32>
    %207 = vector.extract_strided_slice %151 {offsets = [0, 0, 24], sizes = [2, 8, 8], strides = [1, 1, 1]} : vector<2x8x32xbf16> to vector<2x8x8xbf16>
    %208 = vector.extract_strided_slice %152 {offsets = [0, 0, 24], sizes = [2, 128, 8], strides = [1, 1, 1]} : vector<2x128x32xbf16> to vector<2x128x8xbf16>
    "tpu.trace_start"() <{level = 10 : i32, message = "nld,nsd->nls"}> : () -> ()
    %cst_63 = arith.constant dense<0.000000e+00> : vector<2x8x128xf32>
    %209 = tpu.matmul %207, %208, %cst_63 {dimension_numbers = #tpu.dot_dimension_numbers<[2], [2], [1], [1], [0, 0, 0, 1, 1, 1], [0], [0]>} : vector<2x8x8xbf16>, vector<2x128x8xbf16>, vector<2x8x128xf32> -> vector<2x8x128xf32>
    "tpu.trace_stop"() : () -> ()
    %210 = arith.addf %209, %11 : vector<2x8x128xf32>
    %cst_64 = arith.constant dense<0xFF800000> : vector<2x8xf32>
    %211 = vector.multi_reduction <maximumf>, %210, %cst_64 [2] : vector<2x8x128xf32> to vector<2x8xf32>
    %212 = vector.shape_cast %211 : vector<2x8xf32> to vector<2x8x1xf32>
    %213 = vector.broadcast %212 : vector<2x8x1xf32> to vector<2x8x128xf32>
    %214 = arith.subf %210, %213 : vector<2x8x128xf32>
    %215 = math.exp %214 : vector<2x8x128xf32>
    %cst_65 = arith.constant dense<0.000000e+00> : vector<2x8xf32>
    %216 = vector.multi_reduction <add>, %215, %cst_65 [2] : vector<2x8x128xf32> to vector<2x8xf32>
    %217 = vector.shape_cast %216 : vector<2x8xf32> to vector<2x8x1xf32>
    %218 = tpu.reciprocal %217 : vector<2x8x1xf32> -> vector<2x8x1xf32>
    %219 = vector.broadcast %218 : vector<2x8x1xf32> to vector<2x8x128xf32>
    %220 = arith.mulf %215, %219 : vector<2x8x128xf32>
    %221 = arith.truncf %220 : vector<2x8x128xf32> to vector<2x8x128xbf16>
    %222 = vector.extract_strided_slice %153 {offsets = [0, 0, 24], sizes = [2, 128, 8], strides = [1, 1, 1]} : vector<2x128x32xbf16> to vector<2x128x8xbf16>
    "tpu.trace_start"() <{level = 10 : i32, message = "nls,nsd->nld"}> : () -> ()
    %cst_66 = arith.constant dense<0.000000e+00> : vector<2x8x8xf32>
    %223 = tpu.matmul %221, %222, %cst_66 {dimension_numbers = #tpu.dot_dimension_numbers<[2], [1], [1], [2], [0, 0, 0, 1, 1, 2], [0], [0]>} : vector<2x8x128xbf16>, vector<2x128x8xbf16>, vector<2x8x8xf32> -> vector<2x8x8xf32>
    "tpu.trace_stop"() : () -> ()
    %224 = arith.addf %206, %220 : vector<2x8x128xf32>
    %225 = tpu.concatenate %170, %187, %205, %223 in 2 : vector<2x8x8xf32>, vector<2x8x8xf32>, vector<2x8x8xf32>, vector<2x8x8xf32> -> vector<2x8x32xf32>
    %226 = vector.shape_cast %225 : vector<2x8x32xf32> to vector<16x32xf32>
    %227 = arith.truncf %226 : vector<16x32xf32> to vector<16x32xbf16>
    %c0_67 = arith.constant 0 : index
    %c0_68 = arith.constant 0 : index
    %228 = vector.load %arg11[%c0_67, %c0_68] : memref<32x32xbf16, #tpu.memory_space<vmem>>, vector<32x32xbf16>
    %cst_69 = arith.constant dense<0.000000e+00> : vector<16x32xf32>
    %229 = tpu.matmul %227, %228, %cst_69 {dimension_numbers = #tpu.dot_dimension_numbers<[1], [0], [0], [1], [0, 0, 1, 1], [], []>} : vector<16x32xbf16>, vector<32x32xbf16>, vector<16x32xf32> -> vector<16x32xf32>
    %c0_70 = arith.constant 0 : index
    %c0_71 = arith.constant 0 : index
    %230 = vector.load %arg12[%c0_70, %c0_71] : memref<1x32xf32, #tpu.memory_space<vmem>>, vector<1x32xf32>
    %231 = vector.shape_cast %230 : vector<1x32xf32> to vector<32xf32>
    %232 = vector.shape_cast %231 : vector<32xf32> to vector<1x32xf32>
    %233 = vector.broadcast %232 : vector<1x32xf32> to vector<16x32xf32>
    %234 = arith.addf %229, %233 : vector<16x32xf32>
    %cst_72 = arith.constant 2.500000e-01 : f32
    %235 = vector.broadcast %cst_72 : f32 to vector<2x8x128xf32>
    %236 = arith.mulf %224, %235 : vector<2x8x128xf32>
    %237 = arith.addf %129, %234 : vector<16x32xf32>
    %cst_73 = arith.constant dense<0.000000e+00> : vector<16xf32>
    %238 = vector.multi_reduction <add>, %237, %cst_73 [1] : vector<16x32xf32> to vector<16xf32>
    %239 = vector.shape_cast %238 : vector<16xf32> to vector<16x1xf32>
    %cst_74 = arith.constant 3.200000e+01 : f32
    %240 = vector.broadcast %cst_74 : f32 to vector<16x1xf32>
    %241 = arith.divf %239, %240 : vector<16x1xf32>
    %242 = vector.broadcast %241 : vector<16x1xf32> to vector<16x32xf32>
    %243 = arith.subf %237, %242 : vector<16x32xf32>
    %244 = arith.mulf %243, %243 : vector<16x32xf32>
    %cst_75 = arith.constant dense<0.000000e+00> : vector<16xf32>
    %245 = vector.multi_reduction <add>, %244, %cst_75 [1] : vector<16x32xf32> to vector<16xf32>
    %246 = vector.shape_cast %245 : vector<16xf32> to vector<16x1xf32>
    %cst_76 = arith.constant 3.200000e+01 : f32
    %247 = vector.broadcast %cst_76 : f32 to vector<16x1xf32>
    %248 = arith.divf %246, %247 : vector<16x1xf32>
    %cst_77 = arith.constant 9.99999974E-6 : f32
    %249 = vector.broadcast %cst_77 : f32 to vector<16x1xf32>
    %250 = arith.addf %248, %249 : vector<16x1xf32>
    %251 = math.rsqrt %250 : vector<16x1xf32>
    %252 = vector.broadcast %251 : vector<16x1xf32> to vector<16x32xf32>
    %253 = arith.mulf %243, %252 : vector<16x32xf32>
    %c0_78 = arith.constant 0 : index
    %c0_79 = arith.constant 0 : index
    %254 = vector.load %arg19[%c0_78, %c0_79] : memref<1x32xf32, #tpu.memory_space<vmem>>, vector<1x32xf32>
    %255 = vector.shape_cast %254 : vector<1x32xf32> to vector<32xf32>
    %256 = vector.shape_cast %255 : vector<32xf32> to vector<1x32xf32>
    %257 = vector.broadcast %256 : vector<1x32xf32> to vector<16x32xf32>
    %258 = arith.mulf %253, %257 : vector<16x32xf32>
    %c0_80 = arith.constant 0 : index
    %c0_81 = arith.constant 0 : index
    %259 = vector.load %arg20[%c0_80, %c0_81] : memref<1x32xf32, #tpu.memory_space<vmem>>, vector<1x32xf32>
    %260 = vector.shape_cast %259 : vector<1x32xf32> to vector<32xf32>
    %261 = vector.shape_cast %260 : vector<32xf32> to vector<1x32xf32>
    %262 = vector.broadcast %261 : vector<1x32xf32> to vector<16x32xf32>
    %263 = arith.addf %258, %262 : vector<16x32xf32>
    %264 = arith.truncf %263 : vector<16x32xf32> to vector<16x32xbf16>
    %c0_82 = arith.constant 0 : index
    %c0_83 = arith.constant 0 : index
    %265 = vector.load %arg13[%c0_82, %c0_83] : memref<32x64xbf16, #tpu.memory_space<vmem>>, vector<32x64xbf16>
    %cst_84 = arith.constant dense<0.000000e+00> : vector<16x64xf32>
    %266 = tpu.matmul %264, %265, %cst_84 {dimension_numbers = #tpu.dot_dimension_numbers<[1], [0], [0], [1], [0, 0, 1, 1], [], []>} : vector<16x32xbf16>, vector<32x64xbf16>, vector<16x64xf32> -> vector<16x64xf32>
    %c0_85 = arith.constant 0 : index
    %c0_86 = arith.constant 0 : index
    %267 = vector.load %arg14[%c0_85, %c0_86] : memref<1x64xf32, #tpu.memory_space<vmem>>, vector<1x64xf32>
    %268 = vector.shape_cast %267 : vector<1x64xf32> to vector<64xf32>
    %269 = vector.shape_cast %268 : vector<64xf32> to vector<1x64xf32>
    %270 = vector.broadcast %269 : vector<1x64xf32> to vector<16x64xf32>
    %271 = arith.addf %266, %270 : vector<16x64xf32>
    %cst_87 = arith.constant 0.000000e+00 : f32
    %272 = vector.broadcast %cst_87 : f32 to vector<16x64xf32>
    %273 = arith.maximumf %271, %272 : vector<16x64xf32>
    %274 = arith.truncf %273 : vector<16x64xf32> to vector<16x64xbf16>
    %c0_88 = arith.constant 0 : index
    %c0_89 = arith.constant 0 : index
    %275 = vector.load %arg15[%c0_88, %c0_89] : memref<64x32xbf16, #tpu.memory_space<vmem>>, vector<64x32xbf16>
    %cst_90 = arith.constant dense<0.000000e+00> : vector<16x32xf32>
    %276 = tpu.matmul %274, %275, %cst_90 {dimension_numbers = #tpu.dot_dimension_numbers<[1], [0], [0], [1], [0, 0, 1, 1], [], []>} : vector<16x64xbf16>, vector<64x32xbf16>, vector<16x32xf32> -> vector<16x32xf32>
    %c0_91 = arith.constant 0 : index
    %c0_92 = arith.constant 0 : index
    %277 = vector.load %arg16[%c0_91, %c0_92] : memref<1x32xf32, #tpu.memory_space<vmem>>, vector<1x32xf32>
    %278 = vector.shape_cast %277 : vector<1x32xf32> to vector<32xf32>
    %279 = vector.shape_cast %278 : vector<32xf32> to vector<1x32xf32>
    %280 = vector.broadcast %279 : vector<1x32xf32> to vector<16x32xf32>
    %281 = arith.addf %276, %280 : vector<16x32xf32>
    %282 = arith.addf %263, %281 : vector<16x32xf32>
    %cst_93 = arith.constant dense<0.000000e+00> : vector<16xf32>
    %283 = vector.multi_reduction <add>, %282, %cst_93 [1] : vector<16x32xf32> to vector<16xf32>
    %284 = vector.shape_cast %283 : vector<16xf32> to vector<16x1xf32>
    %cst_94 = arith.constant 3.200000e+01 : f32
    %285 = vector.broadcast %cst_94 : f32 to vector<16x1xf32>
    %286 = arith.divf %284, %285 : vector<16x1xf32>
    %287 = vector.broadcast %286 : vector<16x1xf32> to vector<16x32xf32>
    %288 = arith.subf %282, %287 : vector<16x32xf32>
    %289 = arith.mulf %288, %288 : vector<16x32xf32>
    %cst_95 = arith.constant dense<0.000000e+00> : vector<16xf32>
    %290 = vector.multi_reduction <add>, %289, %cst_95 [1] : vector<16x32xf32> to vector<16xf32>
    %291 = vector.shape_cast %290 : vector<16xf32> to vector<16x1xf32>
    %cst_96 = arith.constant 3.200000e+01 : f32
    %292 = vector.broadcast %cst_96 : f32 to vector<16x1xf32>
    %293 = arith.divf %291, %292 : vector<16x1xf32>
    %cst_97 = arith.constant 9.99999974E-6 : f32
    %294 = vector.broadcast %cst_97 : f32 to vector<16x1xf32>
    %295 = arith.addf %293, %294 : vector<16x1xf32>
    %296 = math.rsqrt %295 : vector<16x1xf32>
    %297 = vector.broadcast %296 : vector<16x1xf32> to vector<16x32xf32>
    %298 = arith.mulf %288, %297 : vector<16x32xf32>
    %c0_98 = arith.constant 0 : index
    %c0_99 = arith.constant 0 : index
    %299 = vector.load %arg21[%c0_98, %c0_99] : memref<1x32xf32, #tpu.memory_space<vmem>>, vector<1x32xf32>
    %300 = vector.shape_cast %299 : vector<1x32xf32> to vector<32xf32>
    %301 = vector.shape_cast %300 : vector<32xf32> to vector<1x32xf32>
    %302 = vector.broadcast %301 : vector<1x32xf32> to vector<16x32xf32>
    %303 = arith.mulf %298, %302 : vector<16x32xf32>
    %c0_100 = arith.constant 0 : index
    %c0_101 = arith.constant 0 : index
    %304 = vector.load %arg22[%c0_100, %c0_101] : memref<1x32xf32, #tpu.memory_space<vmem>>, vector<1x32xf32>
    %305 = vector.shape_cast %304 : vector<1x32xf32> to vector<32xf32>
    %306 = vector.shape_cast %305 : vector<32xf32> to vector<1x32xf32>
    %307 = vector.broadcast %306 : vector<1x32xf32> to vector<16x32xf32>
    %308 = arith.addf %303, %307 : vector<16x32xf32>
    %309 = vector.shape_cast %308 : vector<16x32xf32> to vector<2x8x32xf32>
    %c0_102 = arith.constant 0 : index
    %c0_103 = arith.constant 0 : index
    %c0_104 = arith.constant 0 : index
    %310 = vector.load %arg23[%c0_102, %c0_103, %c0_104] : memref<2x8x32xf32, #tpu.memory_space<vmem>>, vector<2x8x32xf32>
    tpu.vector_store %arg23[%c0_102, %c0_103, %c0_104], %309 {strides = array<i32>} : memref<2x8x32xf32, #tpu.memory_space<vmem>>, vector<2x8x32xf32>,
    %c0_105 = arith.constant 0 : index
    %c0_106 = arith.constant 0 : index
    %c0_107 = arith.constant 0 : index
    %311 = vector.load %arg24[%c0_105, %c0_106, %c0_107] : memref<2x8x128xf32, #tpu.memory_space<vmem>>, vector<2x8x128xf32>
    tpu.vector_store %arg24[%c0_105, %c0_106, %c0_107], %236 {strides = array<i32>} : memref<2x8x128xf32, #tpu.memory_space<vmem>>, vector<2x8x128xf32>,
    return
  }
  func.func @transform_0(%arg0: i32) -> (i32, i32, i32) {
    %c0_i32 = arith.constant 0 : i32
    %c0_i32_0 = arith.constant 0 : i32
    %c0_i32_1 = arith.constant 0 : i32
    return %arg0, %c0_i32, %c0_i32_0 : i32, i32, i32
  }
  func.func @transform_1(%arg0: i32) -> (i32, i32, i32) {
    %c0_i32 = arith.constant 0 : i32
    %c0_i32_0 = arith.constant 0 : i32
    %c0_i32_1 = arith.constant 0 : i32
    return %arg0, %c0_i32, %c0_i32_0 : i32, i32, i32
  }
  func.func @transform_2(%arg0: i32) -> (i32, i32) {
    %c0_i32 = arith.constant 0 : i32
    %c0_i32_0 = arith.constant 0 : i32
    %c0_i32_1 = arith.constant 0 : i32
    return %c0_i32, %c0_i32_0 : i32, i32
  }
  func.func @transform_3(%arg0: i32) -> (i32, i32) {
    %c0_i32 = arith.constant 0 : i32
    %c0_i32_0 = arith.constant 0 : i32
    %c0_i32_1 = arith.constant 0 : i32
    return %c0_i32, %c0_i32_0 : i32, i32
  }
  func.func @transform_4(%arg0: i32) -> (i32, i32) {
    %c0_i32 = arith.constant 0 : i32
    %c0_i32_0 = arith.constant 0 : i32
    %c0_i32_1 = arith.constant 0 : i32
    return %c0_i32, %c0_i32_0 : i32, i32
  }
  func.func @transform_5(%arg0: i32) -> (i32, i32) {
    %c0_i32 = arith.constant 0 : i32
    %c0_i32_0 = arith.constant 0 : i32
    %c0_i32_1 = arith.constant 0 : i32
    return %c0_i32, %c0_i32_0 : i32, i32
  }
  func.func @transform_6(%arg0: i32) -> (i32, i32) {
    %c0_i32 = arith.constant 0 : i32
    %c0_i32_0 = arith.constant 0 : i32
    %c0_i32_1 = arith.constant 0 : i32
    return %c0_i32, %c0_i32_0 : i32, i32
  }
  func.func @transform_7(%arg0: i32) -> (i32, i32) {
    %c0_i32 = arith.constant 0 : i32
    %c0_i32_0 = arith.constant 0 : i32
    %c0_i32_1 = arith.constant 0 : i32
    return %c0_i32, %c0_i32_0 : i32, i32
  }
  func.func @transform_8(%arg0: i32) -> (i32, i32) {
    %c0_i32 = arith.constant 0 : i32
    %c0_i32_0 = arith.constant 0 : i32
    %c0_i32_1 = arith.constant 0 : i32
    return %c0_i32, %c0_i32_0 : i32, i32
  }
  func.func @transform_9(%arg0: i32) -> (i32, i32) {
    %c0_i32 = arith.constant 0 : i32
    %c0_i32_0 = arith.constant 0 : i32
    %c0_i32_1 = arith.constant 0 : i32
    return %c0_i32, %c0_i32_0 : i32, i32
  }
  func.func @transform_10(%arg0: i32) -> (i32, i32) {
    %c0_i32 = arith.constant 0 : i32
    %c0_i32_0 = arith.constant 0 : i32
    %c0_i32_1 = arith.constant 0 : i32
    return %c0_i32, %c0_i32_0 : i32, i32
  }
  func.func @transform_11(%arg0: i32) -> (i32, i32) {
    %c0_i32 = arith.constant 0 : i32
    %c0_i32_0 = arith.constant 0 : i32
    %c0_i32_1 = arith.constant 0 : i32
    return %c0_i32, %c0_i32_0 : i32, i32
  }
  func.func @transform_12(%arg0: i32) -> (i32, i32) {
    %c0_i32 = arith.constant 0 : i32
    %c0_i32_0 = arith.constant 0 : i32
    %c0_i32_1 = arith.constant 0 : i32
    return %c0_i32, %c0_i32_0 : i32, i32
  }
  func.func @transform_13(%arg0: i32) -> (i32, i32) {
    %c0_i32 = arith.constant 0 : i32
    %c0_i32_0 = arith.constant 0 : i32
    %c0_i32_1 = arith.constant 0 : i32
    return %c0_i32, %c0_i32_0 : i32, i32
  }
  func.func @transform_14(%arg0: i32) -> (i32, i32) {
    %c0_i32 = arith.constant 0 : i32
    %c0_i32_0 = arith.constant 0 : i32
    %c0_i32_1 = arith.constant 0 : i32
    return %c0_i32, %c0_i32_0 : i32, i32
  }
  func.func @transform_15(%arg0: i32) -> (i32, i32) {
    %c0_i32 = arith.constant 0 : i32
    %c0_i32_0 = arith.constant 0 : i32
    %c0_i32_1 = arith.constant 0 : i32
    return %c0_i32, %c0_i32_0 : i32, i32
  }
  func.func @transform_16(%arg0: i32) -> (i32, i32) {
    %c0_i32 = arith.constant 0 : i32
    %c0_i32_0 = arith.constant 0 : i32
    %c0_i32_1 = arith.constant 0 : i32
    return %c0_i32, %c0_i32_0 : i32, i32
  }
  func.func @transform_17(%arg0: i32) -> (i32, i32) {
    %c0_i32 = arith.constant 0 : i32
    %c0_i32_0 = arith.constant 0 : i32
    %c0_i32_1 = arith.constant 0 : i32
    return %c0_i32, %c0_i32_0 : i32, i32
  }
  func.func @transform_18(%arg0: i32) -> (i32, i32) {
    %c0_i32 = arith.constant 0 : i32
    %c0_i32_0 = arith.constant 0 : i32
    %c0_i32_1 = arith.constant 0 : i32
    return %c0_i32, %c0_i32_0 : i32, i32
  }
  func.func @transform_19(%arg0: i32) -> (i32, i32) {
    %c0_i32 = arith.constant 0 : i32
    %c0_i32_0 = arith.constant 0 : i32
    %c0_i32_1 = arith.constant 0 : i32
    return %c0_i32, %c0_i32_0 : i32, i32
  }
  func.func @transform_20(%arg0: i32) -> (i32, i32) {
    %c0_i32 = arith.constant 0 : i32
    %c0_i32_0 = arith.constant 0 : i32
    %c0_i32_1 = arith.constant 0 : i32
    return %c0_i32, %c0_i32_0 : i32, i32
  }
  func.func @transform_21(%arg0: i32) -> (i32, i32) {
    %c0_i32 = arith.constant 0 : i32
    %c0_i32_0 = arith.constant 0 : i32
    %c0_i32_1 = arith.constant 0 : i32
    return %c0_i32, %c0_i32_0 : i32, i32
  }
  func.func @transform_22(%arg0: i32) -> (i32, i32, i32) {
    %c0_i32 = arith.constant 0 : i32
    %c0_i32_0 = arith.constant 0 : i32
    %c0_i32_1 = arith.constant 0 : i32
    return %arg0, %c0_i32, %c0_i32_0 : i32, i32, i32
  }
  func.func @transform_23(%arg0: i32) -> (i32, i32, i32) {
    %c0_i32 = arith.constant 0 : i32
    %c0_i32_0 = arith.constant 0 : i32
    %c0_i32_1 = arith.constant 0 : i32
    return %arg0, %c0_i32, %c0_i32_0 : i32, i32, i32
  }
}

</mosaic_0001>

<bundles_post_ra>
// kernel: tpu_custom_call.1
= control target key start
LH: loop header
LB: loop body
LE: loop exit
PB: predicated region body
PF: predicated region fallthrough
CT: control target
= control target key end

     0   :  { %s5395_s0 = inlined_call_operand.vmem [shape: f32[2,8,32], index: 0, kind: input, shape index: {}]   ;;  %s5396_s1 = inlined_call_operand.vmem [shape: f32[2,128,32], index: 1, kind: input, shape index: {}]   ;;  %s5397_s2 = inlined_call_operand.vmem [shape: bf16[32,96], index: 2, kind: input, shape index: {}]   ;;  %s5398_s3 = inlined_call_operand.vmem [shape: f32[1,96], index: 3, kind: input, shape index: {}]   ;;  %s5399_s4 = inlined_call_operand.vmem [shape: bf16[32,32], index: 4, kind: input, shape index: {}]   ;;  %s5400_s5 = inlined_call_operand.vmem [shape: f32[1,32], index: 5, kind: input, shape index: {}]   ;;  %s5401_s6 = inlined_call_operand.vmem [shape: bf16[32,32], index: 6, kind: input, shape index: {}]   ;;  %s5402_s7 = inlined_call_operand.vmem [shape: f32[1,32], index: 7, kind: input, shape index: {}]   ;;  %s5403_s8 = inlined_call_operand.vmem [shape: bf16[32,64], index: 8, kind: input, shape index: {}]   ;;  %s5404_s9 = inlined_call_operand.vmem [shape: f32[1,64], index: 9, kind: input, shape index: {}]   ;;  %s5405_s10 = inlined_call_operand.vmem [shape: bf16[32,32], index: 10, kind: input, shape index: {}]   ;;  %s5406_s11 = inlined_call_operand.vmem [shape: f32[1,32], index: 11, kind: input, shape index: {}]   ;;  %s5407_s12 = inlined_call_operand.vmem [shape: bf16[32,64], index: 12, kind: input, shape index: {}]   ;;  %s5408_s13 = inlined_call_operand.vmem [shape: f32[1,64], index: 13, kind: input, shape index: {}]   ;;  %s5409_s14 = inlined_call_operand.vmem [shape: bf16[64,32], index: 14, kind: input, shape index: {}]   ;;  %s5410_s15 = inlined_call_operand.vmem [shape: f32[1,32], index: 15, kind: input, shape index: {}]   ;;  %s5411_s16 = inlined_call_operand.vmem [shape: f32[1,32], index: 16, kind: input, shape index: {}]   ;;  %s5412_s17 = inlined_call_operand.vmem [shape: f32[1,32], index: 17, kind: input, shape index: {}]   ;;  %s5413_s18 = inlined_call_operand.vmem [shape: f32[1,32], index: 18, kind: input, shape index: {}]   ;;  %s5414_s19 = inlined_call_operand.vmem [shape: f32[1,32], index: 19, kind: input, shape index: {}]   ;;  %s5415_s20 = inlined_call_operand.vmem [shape: f32[1,32], index: 20, kind: input, shape index: {}]   ;;  %s5416_s21 = inlined_call_operand.vmem [shape: f32[1,32], index: 21, kind: input, shape index: {}]   ;;  %s5417_s22 = inlined_call_operand.hbm [shape: f32[2,8,32], index: 22, kind: output, shape index: {0}]   ;;  %s5418_s23 = inlined_call_operand.hbm [shape: f32[2,8,128], index: 23, kind: output, shape index: {1}]  }
   0x1   :  { %5434 = sst [smem:[#allocation8_spill]] %s5395_s0 }
   0x2   :  { %5435 = sst [smem:[#allocation9_spill]] %s5396_s1 }
   0x3   :  { %5436 = sst [smem:[#allocation10_spill]] %s5397_s2 }
   0x4   :  { %5437 = sst [smem:[#allocation11_spill]] %s5398_s3 }
   0x5   :  { %5438 = sst [smem:[#allocation12_spill]] %s5399_s4 }
   0x6   :  { %5439 = sst [smem:[#allocation13_spill]] %s5400_s5 }
   0x7   :  { %5440 = sst [smem:[#allocation14_spill]] %s5401_s6 }
   0x8   :  { %5441 = sst [smem:[#allocation15_spill]] %s5402_s7 }
   0x9   :  { %29 = vsyncpa [#allocation3], 0  ;;  %s5442_s24 = sld [smem:[#allocation10_spill]]  ;;  %v4180_v1 = vmov 0.0   ;;  %vm4181_vm0 = vmmov 0   ;;  %vm138_vm1 = vcmask 261120  }
   0xa   :  { %3490 = vmatprep.subr.bf16.mxu1 %v4180_v1  ;;  %3504 = vmatprep.subr.bf16.mxu0 %v4180_v1  ;;  %s5443_s2 = sld [smem:[#allocation8_spill]] }
   0xb   :  { %3494 = vmatprep.mubr.msk.bf16.mxu1 %vm4181_vm0, %v4180_v1  ;;  %3506 = vmatprep.mubr.msk.bf16.mxu0 %vm4181_vm0, %v4180_v1 }
   0xf   :  { %v4044_v0 = vld [vmem:[%s5442_s24 + $0x8] sm:$0xff]   ;;  %v4045_v2 = vld [vmem:[%s5442_s24] sm:$0xff]  }
  0x10   :  { %3491 = vmatpush3.bf16.msra.mxu1 %v4044_v0  ;;  %v4333_v3 = vld [vmem:[%s5443_s2] sm:$0xff]  ;;  %v4338_v4 = vld [vmem:[%s5443_s2 + $0x8] sm:$0xff] }
  0x11   :  { %3492 = vmatprep.subr.bf16.mxu1 %v4180_v1  ;;  %v114_v5 = vpack.c.bf16 %v4338_v4, %v4333_v3 }
  0x14   :  { %3493 = vmatpush3.bf16.msra.mxu1 %v4045_v2 }
  0x15   :  { %3498 = vmatprep.subr.bf16.mxu1 %v4180_v1 }
  0x17   :  { %3495 = vmatmul.mubr.msk.bf16.vlgmr.msra.gmra.mxu1 %vm138_vm1, %v114_v5 }
  0x18   :  { %3500 = vmatprep.mubr.msk.bf16.mxu1 %vm4181_vm0, %v4180_v1 }
  0x19   :  { %30 = vsyncpa [#allocation5], 0  ;;  %s5444_s29 = sld [smem:[#allocation11_spill]]  ;;  %s4182_s3 = smov 96   ;;  %vm191_vm2 = vcmask 64512   ;;  %vm315_vm3 = vcmask 1043456  }
  0x1a   :  { %s4183_s0 = smov 64   ;;  %s4184_s4 = smov 88   ;;  %vm1093_vm4 = vcmask 130048   ;;  %vm1096_vm5 = vcmask 195584   ;;  %vm3066_vm7 = vcmask 523264  }
  0x1b   :  { %s4185_s30 = smov 120   ;;  %s4186_s24 = smov 56  }
  0x1c   :  { %s5432_s25 = smov 80   ;;  %s4188_s5 = smov 112  }
  0x1d   :  { %s4189_s1 = smov 48   ;;  %s5428_s26 = smov 72  }
  0x1e   :  { %s5430_s2 = smov 104   ;;  %s4192_s6 = smov 40  }
  0x1f   :  { %v3193_v6 = vld [vmem:[%s5444_s29] ss:$0 sm:$0xff]  ;;  %s5426_s27 = smov 8   ;;  %s5425_s7 = smov 16  }
  0xd7   :  { %v176_v7 = vpop.f32.mrf.mxu1 }
  0xd8   :  { %v177_v8 = vadd.f32 %v3193_v6, %v176_v7 }
  0xd9   :  { %v3496_v9 = vpop.f32.mrf.mxu1 }
  0xda   :  { %v4352_v10 = vpack.c.bf16 %v177_v8, %v177_v8 }
  0xdb   :  { %v179_v11 = vpop.f32.mrf.mxu1 }
  0xdc   :  { %v180_v12 = vadd.f32 %v3193_v6, %v179_v11  ;;  %189 = vrot.lane.b32.xlu0 %v4352_v10, %s4182_s3 }
  0xdd   :  { %v3497_v13 = vpop.f32.mrf.mxu1 }
  0xde   :  { %v4356_v14 = vpack.c.bf16 %v180_v12, %v180_v12 }
  0xe0   :  { %238 = vrot.lane.b32.xlu0 %v4356_v14, %s4182_s3 }
 0x14e   :  { %v190_v15 = vpop.permute.xlu0 %189 }
 0x14f   :  { %v196_v16 = vsel %vm191_vm2, %v190_v15, 0 }
 0x150   :  { %3499 = vmatpush3.bf16.xpose.msra.mxu1 %v196_v16 }
 0x151   :  { %3510 = vmatprep.subr.bf16.mxu1 %v4180_v1 }
 0x152   :  { %v239_v17 = vpop.permute.xlu0 %238 }
 0x153   :  { %v244_v18 = vsel %vm191_vm2, %v239_v17, 0 }
 0x154   :  { %3505 = vmatpush3.bf16.xpose.msra.mxu0 %v244_v18 }
 0x155   :  { %3516 = vmatprep.subr.bf16.mxu0 %v4180_v1 }
 0x157   :  { %3501 = vmatmul.mubr.msk.bf16.vlgmr.msra.gmra.mxu1 %vm191_vm2, %v4352_v10 }
 0x158   :  { %3512 = vmatprep.mubr.msk.bf16.mxu1 %vm4181_vm0, %v4180_v1 }
 0x15b   :  { %3507 = vmatmul.mubr.msk.bf16.vlgmr.msra.gmra.mxu0 %vm191_vm2, %v4356_v14 }
 0x15c   :  { %3518 = vmatprep.mubr.msk.bf16.mxu0 %vm4181_vm0, %v4180_v1 }
 0x217   :  { %v232_v19 = vpop.f32.mrf.mxu1 }
 0x218   :  { %v286_v20 = vsel %vm191_vm2, %v232_v19, -inf }
 0x219   :  { %287 = vmax.xlane.f32.xlu1 %v286_v20  ;;  %v3502_v21 = vpop.f32.mrf.mxu1 }
 0x21b   :  { %v235_v22 = vpop.f32.mrf.mxu1  ;;  %v280_v23 = vpop.f32.mrf.mxu0 }
 0x21c   :  { %v289_v24 = vsel %vm191_vm2, %v280_v23, -inf }
 0x21d   :  { %v3508_v25 = vpop.f32.mrf.mxu0  ;;  %290 = vmax.xlane.f32.xlu1 %v289_v24  ;;  %v3503_v26 = vpop.f32.mrf.mxu1 }
 0x21f   :  { %v283_v27 = vpop.f32.mrf.mxu0 }
 0x221   :  { %v3509_v28 = vpop.f32.mrf.mxu0 }
 0x22e   :  { %310 = vrot.lane.b32.xlu1 %v4352_v10, %s4183_s0 }
 0x232   :  { %359 = vrot.lane.b32.xlu1 %v4356_v14, %s4183_s0  ;;  %s5445_s0 = sld [smem:[#allocation12_spill]] }
 0x236   :  { %409 = vrot.lane.b32.xlu1 %v4352_v10, %s4184_s4 }
 0x2a2   :  { %v288_v29 = vpop.xlane.xlu1 %287 }
 0x2a3   :  { %v292_v30 = vsub.f32 %v232_v19, %v288_v29 }
 0x2a5   :  { %v294_v31 = vmul.f32 1.442695, %v292_v30 }
 0x2a6   :  { %v291_v32 = vpop.xlane.xlu1 %290 }
 0x2a7   :  { %4060 = vpow2.f32 %v294_v31  ;;  %v293_v33 = vsub.f32 %v280_v23, %v291_v32 }
 0x2a9   :  { %v296_v34 = vmul.f32 1.442695, %v293_v33 }
 0x2aa   :  { %v311_v35 = vpop.permute.xlu1 %310 }
 0x2ab   :  { %4062 = vpow2.f32 %v296_v34  ;;  %v317_v36 = vsel %vm315_vm3, %v311_v35, 0 }
 0x2ac   :  { %3511 = vmatpush3.bf16.msra.mxu1 %v317_v36 }
 0x2ad   :  { %3522 = vmatprep.subr.bf16.mxu1 %v4180_v1 }
 0x2ae   :  { %v360_v37 = vpop.permute.xlu1 %359 }
 0x2af   :  { %v365_v38 = vsel %vm315_vm3, %v360_v37, 0 }
 0x2b0   :  { %3517 = vmatpush3.bf16.msra.mxu0 %v365_v38 }
 0x2b1   :  { %3528 = vmatprep.subr.bf16.mxu0 %v4180_v1 }
 0x2b2   :  { %v410_v43 = vpop.permute.xlu1 %409 }
 0x2b3   :  { %v415_v50 = vsel %vm191_vm2, %v410_v43, 0 }
 0x2b4   :  { %v4061_v39 = vpop.eup %4060 }
 0x2b5   :  { %v298_v40 = vsel %vm191_vm2, %v4061_v39, 0.0 }
 0x2b6   :  { %299 = vadd.xlane.f32.xlu0 %v298_v40 }
 0x2b8   :  { %v4063_v41 = vpop.eup %4062 }
 0x2b9   :  { %v301_v42 = vsel %vm191_vm2, %v4063_v41, 0.0 }
 0x2ba   :  { %302 = vadd.xlane.f32.xlu1 %v301_v42 }
 0x2cb   :  { %459 = vrot.lane.b32.xlu1 %v4356_v14, %s4184_s4 }
 0x2cc   :  { %407 = vrot.lane.b32.xlu0 %v4352_v10, %s4185_s30 }
 0x2cf   :  { %457 = vrot.lane.b32.xlu1 %v4356_v14, %s4185_s30 }
 0x33f   :  { %v300_v44 = vpop.xlane.xlu0 %299 }
 0x340   :  { %4064 = vrcp.f32 %v300_v44 }
 0x343   :  { %v303_v45 = vpop.xlane.xlu1 %302  ;;  %v408_v55 = vpop.permute.xlu0 %407 }
 0x344   :  { %4066 = vrcp.f32 %v303_v45 }
 0x347   :  { %v460_v52 = vpop.permute.xlu1 %459 }
 0x348   :  { %v465_v54 = vsel %vm191_vm2, %v460_v52, 0 }
 0x34b   :  { %v458_v56 = vpop.permute.xlu1 %457 }
 0x34d   :  { %v4065_v46 = vpop.eup %4064 }
 0x34e   :  { %v306_v47 = vmul.f32 %v4065_v46, %v4061_v39 }
 0x350   :  { %v308_v48 = vpack.c.bf16 %v306_v47, %v306_v47 }
 0x351   :  { %v4067_v49 = vpop.eup %4066 }
 0x352   :  { %3513 = vmatmul.mubr.msk.bf16.vlgmr.msra.gmra.mxu1 %vm191_vm2, %v308_v48  ;;  %v307_v51 = vmul.f32 %v4067_v49, %v4063_v41 }
 0x353   :  { %3523 = vmatpush3.bf16.xpose.msra.mxu1 %v415_v50  ;;  %3524 = vmatprep.mubr.msk.bf16.mxu1 %vm4181_vm0, %v4180_v1 }
 0x354   :  { %v309_v53 = vpack.c.bf16 %v307_v51, %v307_v51  ;;  %3534 = vmatprep.subr.bf16.mxu1 %v4180_v1 }
 0x356   :  { %3519 = vmatmul.mubr.msk.bf16.vlgmr.msra.gmra.mxu0 %vm191_vm2, %v309_v53 }
 0x357   :  { %3529 = vmatpush3.bf16.xpose.msra.mxu0 %v465_v54  ;;  %3530 = vmatprep.mubr.msk.bf16.mxu0 %vm4181_vm0, %v4180_v1 }
 0x358   :  { %3540 = vmatprep.subr.bf16.mxu0 %v4180_v1 }
 0x35a   :  { %3525 = vmatmul.mubr.msk.bf16.vlgmr.msra.gmra.mxu1 %vm191_vm2, %v408_v55 }
 0x35b   :  { %3536 = vmatprep.mubr.msk.bf16.mxu1 %vm4181_vm0, %v4180_v1 }
 0x35e   :  { %3531 = vmatmul.mubr.msk.bf16.vlgmr.msra.gmra.mxu0 %vm191_vm2, %v458_v56 }
 0x35f   :  { %3542 = vmatprep.mubr.msk.bf16.mxu0 %vm4181_vm0, %v4180_v1 }
 0x412   :  { %v4406_v57 = vpop.f32.mrf.mxu1 }
 0x414   :  { %v3514_v58 = vpop.f32.mrf.mxu1 }
 0x416   :  { %v356_v59 = vpop.f32.mrf.mxu1  ;;  %v4408_v60 = vpop.f32.mrf.mxu0 }
 0x418   :  { %v3515_v61 = vpop.f32.mrf.mxu1  ;;  %v3520_v62 = vpop.f32.mrf.mxu0 }
 0x41a   :  { %v404_v63 = vpop.f32.mrf.mxu0  ;;  %v451_v0 = vpop.f32.mrf.mxu1 }
 0x41b   :  { %v507_v2 = vsel %vm191_vm2, %v451_v0, -inf }
 0x41c   :  { %v3521_v5 = vpop.f32.mrf.mxu0  ;;  %508 = vmax.xlane.f32.xlu1 %v507_v2  ;;  %v3526_v6 = vpop.f32.mrf.mxu1 }
 0x41e   :  { %v454_v7 = vpop.f32.mrf.mxu1  ;;  %v501_v8 = vpop.f32.mrf.mxu0 }
 0x41f   :  { %v510_v9 = vsel %vm191_vm2, %v501_v8, -inf }
 0x420   :  { %511 = vmax.xlane.f32.xlu0 %v510_v9  ;;  %v3527_v11 = vpop.f32.mrf.mxu1  ;;  %v3532_v12 = vpop.f32.mrf.mxu0 }
 0x422   :  { %v504_v13 = vpop.f32.mrf.mxu0 }
 0x424   :  { %v3533_v15 = vpop.f32.mrf.mxu0 }
 0x42d   :  { %531 = vrot.lane.b32.xlu1 %v4352_v10, %s4186_s24 }
 0x431   :  { %629 = vrot.lane.b32.xlu1 %v4352_v10, %s5432_s25 }
 0x436   :  { %579 = vrot.lane.b32.xlu0 %v4356_v14, %s4186_s24  ;;  %s5448_s24 = sld [smem:[#allocation14_spill]] }
 0x43a   :  { %627 = vrot.lane.b32.xlu0 %v4352_v10, %s4188_s5 }
 0x4a5   :  { %v509_v16 = vpop.xlane.xlu1 %508 }
 0x4a6   :  { %v513_v17 = vsub.f32 %v451_v0, %v509_v16 }
 0x4a8   :  { %v515_v18 = vmul.f32 1.442695, %v513_v17 }
 0x4a9   :  { %v512_v19 = vpop.xlane.xlu0 %511  ;;  %v532_v20 = vpop.permute.xlu1 %531 }
 0x4aa   :  { %4068 = vpow2.f32 %v515_v18  ;;  %v514_v21 = vsub.f32 %v501_v8, %v512_v19  ;;  %v537_v22 = vsel %vm315_vm3, %v532_v20, 0 }
 0x4ab   :  { %3535 = vmatpush3.bf16.msra.mxu1 %v537_v22 }
 0x4ac   :  { %v517_v23 = vmul.f32 1.442695, %v514_v21  ;;  %3546 = vmatprep.subr.bf16.mxu1 %v4180_v1 }
 0x4ad   :  { %v580_v24 = vpop.permute.xlu0 %579  ;;  %v630_v30 = vpop.permute.xlu1 %629 }
 0x4ae   :  { %4070 = vpow2.f32 %v517_v23  ;;  %v585_v25 = vsel %vm315_vm3, %v580_v24, 0  ;;  %v635_v37 = vsel %vm191_vm2, %v630_v30, 0 }
 0x4af   :  { %3541 = vmatpush3.bf16.msra.mxu0 %v585_v25 }
 0x4b0   :  { %3552 = vmatprep.subr.bf16.mxu0 %v4180_v1 }
 0x4b1   :  { %v628_v42 = vpop.permute.xlu0 %627 }
 0x4b7   :  { %v4069_v26 = vpop.eup %4068 }
 0x4b8   :  { %v519_v27 = vsel %vm191_vm2, %v4069_v26, 0.0 }
 0x4b9   :  { %520 = vadd.xlane.f32.xlu1 %v519_v27 }
 0x4bb   :  { %v4071_v28 = vpop.eup %4070 }
 0x4bc   :  { %v522_v29 = vsel %vm191_vm2, %v4071_v28, 0.0 }
 0x4bd   :  { %523 = vadd.xlane.f32.xlu1 %v522_v29 }
 0x4ce   :  { %679 = vrot.lane.b32.xlu1 %v4356_v14, %s5432_s25  ;;  %s5447_s25 = sld [smem:[#allocation13_spill]] }
 0x4d2   :  { %677 = vrot.lane.b32.xlu1 %v4356_v14, %s4188_s5 }
 0x542   :  { %v521_v31 = vpop.xlane.xlu1 %520 }
 0x543   :  { %4072 = vrcp.f32 %v521_v31 }
 0x546   :  { %v524_v32 = vpop.xlane.xlu1 %523 }
 0x547   :  { %4074 = vrcp.f32 %v524_v32 }
 0x54a   :  { %v680_v39 = vpop.permute.xlu1 %679 }
 0x54b   :  { %v685_v41 = vsel %vm191_vm2, %v680_v39, 0 }
 0x54e   :  { %v678_v43 = vpop.permute.xlu1 %677 }
 0x550   :  { %v4073_v33 = vpop.eup %4072 }
 0x551   :  { %v527_v34 = vmul.f32 %v4073_v33, %v4069_v26 }
 0x553   :  { %v529_v35 = vpack.c.bf16 %v527_v34, %v527_v34 }
 0x554   :  { %v4075_v36 = vpop.eup %4074 }
 0x555   :  { %3537 = vmatmul.mubr.msk.bf16.vlgmr.msra.gmra.mxu1 %vm191_vm2, %v529_v35  ;;  %v528_v38 = vmul.f32 %v4075_v36, %v4071_v28 }
 0x556   :  { %3547 = vmatpush3.bf16.xpose.msra.mxu1 %v635_v37  ;;  %3548 = vmatprep.mubr.msk.bf16.mxu1 %vm4181_vm0, %v4180_v1 }
 0x557   :  { %v530_v40 = vpack.c.bf16 %v528_v38, %v528_v38  ;;  %3558 = vmatprep.subr.bf16.mxu1 %v4180_v1 }
 0x559   :  { %3543 = vmatmul.mubr.msk.bf16.vlgmr.msra.gmra.mxu0 %vm191_vm2, %v530_v40 }
 0x55a   :  { %3553 = vmatpush3.bf16.xpose.msra.mxu0 %v685_v41  ;;  %3554 = vmatprep.mubr.msk.bf16.mxu0 %vm4181_vm0, %v4180_v1 }
 0x55b   :  { %3564 = vmatprep.subr.bf16.mxu0 %v4180_v1 }
 0x55d   :  { %3549 = vmatmul.mubr.msk.bf16.vlgmr.msra.gmra.mxu1 %vm191_vm2, %v628_v42 }
 0x55e   :  { %3560 = vmatprep.mubr.msk.bf16.mxu1 %vm4181_vm0, %v4180_v1 }
 0x561   :  { %3555 = vmatmul.mubr.msk.bf16.vlgmr.msra.gmra.mxu0 %vm191_vm2, %v678_v43 }
 0x562   :  { %3566 = vmatprep.mubr.msk.bf16.mxu0 %vm4181_vm0, %v4180_v1 }
 0x615   :  { %v4444_v44 = vpop.f32.mrf.mxu1 }
 0x617   :  { %v3538_v45 = vpop.f32.mrf.mxu1 }
 0x619   :  { %v576_v46 = vpop.f32.mrf.mxu1  ;;  %v4446_v47 = vpop.f32.mrf.mxu0 }
 0x61a   :  { %v4014_v48 = vpack.i.bf16 %v4446_v47, %v4444_v44 }
 0x61b   :  { %v3539_v49 = vpop.f32.mrf.mxu1  ;;  %v3544_v50 = vpop.f32.mrf.mxu0 }
 0x61d   :  { %v624_v51 = vpop.f32.mrf.mxu0  ;;  %v671_v52 = vpop.f32.mrf.mxu1 }
 0x61e   :  { %v727_v53 = vsel %vm191_vm2, %v671_v52, -inf }
 0x61f   :  { %v3545_v54 = vpop.f32.mrf.mxu0  ;;  %728 = vmax.xlane.f32.xlu0 %v727_v53  ;;  %v3550_v55 = vpop.f32.mrf.mxu1 }
 0x621   :  { %v674_v56 = vpop.f32.mrf.mxu1  ;;  %v721_v58 = vpop.f32.mrf.mxu0 }
 0x622   :  { %v730_v59 = vsel %vm191_vm2, %v721_v58, -inf }
 0x623   :  { %731 = vmax.xlane.f32.xlu1 %v730_v59  ;;  %v3551_v61 = vpop.f32.mrf.mxu1  ;;  %v3556_v62 = vpop.f32.mrf.mxu0 }
 0x625   :  { %v724_v63 = vpop.f32.mrf.mxu0 }
 0x627   :  { %v3557_v0 = vpop.f32.mrf.mxu0 }
 0x634   :  { %751 = vrot.lane.b32.xlu1 %v4352_v10, %s4189_s1 }
 0x638   :  { %849 = vrot.lane.b32.xlu1 %v4352_v10, %s5428_s26 }
 0x63c   :  { %899 = vrot.lane.b32.xlu1 %v4356_v14, %s5428_s26  ;;  %s5449_s26 = sld [smem:[#allocation15_spill]] }
 0x640   :  { %897 = vrot.lane.b32.xlu1 %v4356_v14, %s5430_s2 }
 0x6a8   :  { %v729_v2 = vpop.xlane.xlu0 %728 }
 0x6a9   :  { %v733_v5 = vsub.f32 %v671_v52, %v729_v2 }
 0x6ab   :  { %v735_v6 = vmul.f32 1.442695, %v733_v5 }
 0x6ac   :  { %v732_v7 = vpop.xlane.xlu1 %731 }
 0x6ad   :  { %4076 = vpow2.f32 %v735_v6  ;;  %v734_v8 = vsub.f32 %v721_v58, %v732_v7 }
 0x6af   :  { %v737_v9 = vmul.f32 1.442695, %v734_v8 }
 0x6b0   :  { %v752_v11 = vpop.permute.xlu1 %751 }
 0x6b1   :  { %4078 = vpow2.f32 %v737_v9  ;;  %v757_v12 = vsel %vm315_vm3, %v752_v11, 0 }
 0x6b2   :  { %3559 = vmatpush3.bf16.msra.mxu1 %v757_v12 }
 0x6b3   :  { %3570 = vmatprep.subr.bf16.mxu1 %v4180_v1 }
 0x6b4   :  { %v850_v23 = vpop.permute.xlu1 %849 }
 0x6b5   :  { %v855_v27 = vsel %vm191_vm2, %v850_v23, 0 }
 0x6b8   :  { %v900_v29 = vpop.permute.xlu1 %899 }
 0x6b9   :  { %v905_v31 = vsel %vm191_vm2, %v900_v29, 0 }
 0x6ba   :  { %v4077_v13 = vpop.eup %4076 }
 0x6bb   :  { %v739_v15 = vsel %vm191_vm2, %v4077_v13, 0.0 }
 0x6bc   :  { %740 = vadd.xlane.f32.xlu0 %v739_v15  ;;  %v898_v33 = vpop.permute.xlu1 %897 }
 0x6be   :  { %v4079_v16 = vpop.eup %4078 }
 0x6bf   :  { %v742_v17 = vsel %vm191_vm2, %v4079_v16, 0.0 }
 0x6c0   :  { %743 = vadd.xlane.f32.xlu0 %v742_v17  ;;  %v4047_v17 = vld [vmem:[%s5445_s0] sm:$0xff]  }
 0x6d6   :  { %799 = vrot.lane.b32.xlu0 %v4356_v14, %s4189_s1 }
 0x6da   :  { %847 = vrot.lane.b32.xlu0 %v4352_v10, %s5430_s2 }
 0x745   :  { %v741_v18 = vpop.xlane.xlu0 %740 }
 0x746   :  { %4080 = vrcp.f32 %v741_v18 }
 0x749   :  { %v744_v19 = vpop.xlane.xlu0 %743 }
 0x74a   :  { %4082 = vrcp.f32 %v744_v19 }
 0x74d   :  { %v800_v20 = vpop.permute.xlu0 %799 }
 0x74e   :  { %v805_v21 = vsel %vm315_vm3, %v800_v20, 0 }
 0x74f   :  { %3565 = vmatpush3.bf16.msra.mxu0 %v805_v21 }
 0x750   :  { %3576 = vmatprep.subr.bf16.mxu0 %v4180_v1 }
 0x751   :  { %v848_v32 = vpop.permute.xlu0 %847 }
 0x753   :  { %v4081_v22 = vpop.eup %4080 }
 0x754   :  { %v747_v24 = vmul.f32 %v4081_v22, %v4077_v13 }
 0x756   :  { %v749_v25 = vpack.c.bf16 %v747_v24, %v747_v24 }
 0x757   :  { %v4083_v26 = vpop.eup %4082 }
 0x758   :  { %3561 = vmatmul.mubr.msk.bf16.vlgmr.msra.gmra.mxu1 %vm191_vm2, %v749_v25  ;;  %v748_v28 = vmul.f32 %v4083_v26, %v4079_v16  ;;  %v4046_v16 = vld [vmem:[%s5445_s0 + $0x8] sm:$0xff]  }
 0x759   :  { %3571 = vmatpush3.bf16.xpose.msra.mxu1 %v855_v27  ;;  %3572 = vmatprep.mubr.msk.bf16.mxu1 %vm4181_vm0, %v4180_v1 }
 0x75a   :  { %v750_v30 = vpack.c.bf16 %v748_v28, %v748_v28  ;;  %3582 = vmatprep.subr.bf16.mxu1 %v4180_v1 }
 0x75c   :  { %3567 = vmatmul.mubr.msk.bf16.vlgmr.msra.gmra.mxu0 %vm191_vm2, %v750_v30 }
 0x75d   :  { %3577 = vmatpush3.bf16.xpose.msra.mxu0 %v905_v31  ;;  %3578 = vmatprep.mubr.msk.bf16.mxu0 %vm4181_vm0, %v4180_v1 }
 0x75e   :  { %3588 = vmatprep.subr.bf16.mxu0 %v4180_v1 }
 0x760   :  { %3573 = vmatmul.mubr.msk.bf16.vlgmr.msra.gmra.mxu1 %vm191_vm2, %v848_v32 }
 0x761   :  { %3584 = vmatprep.mubr.msk.bf16.mxu1 %vm4181_vm0, %v4180_v1 }
 0x764   :  { %3579 = vmatmul.mubr.msk.bf16.vlgmr.msra.gmra.mxu0 %vm191_vm2, %v898_v33 }
 0x765   :  { %3590 = vmatprep.mubr.msk.bf16.mxu0 %vm4181_vm0, %v4180_v1 }
 0x818   :  { %v793_v34 = vpop.f32.mrf.mxu1 }
 0x81a   :  { %v3562_v35 = vpop.f32.mrf.mxu1 }
 0x81c   :  { %v796_v36 = vpop.f32.mrf.mxu1  ;;  %v841_v37 = vpop.f32.mrf.mxu0 }
 0x81d   :  { %v4019_v55 = vpack.i.bf16 %v841_v37, %v793_v34 }
 0x81e   :  { %v3563_v38 = vpop.f32.mrf.mxu1  ;;  %v3568_v39 = vpop.f32.mrf.mxu0 }
 0x820   :  { %v844_v40 = vpop.f32.mrf.mxu0  ;;  %v891_v41 = vpop.f32.mrf.mxu1 }
 0x821   :  { %v947_v42 = vsel %vm191_vm2, %v891_v41, -inf }
 0x822   :  { %v3569_v43 = vpop.f32.mrf.mxu0  ;;  %948 = vmax.xlane.f32.xlu0 %v947_v42  ;;  %v3574_v45 = vpop.f32.mrf.mxu1 }
 0x824   :  { %v894_v46 = vpop.f32.mrf.mxu1  ;;  %v941_v49 = vpop.f32.mrf.mxu0 }
 0x825   :  { %v950_v50 = vsel %vm191_vm2, %v941_v49, -inf }
 0x826   :  { %951 = vmax.xlane.f32.xlu1 %v950_v50  ;;  %v3575_v51 = vpop.f32.mrf.mxu1  ;;  %v3580_v52 = vpop.f32.mrf.mxu0 }
 0x828   :  { %v944_v53 = vpop.f32.mrf.mxu0 }
 0x82a   :  { %v3581_v54 = vpop.f32.mrf.mxu0 }
 0x837   :  { %971 = vrot.lane.b32.xlu1 %v4352_v10, %s4192_s6 }
 0x83b   :  { %4015 = vrot.lane.b32.xlu1 %v4014_v48, %s5426_s27  ;;  %s5454_s27 = smov 16  }
 0x83f   :  { %4020 = vrot.lane.b32.xlu1 %v4019_v55, %s5425_s7  ;;  %s5446_s7 = sld [smem:[#allocation9_spill]] }
 0x845   :  { %v78_v43 = vld [vmem:[%s5446_s7] sm:$0xff]  ;;  %v79_v45 = vld [vmem:[%s5446_s7 + $0x8] sm:$0xff]  ;;  %v81_v50 = vld [vmem:[%s5446_s7 + $0x18] sm:$0xff] }
 0x846   :  { %v1283_v46 = vpack.c.bf16 %v79_v45, %v78_v43  ;;  %v82_v51 = vld [vmem:[%s5446_s7 + $0x20] sm:$0xff]  ;;  %v83_v52 = vld [vmem:[%s5446_s7 + $0x28] sm:$0xff]  ;;  %v84_v55 = vld [vmem:[%s5446_s7 + $0x30] sm:$0xff] }
 0x847   :  { %v1285_v54 = vpack.c.bf16 %v83_v52, %v82_v51 }
 0x8ab   :  { %v949_v56 = vpop.xlane.xlu0 %948 }
 0x8ac   :  { %v953_v58 = vsub.f32 %v891_v41, %v949_v56  ;;  %v85_v56 = vld [vmem:[%s5446_s7 + $0x38] sm:$0xff] }
 0x8ae   :  { %v955_v59 = vmul.f32 1.442695, %v953_v58  ;;  %v86_v58 = vld [vmem:[%s5446_s7 + $0x40] sm:$0xff] }
 0x8af   :  { %v952_v61 = vpop.xlane.xlu1 %951 }
 0x8b0   :  { %4084 = vpow2.f32 %v955_v59  ;;  %v954_v62 = vsub.f32 %v941_v49, %v952_v61  ;;  %v80_v49 = vld [vmem:[%s5446_s7 + $0x10] sm:$0xff]  ;;  %v87_v59 = vld [vmem:[%s5446_s7 + $0x48] sm:$0xff]  ;;  %v1286_v61 = vpack.c.bf16 %v85_v56, %v84_v55 }
 0x8b1   :  { %v1284_v53 = vpack.c.bf16 %v81_v50, %v80_v49  ;;  %v4050_v55 = vld [vmem:[%s5448_s24 + $0x8] sm:$0xff]  }
 0x8b2   :  { %v957_v63 = vmul.f32 1.442695, %v954_v62  ;;  %v1287_v62 = vpack.c.bf16 %v87_v59, %v86_v58 }
 0x8b3   :  { %v972_v0 = vpop.permute.xlu1 %971 }
 0x8b4   :  { %4086 = vpow2.f32 %v957_v63  ;;  %v977_v10 = vsel %vm315_vm3, %v972_v0, 0  ;;  %v88_v63 = vld [vmem:[%s5446_s7 + $0x50] sm:$0xff]  ;;  %v89_v0 = vld [vmem:[%s5446_s7 + $0x58] sm:$0xff] }
 0x8b5   :  { %3583 = vmatpush3.bf16.msra.mxu1 %v977_v10  ;;  %v90_v10 = vld [vmem:[%s5446_s7 + $0x60] sm:$0xff] }
 0x8b6   :  { %3594 = vmatprep.subr.bf16.mxu1 %v4180_v1 }
 0x8b7   :  { %v4016_v27 = vpop.permute.xlu1 %4015 }
 0x8b8   :  { %v4018_v29 = vunpack.i.h.bf16 %v4016_v27  ;;  %v4017_v30 = vunpack.i.l.bf16 %v4016_v27  ;;  %v101_v27 = vld [vmem:[%s5446_s7 + $0xb8] sm:$0xff] }
 0x8ba   :  { %v1092_v34 = vsel %vm191_vm2, %v4408_v60, %v4018_v29  ;;  %v1091_v35 = vsel %vm191_vm2, %v4406_v57, %v4017_v30  ;;  %v4048_v60 = vld [vmem:[%s5403_s8 + $0x8] sm:$0xff]   ;;  %v4049_v57 = vld [vmem:[%s5403_s8] sm:$0xff]  }
 0x8bb   :  { %v4021_v28 = vpop.permute.xlu1 %4020  ;;  %v102_v29 = vld [vmem:[%s5446_s7 + $0xc0] sm:$0xff]  ;;  %v103_v30 = vld [vmem:[%s5446_s7 + $0xc8] sm:$0xff] }
 0x8bc   :  { %v4023_v31 = vunpack.i.h.bf16 %v4021_v28  ;;  %v4022_v32 = vunpack.i.l.bf16 %v4021_v28 }
 0x8bd   :  { %v4085_v44 = vpop.eup %4084 }
 0x8be   :  { %v959_v47 = vsel %vm191_vm2, %v4085_v44, 0.0  ;;  %v1095_v38 = vsel %vm1093_vm4, %v1092_v34, %v4023_v31  ;;  %v1094_v39 = vsel %vm1093_vm4, %v1091_v35, %v4022_v32  ;;  %v1295_v31 = vpack.c.bf16 %v103_v30, %v102_v29  ;;  %v104_v32 = vld [vmem:[%s5446_s7 + $0xd0] sm:$0xff]  ;;  %v106_v34 = vld [vmem:[%s5446_s7 + $0xe0] sm:$0xff]  ;;  %v107_v35 = vld [vmem:[%s5446_s7 + $0xe8] sm:$0xff] }
 0x8bf   :  { %960 = vadd.xlane.f32.xlu0 %v959_v47  ;;  %v1288_v47 = vpack.c.bf16 %v89_v0, %v88_v63 }
 0x8c1   :  { %v4087_v48 = vpop.eup %4086 }
 0x8c2   :  { %v962_v2 = vsel %vm191_vm2, %v4087_v48, 0.0 }
 0x8c3   :  { %963 = vadd.xlane.f32.xlu0 %v962_v2  ;;  %v92_v2 = vld [vmem:[%s5446_s7 + $0x70] sm:$0xff] }
 0x8d9   :  { %1019 = vrot.lane.b32.xlu0 %v4356_v14, %s4192_s6  ;;  %s5424_s6 = smov 24  }
 0x948   :  { %v961_v5 = vpop.xlane.xlu0 %960 }
 0x949   :  { %4088 = vrcp.f32 %v961_v5  ;;  %v93_v5 = vld [vmem:[%s5446_s7 + $0x78] sm:$0xff] }
 0x94c   :  { %v964_v6 = vpop.xlane.xlu0 %963 }
 0x94d   :  { %4090 = vrcp.f32 %v964_v6  ;;  %v1290_v6 = vpack.c.bf16 %v93_v5, %v92_v2 }
 0x950   :  { %v1020_v7 = vpop.permute.xlu0 %1019 }
 0x951   :  { %v1025_v8 = vsel %vm315_vm3, %v1020_v7, 0  ;;  %v3215_v7 = vld [vmem:[%s5447_s25] ss:$0 sm:$0xff] }
 0x952   :  { %3589 = vmatpush3.bf16.msra.mxu0 %v1025_v8 }
 0x953   :  { %3602 = vmatprep.subr.bf16.mxu0 %v4180_v1 }
 0x956   :  { %v4089_v9 = vpop.eup %4088 }
 0x957   :  { %v967_v11 = vmul.f32 %v4089_v9, %v4085_v44  ;;  %v91_v44 = vld [vmem:[%s5446_s7 + $0x68] sm:$0xff] }
 0x959   :  { %v969_v12 = vpack.c.bf16 %v967_v11, %v967_v11 }
 0x95a   :  { %v4091_v13 = vpop.eup %4090 }
 0x95b   :  { %3585 = vmatmul.mubr.msk.bf16.vlgmr.msra.gmra.mxu1 %vm191_vm2, %v969_v12  ;;  %v968_v15 = vmul.f32 %v4091_v13, %v4087_v48  ;;  %v1289_v48 = vpack.c.bf16 %v91_v44, %v90_v10 }
 0x95c   :  { %3598 = vmatprep.mubr.msk.bf16.mxu1 %vm4181_vm0, %v4180_v1  ;;  %3595 = vmatpush3.bf16.msra.mxu1 %v4046_v16 }
 0x95d   :  { %v970_v14 = vpack.c.bf16 %v968_v15, %v968_v15  ;;  %3596 = vmatprep.subr.bf16.mxu1 %v4180_v1 }
 0x95f   :  { %3591 = vmatmul.mubr.msk.bf16.vlgmr.msra.gmra.mxu0 %vm191_vm2, %v970_v14 }
 0x960   :  { %3606 = vmatprep.mubr.msk.bf16.mxu0 %vm4181_vm0, %v4180_v1  ;;  %3597 = vmatpush3.bf16.msra.mxu1 %v4047_v17 }
 0x961   :  { %3610 = vmatprep.subr.bf16.mxu1 %v4048_v60  ;;  %3603 = vmatpush3.bf16.msra.mxu0 %v4050_v55 }
 0x962   :  { %3604 = vmatprep.subr.bf16.mxu0 %v4180_v1 }
 0xa1b   :  { %v1013_v18 = vpop.f32.mrf.mxu1 }
 0xa1d   :  { %v3586_v19 = vpop.f32.mrf.mxu1 }
 0xa1e   :  { %v94_v19 = vld [vmem:[%s5446_s7 + $0x80] sm:$0xff] }
 0xa1f   :  { %v1016_v20 = vpop.f32.mrf.mxu1  ;;  %v1061_v21 = vpop.f32.mrf.mxu0 }
 0xa20   :  { %v4024_v22 = vpack.i.bf16 %v1061_v21, %v1013_v18  ;;  %v95_v20 = vld [vmem:[%s5446_s7 + $0x88] sm:$0xff]  ;;  %v96_v21 = vld [vmem:[%s5446_s7 + $0x90] sm:$0xff] }
 0xa21   :  { %v3587_v23 = vpop.f32.mrf.mxu1  ;;  %v3592_v24 = vpop.f32.mrf.mxu0 }
 0xa22   :  { %4025 = vrot.lane.b32.xlu0 %v4024_v22, %s5424_s6  ;;  %v98_v23 = vld [vmem:[%s5446_s7 + $0xa0] sm:$0xff]  ;;  %v99_v24 = vld [vmem:[%s5446_s7 + $0xa8] sm:$0xff] }
 0xa23   :  { %v1064_v25 = vpop.f32.mrf.mxu0 }
 0xa24   :  { %v100_v25 = vld [vmem:[%s5446_s7 + $0xb0] sm:$0xff] }
 0xa25   :  { %v3593_v26 = vpop.f32.mrf.mxu0  ;;  %v1294_v28 = vpack.c.bf16 %v101_v27, %v100_v25 }
 0xa26   :  { %v1293_v26 = vpack.c.bf16 %v99_v24, %v98_v23 }
 0xa94   :  { %v4026_v33 = vpop.permute.xlu0 %4025 }
 0xa95   :  { %v4028_v36 = vunpack.i.h.bf16 %v4026_v33  ;;  %v4027_v37 = vunpack.i.l.bf16 %v4026_v33  ;;  %v105_v33 = vld [vmem:[%s5446_s7 + $0xd8] sm:$0xff] }
 0xa97   :  { %v1098_v40 = vsel %vm1096_vm5, %v1095_v38, %v4028_v36  ;;  %v1097_v41 = vsel %vm1096_vm5, %v1094_v39, %v4027_v37  ;;  %v1296_v36 = vpack.c.bf16 %v105_v33, %v104_v32  ;;  %v1297_v37 = vpack.c.bf16 %v107_v35, %v106_v34  ;;  %v108_v38 = vld [vmem:[%s5446_s7 + $0xf0] sm:$0xff]  ;;  %v109_v39 = vld [vmem:[%s5446_s7 + $0xf8] sm:$0xff] }
 0xa98   :  { %v1099_v42 = vpack.c.bf16 %v1098_v40, %v1097_v41  ;;  %v1298_v40 = vpack.c.bf16 %v109_v39, %v108_v38 }
 0xa9a   :  { %3599 = vmatmul.mubr.msk.bf16.vlgmr.msra.gmra.mxu1 %vm138_vm1, %v1099_v42 }
 0xa9b   :  { %3611 = vmatpush3.bf16.msra.mxu1 %v4048_v60  ;;  %3614 = vmatprep.mubr.msk.bf16.mxu1 %vm138_vm1, %v1283_v46 }
 0xa9c   :  { %3612 = vmatprep.subr.bf16.mxu1 %v4049_v57 }
 0xa9f   :  { %3613 = vmatpush3.bf16.msra.mxu1 %v4049_v57 }
 0xaa0   :  { %3666 = vmatprep.subr.bf16.mxu1 %v4180_v1 }
 0xaa2   :  { %3615 = vmatmul.mubr.msk.bf16.vlgmr.msra.gmra.mxu1 %vm138_vm1, %v1284_v53 }
 0xaa3   :  { %3618 = vmatprep.mubr.msk.bf16.mxu1 %vm138_vm1, %v1285_v54  ;;  %v4663_v54 = vld [vmem:[%s5404_s9] ss:$0 sm:$0xff] }
 0xaaa   :  { %3619 = vmatmul.mubr.msk.bf16.gmra.mxu1 %vm138_vm1, %v1286_v61 }
 0xaab   :  { %3622 = vmatprep.mubr.msk.bf16.mxu1 %vm138_vm1, %v1287_v62  ;;  %v4051_v62 = vld [vmem:[%s5448_s24] sm:$0xff]   ;;  %s5455_s24 = smov 24  }
 0xaac   :  { %3605 = vmatpush3.bf16.msra.mxu0 %v4051_v62 }
 0xaad   :  { %3646 = vmatprep.subr.bf16.mxu0 %v4180_v1 }
 0xab2   :  { %3623 = vmatmul.mubr.msk.bf16.gmra.mxu1 %vm138_vm1, %v1288_v47 }
 0xab3   :  { %3626 = vmatprep.mubr.msk.bf16.mxu1 %vm138_vm1, %v1289_v48 }
 0xaba   :  { %3627 = vmatmul.mubr.msk.bf16.gmra.mxu1 %vm138_vm1, %v1290_v6 }
 0xb5a   :  { %v1160_v8 = vpop.f32.mrf.mxu1 }
 0xb5b   :  { %v1161_v9 = vadd.f32 %v3215_v7, %v1160_v8 }
 0xb5c   :  { %v3600_v11 = vpop.f32.mrf.mxu1 }
 0xb5d   :  { %v1167_v12 = vadd.f32 %v1161_v9, %v4333_v3  ;;  %v1291_v3 = vpack.c.bf16 %v95_v20, %v94_v19 }
 0xb5e   :  { %v1163_v13 = vpop.f32.mrf.mxu1 }
 0xb5f   :  { %v1164_v15 = vadd.f32 %v3215_v7, %v1163_v13  ;;  %v1169_v14 = vsel %vm138_vm1, %v1167_v12, 0.0  ;;  %3630 = vmatprep.mubr.msk.bf16.mxu1 %vm138_vm1, %v1291_v3 }
 0xb60   :  { %1170 = vadd.xlane.f32.xlu1 %v1169_v14  ;;  %v3601_v16 = vpop.f32.mrf.mxu1 }
 0xb61   :  { %v1168_v17 = vadd.f32 %v1164_v15, %v4338_v4  ;;  %v97_v4 = vld [vmem:[%s5446_s7 + $0x98] sm:$0xff] }
 0xb62   :  { %v1292_v22 = vpack.c.bf16 %v97_v4, %v96_v21  ;;  %v3616_v52 = vpop.f32.mrf.mxu1 }
 0xb63   :  { %v1172_v18 = vsel %vm138_vm1, %v1168_v17, 0.0  ;;  %v1413_v56 = vadd.f32 %v3616_v52, %v4663_v54 }
 0xb64   :  { %1173 = vadd.xlane.f32.xlu0 %v1172_v18  ;;  %3631 = vmatmul.mubr.msk.bf16.gmra.mxu1 %vm138_vm1, %v1292_v22  ;;  %v1404_v53 = vpop.f32.mrf.mxu1 }
 0xb65   :  { %3634 = vmatprep.mubr.msk.bf16.mxu1 %vm138_vm1, %v1293_v26  ;;  %v1405_v58 = vadd.f32 %v4663_v54, %v1404_v53 }
 0xb66   :  { %v3617_v59 = vpop.f32.mrf.mxu1 }
 0xb67   :  { %v1416_v61 = vadd.f32 %v3617_v59, %v4663_v54 }
 0xb68   :  { %v1407_v63 = vpop.f32.mrf.mxu1 }
 0xb69   :  { %v4675_v0 = vpack.c.bf16 %v1416_v61, %v1413_v56  ;;  %v1408_v10 = vadd.f32 %v4663_v54, %v1407_v63 }
 0xb6a   :  { %v3620_v44 = vpop.f32.mrf.mxu1 }
 0xb6b   :  { %v4678_v47 = vpack.c.bf16 %v1408_v10, %v1405_v58  ;;  %v1429_v48 = vadd.f32 %v3620_v44, %v4663_v54 }
 0xb6c   :  { %3635 = vmatmul.mubr.msk.bf16.gmra.mxu1 %vm138_vm1, %v1294_v28  ;;  %v1420_v2 = vpop.f32.mrf.mxu1 }
 0xb6d   :  { %3638 = vmatprep.mubr.msk.bf16.mxu1 %vm138_vm1, %v1295_v31  ;;  %v1421_v5 = vadd.f32 %v4663_v54, %v1420_v2 }
 0xb6e   :  { %v3621_v6 = vpop.f32.mrf.mxu1 }
 0xb6f   :  { %v1432_v7 = vadd.f32 %v3621_v6, %v4663_v54 }
 0xb70   :  { %v1423_v8 = vpop.f32.mrf.mxu1 }
 0xb71   :  { %v4684_v9 = vpack.c.bf16 %v1432_v7, %v1429_v48  ;;  %v1424_v11 = vadd.f32 %v4663_v54, %v1423_v8 }
 0xb73   :  { %v4687_v13 = vpack.c.bf16 %v1424_v11, %v1421_v5 }
 0xb74   :  { %3639 = vmatmul.mubr.msk.bf16.gmra.mxu1 %vm138_vm1, %v1296_v36 }
 0xb75   :  { %3642 = vmatprep.mubr.msk.bf16.mxu1 %vm138_vm1, %v1297_v37 }
 0xb7c   :  { %3643 = vmatmul.mubr.msk.bf16.gmra.mxu1 %vm138_vm1, %v1298_v40 }
 0xb7d   :  { %3682 = vmatprep.mubr.msk.bf16.mxu1 %vm4181_vm0, %v4180_v1 }
 0xbe9   :  { %v1171_v41 = vpop.xlane.xlu1 %1170 }
 0xbea   :  { %v1176_v42 = vmul.f32 0.03125, %v1171_v41 }
 0xbec   :  { %v4650_v60 = vsub.f32 %v1167_v12, %v1176_v42  ;;  %v3624_v12 = vpop.f32.mrf.mxu1 }
 0xbed   :  { %v1174_v57 = vpop.xlane.xlu0 %1173  ;;  %v1445_v15 = vadd.f32 %v3624_v12, %v4663_v54 }
 0xbee   :  { %v1177_v43 = vmul.f32 0.03125, %v1174_v57  ;;  %v1180_v45 = vmul.f32 %v4650_v60, %v4650_v60  ;;  %v1436_v14 = vpop.f32.mrf.mxu1 }
 0xbef   :  { %v1437_v16 = vadd.f32 %v4663_v54, %v1436_v14 }
 0xbf0   :  { %v4654_v46 = vsub.f32 %v1168_v17, %v1177_v43  ;;  %v1182_v49 = vsel %vm138_vm1, %v1180_v45, 0.0  ;;  %v3625_v17 = vpop.f32.mrf.mxu1 }
 0xbf1   :  { %1183 = vadd.xlane.f32.xlu0 %v1182_v49  ;;  %v1448_v18 = vadd.f32 %v3625_v17, %v4663_v54 }
 0xbf2   :  { %v1181_v50 = vmul.f32 %v4654_v46, %v4654_v46  ;;  %v1439_v19 = vpop.f32.mrf.mxu1 }
 0xbf3   :  { %v4692_v20 = vpack.c.bf16 %v1448_v18, %v1445_v15  ;;  %v1440_v3 = vadd.f32 %v4663_v54, %v1439_v19 }
 0xbf4   :  { %v1185_v51 = vsel %vm138_vm1, %v1181_v50, 0.0  ;;  %v3628_v21 = vpop.f32.mrf.mxu1 }
 0xbf5   :  { %1186 = vadd.xlane.f32.xlu1 %v1185_v51  ;;  %v4695_v4 = vpack.c.bf16 %v1440_v3, %v1437_v16  ;;  %v1461_v22 = vadd.f32 %v3628_v21, %v4663_v54 }
 0xbf6   :  { %v1452_v23 = vpop.f32.mrf.mxu1 }
 0xbf7   :  { %v1453_v24 = vadd.f32 %v4663_v54, %v1452_v23 }
 0xbf8   :  { %v3629_v25 = vpop.f32.mrf.mxu1 }
 0xbf9   :  { %v1464_v26 = vadd.f32 %v3629_v25, %v4663_v54 }
 0xbfa   :  { %v1455_v27 = vpop.f32.mrf.mxu1 }
 0xbfb   :  { %v4700_v28 = vpack.c.bf16 %v1464_v26, %v1461_v22  ;;  %v1456_v29 = vadd.f32 %v4663_v54, %v1455_v27 }
 0xbfd   :  { %v4703_v31 = vpack.c.bf16 %v1456_v29, %v1453_v24 }
 0xc24   :  { %v3632_v30 = vpop.f32.mrf.mxu1 }
 0xc25   :  { %v1477_v33 = vadd.f32 %v3632_v30, %v4663_v54 }
 0xc26   :  { %v1468_v32 = vpop.f32.mrf.mxu1 }
 0xc27   :  { %v1469_v35 = vadd.f32 %v4663_v54, %v1468_v32 }
 0xc28   :  { %v3633_v34 = vpop.f32.mrf.mxu1 }
 0xc29   :  { %v1480_v36 = vadd.f32 %v3633_v34, %v4663_v54  ;;  %v3219_v34 = vld [vmem:[%s5411_s16] ss:$0 sm:$0xff] }
 0xc2a   :  { %v1471_v37 = vpop.f32.mrf.mxu1 }
 0xc2b   :  { %v4708_v38 = vpack.c.bf16 %v1480_v36, %v1477_v33  ;;  %v1472_v39 = vadd.f32 %v4663_v54, %v1471_v37 }
 0xc2c   :  { %v3636_v40 = vpop.f32.mrf.mxu1 }
 0xc2d   :  { %v4711_v41 = vpack.c.bf16 %v1472_v39, %v1469_v35  ;;  %v1493_v15 = vadd.f32 %v3636_v40, %v4663_v54  ;;  %v3220_v39 = vld [vmem:[%s5412_s17] ss:$0 sm:$0xff] }
 0xc2e   :  { %v1484_v42 = vpop.f32.mrf.mxu1 }
 0xc2f   :  { %v1485_v18 = vadd.f32 %v4663_v54, %v1484_v42  ;;  %v1623_v30 = vsel %vm191_vm2, %v4711_v41, 0 }
 0xc30   :  { %v3637_v57 = vpop.f32.mrf.mxu1 }
 0xc31   :  { %v1496_v14 = vadd.f32 %v3637_v57, %v4663_v54 }
 0xc32   :  { %v1487_v43 = vpop.f32.mrf.mxu1 }
 0xc33   :  { %v4742_v17 = vpack.c.bf16 %v1496_v14, %v1493_v15  ;;  %v1488_v19 = vadd.f32 %v4663_v54, %v1487_v43  ;;  %v1577_v43 = vsel %vm191_vm2, %v4700_v28, 0 }
 0xc34   :  { %v3640_v45 = vpop.f32.mrf.mxu1 }
 0xc35   :  { %v1509_v48 = vadd.f32 %v3640_v45, %v4663_v54  ;;  %v1632_v3 = vsel %vm191_vm2, %v4742_v17, 0  ;;  %v4749_v21 = vpack.c.bf16 %v1488_v19, %v1485_v18  ;;  %v1571_v45 = vsel %vm191_vm2, %v4692_v20, 0 }
 0xc36   :  { %v1500_v49 = vpop.f32.mrf.mxu1 }
 0xc37   :  { %v1501_v7 = vadd.f32 %v4663_v54, %v1500_v49  ;;  %v1629_v22 = vsel %vm191_vm2, %v4749_v21, 0  ;;  %v1568_v49 = vsel %vm191_vm2, %v4695_v4, 0 }
 0xc38   :  { %v3641_v50 = vpop.f32.mrf.mxu1 }
 0xc39   :  { %v1512_v2 = vadd.f32 %v3641_v50, %v4663_v54  ;;  %v1565_v50 = vsel %vm191_vm2, %v4684_v9, 0 }
 0xc3a   :  { %v1503_v51 = vpop.f32.mrf.mxu1 }
 0xc3b   :  { %v4728_v6 = vpack.c.bf16 %v1512_v2, %v1509_v48  ;;  %v1504_v8 = vadd.f32 %v4663_v54, %v1503_v51  ;;  %v1562_v51 = vsel %vm191_vm2, %v4687_v13, 0 }
 0xc3c   :  { %v3644_v52 = vpop.f32.mrf.mxu1 }
 0xc3d   :  { %v1525_v55 = vadd.f32 %v3644_v52, %v4663_v54  ;;  %v1638_v11 = vsel %vm191_vm2, %v4728_v6, 0  ;;  %v4735_v12 = vpack.c.bf16 %v1504_v8, %v1501_v7  ;;  %v1559_v52 = vsel %vm191_vm2, %v4675_v0, 0 }
 0xc3e   :  { %v1516_v53 = vpop.f32.mrf.mxu1  ;;  %v4196_v8 = vmov -1e+30  }
 0xc3f   :  { %v1517_v61 = vadd.f32 %v4663_v54, %v1516_v53  ;;  %v1635_v16 = vsel %vm191_vm2, %v4735_v12, 0  ;;  %v1556_v53 = vsel %vm191_vm2, %v4678_v47, 0 }
 0xc40   :  { %v3645_v56 = vpop.f32.mrf.mxu1 }
 0xc41   :  { %v1528_v58 = vadd.f32 %v3645_v56, %v4663_v54 }
 0xc42   :  { %v1519_v59 = vpop.f32.mrf.mxu1 }
 0xc43   :  { %v4716_v62 = vpack.c.bf16 %v1528_v58, %v1525_v55  ;;  %v1520_v63 = vadd.f32 %v4663_v54, %v1519_v59  ;;  %v1626_v54 = vsel %vm191_vm2, %v4708_v38, 0  ;;  %v3221_v55 = vld [vmem:[%s5449_s26] ss:$0 sm:$0xff] }
 0xc45   :  { %v1644_v10 = vsel %vm191_vm2, %v4716_v62, 0  ;;  %v4721_v44 = vpack.c.bf16 %v1520_v63, %v1517_v61 }
 0xc46   :  { %3667 = vmatpush3.bf16.xpose.msra.mxu1 %v1644_v10 }
 0xc47   :  { %3668 = vmatprep.subr.bf16.mxu1 %v4180_v1  ;;  %v1641_v5 = vsel %vm191_vm2, %v4721_v44, 0 }
 0xc4e   :  { %3669 = vmatpush3.bf16.xpose.msra.mxu1 %v1641_v5  ;;  %v110_v5 = vlaneseq }
 0xc4f   :  { %3670 = vmatprep.subr.bf16.mxu1 %v4180_v1 }
 0xc50   :  { %v111_v7 = vand.u32 127, %v110_v5 }
 0xc52   :  { %vm112_vm6 = vcmp.lt.s32.totalorder %v111_v7, 16 }
 0xc56   :  { %3671 = vmatpush3.bf16.xpose.msra.mxu1 %v1638_v11  ;;  %v4817_v11 = vsel %vm112_vm6, 0.0, %v4196_v8 }
 0xc57   :  { %3672 = vmatprep.subr.bf16.mxu1 %v4180_v1 }
 0xc5e   :  { %3673 = vmatpush3.bf16.xpose.msra.mxu1 %v1635_v16 }
 0xc5f   :  { %3674 = vmatprep.subr.bf16.mxu1 %v4180_v1 }
 0xc66   :  { %3675 = vmatpush3.bf16.xpose.msra.mxu1 %v1632_v3 }
 0xc67   :  { %3676 = vmatprep.subr.bf16.mxu1 %v4180_v1 }
 0xc6e   :  { %3677 = vmatpush3.bf16.xpose.msra.mxu1 %v1629_v22 }
 0xc6f   :  { %3678 = vmatprep.subr.bf16.mxu1 %v4180_v1 }
 0xc76   :  { %3679 = vmatpush3.bf16.xpose.msra.mxu1 %v1626_v54 }
 0xc77   :  { %3680 = vmatprep.subr.bf16.mxu1 %v4180_v1 }
 0xc7a   :  { %v1184_v23 = vpop.xlane.xlu0 %1183 }
 0xc7b   :  { %v1188_v24 = vmul.f32 0.03125, %v1184_v23 }
 0xc7d   :  { %v1190_v25 = vadd.f32 1e-05, %v1188_v24 }
 0xc7e   :  { %v1187_v26 = vpop.xlane.xlu1 %1186  ;;  %3681 = vmatpush3.bf16.xpose.msra.mxu1 %v1623_v30 }
 0xc7f   :  { %4092 = vrsqrt.f32 %v1190_v25  ;;  %v1189_v27 = vmul.f32 0.03125, %v1187_v26  ;;  %3706 = vmatprep.subr.bf16.mxu1 %v4180_v1 }
 0xc81   :  { %v1191_v29 = vadd.f32 1e-05, %v1189_v27 }
 0xc83   :  { %4094 = vrsqrt.f32 %v1191_v29 }
 0xc8c   :  { %v4093_v32 = vpop.eup %4092 }
 0xc8d   :  { %v1194_v33 = vmul.f32 %v4093_v32, %v4650_v60 }
 0xc8f   :  { %v1203_v37 = vmul.f32 %v3219_v34, %v1194_v33 }
 0xc90   :  { %v4095_v35 = vpop.eup %4094 }
 0xc91   :  { %v1195_v36 = vmul.f32 %v4095_v35, %v4654_v46  ;;  %v4769_v42 = vadd.f32 %v3220_v39, %v1203_v37  ;;  %v1574_v46 = vsel %vm191_vm2, %v4703_v31, 0 }
 0xc93   :  { %v1204_v40 = vmul.f32 %v3219_v34, %v1195_v36 }
 0xc95   :  { %v4771_v57 = vadd.f32 %v3220_v39, %v1204_v40 }
 0xc97   :  { %v1214_v60 = vpack.c.bf16 %v4771_v57, %v4769_v42 }
 0xc99   :  { %3607 = vmatmul.mubr.msk.bf16.vlgmr.msra.gmra.mxu0 %vm138_vm1, %v1214_v60 }
 0xc9a   :  { %3647 = vmatpush3.bf16.xpose.msra.mxu0 %v1577_v43  ;;  %3662 = vmatprep.mubr.msk.bf16.mxu0 %vm4181_vm0, %v4180_v1 }
 0xc9b   :  { %3648 = vmatprep.subr.bf16.mxu0 %v4180_v1 }
 0xca2   :  { %3649 = vmatpush3.bf16.xpose.msra.mxu0 %v1574_v46 }
 0xca3   :  { %3650 = vmatprep.subr.bf16.mxu0 %v4180_v1 }
 0xcaa   :  { %3651 = vmatpush3.bf16.xpose.msra.mxu0 %v1571_v45 }
 0xcab   :  { %3652 = vmatprep.subr.bf16.mxu0 %v4180_v1 }
 0xcb2   :  { %3653 = vmatpush3.bf16.xpose.msra.mxu0 %v1568_v49 }
 0xcb3   :  { %3654 = vmatprep.subr.bf16.mxu0 %v4180_v1 }
 0xcba   :  { %3655 = vmatpush3.bf16.xpose.msra.mxu0 %v1565_v50 }
 0xcbb   :  { %3656 = vmatprep.subr.bf16.mxu0 %v4180_v1 }
 0xcc2   :  { %3657 = vmatpush3.bf16.xpose.msra.mxu0 %v1562_v51 }
 0xcc3   :  { %3658 = vmatprep.subr.bf16.mxu0 %v4180_v1 }
 0xcca   :  { %3659 = vmatpush3.bf16.xpose.msra.mxu0 %v1559_v52 }
 0xccb   :  { %3660 = vmatprep.subr.bf16.mxu0 %v4180_v1 }
 0xcd2   :  { %3661 = vmatpush3.bf16.xpose.msra.mxu0 %v1556_v53 }
 0xcd3   :  { %3686 = vmatprep.subr.bf16.mxu0 %v4180_v1 }
 0xd59   :  { %v1275_v56 = vpop.f32.mrf.mxu0 }
 0xd5a   :  { %v1276_v58 = vadd.f32 %v3221_v55, %v1275_v56 }
 0xd5b   :  { %v3608_v59 = vpop.f32.mrf.mxu0 }
 0xd5c   :  { %v4805_v61 = vpack.c.bf16 %v1276_v58, %v1276_v58 }
 0xd5d   :  { %v1278_v63 = vpop.f32.mrf.mxu0 }
 0xd5e   :  { %v1279_v10 = vadd.f32 %v3221_v55, %v1278_v63  ;;  %3663 = vmatmul.mubr.msk.bf16.vlgmr.msra.gmra.mxu0 %vm191_vm2, %v4805_v61 }
 0xd5f   :  { %v3609_v48 = vpop.f32.mrf.mxu0  ;;  %3702 = vmatprep.mubr.msk.bf16.mxu0 %vm4181_vm0, %v4180_v1 }
 0xd60   :  { %v4811_v2 = vpack.c.bf16 %v1279_v10, %v1279_v10 }
 0xd62   :  { %3683 = vmatmul.mubr.msk.bf16.vlgmr.msra.gmra.mxu1 %vm191_vm2, %v4811_v2 }
 0xd63   :  { %3722 = vmatprep.mubr.msk.bf16.mxu1 %vm4181_vm0, %v4180_v1 }
 0xe1e   :  { %v1613_v15 = vpop.f32.mrf.mxu0 }
 0xe1f   :  { %v1614_v14 = vadd.f32 %v1613_v15, %v4817_v11 }
 0xe20   :  { %v3664_v16 = vpop.f32.mrf.mxu0 }
 0xe21   :  { %1686 = vmax.xlane.f32.xlu0 %v1614_v14 }
 0xe22   :  { %v1616_v18 = vpop.f32.mrf.mxu0  ;;  %v1680_v19 = vpop.f32.mrf.mxu1 }
 0xe23   :  { %v1681_v3 = vadd.f32 %v1680_v19, %v4817_v11 }
 0xe24   :  { %v3665_v22 = vpop.f32.mrf.mxu0  ;;  %v3684_v23 = vpop.f32.mrf.mxu1 }
 0xe25   :  { %1688 = vmax.xlane.f32.xlu1 %v1681_v3 }
 0xe26   :  { %v1683_v24 = vpop.f32.mrf.mxu1 }
 0xe28   :  { %v3685_v25 = vpop.f32.mrf.mxu1 }
 0xe36   :  { %1800 = vrot.lane.b32.xlu1 %v4716_v62, %s4182_s3 }
 0xe37   :  { %1728 = vrot.lane.b32.xlu0 %v4700_v28, %s4182_s3 }
 0xe3a   :  { %1798 = vrot.lane.b32.xlu1 %v4721_v44, %s4182_s3 }
 0xe3b   :  { %1726 = vrot.lane.b32.xlu0 %v4703_v31, %s4182_s3 }
 0xe3e   :  { %1724 = vrot.lane.b32.xlu1 %v4692_v20, %s4182_s3 }
 0xe3f   :  { %1796 = vrot.lane.b32.xlu0 %v4728_v6, %s4182_s3 }
 0xe42   :  { %1722 = vrot.lane.b32.xlu1 %v4695_v4, %s4182_s3 }
 0xe43   :  { %1794 = vrot.lane.b32.xlu0 %v4735_v12, %s4182_s3 }
 0xe46   :  { %1720 = vrot.lane.b32.xlu1 %v4684_v9, %s4182_s3 }
 0xe47   :  { %1792 = vrot.lane.b32.xlu0 %v4742_v17, %s4182_s3 }
 0xe4a   :  { %1718 = vrot.lane.b32.xlu1 %v4687_v13, %s4182_s3 }
 0xe4b   :  { %1790 = vrot.lane.b32.xlu0 %v4749_v21, %s4182_s3 }
 0xe4e   :  { %1716 = vrot.lane.b32.xlu1 %v4675_v0, %s4182_s3 }
 0xe4f   :  { %1788 = vrot.lane.b32.xlu0 %v4708_v38, %s4182_s3 }
 0xe52   :  { %1714 = vrot.lane.b32.xlu1 %v4678_v47, %s4182_s3 }
 0xe53   :  { %1786 = vrot.lane.b32.xlu0 %v4711_v41, %s4182_s3  ;;  %s5450_s3 = smov 80  }
 0xeaa   :  { %v1687_v54 = vpop.xlane.xlu0 %1686 }
 0xeab   :  { %v1690_v26 = vsub.f32 %v1614_v14, %v1687_v54 }
 0xead   :  { %v1692_v27 = vmul.f32 1.442695, %v1690_v26 }
 0xeae   :  { %v1689_v29 = vpop.xlane.xlu1 %1688  ;;  %v1729_v30 = vpop.permute.xlu0 %1728 }
 0xeaf   :  { %4096 = vpow2.f32 %v1692_v27  ;;  %v1691_v32 = vsub.f32 %v1681_v3, %v1689_v29  ;;  %3687 = vmatpush3.bf16.msra.mxu0 %v1729_v30 }
 0xeb0   :  { %3688 = vmatprep.subr.bf16.mxu0 %v4180_v1 }
 0xeb1   :  { %v1694_v33 = vmul.f32 1.442695, %v1691_v32 }
 0xeb2   :  { %v1801_v34 = vpop.permute.xlu1 %1800  ;;  %v1727_v35 = vpop.permute.xlu0 %1726 }
 0xeb3   :  { %4098 = vpow2.f32 %v1694_v33  ;;  %3689 = vmatpush3.bf16.msra.mxu0 %v1727_v35  ;;  %3707 = vmatpush3.bf16.msra.mxu1 %v1801_v34 }
 0xeb4   :  { %3708 = vmatprep.subr.bf16.mxu1 %v4180_v1  ;;  %3690 = vmatprep.subr.bf16.mxu0 %v4180_v1 }
 0xeb6   :  { %v1799_v36 = vpop.permute.xlu1 %1798  ;;  %v1797_v37 = vpop.permute.xlu0 %1796 }
 0xeb7   :  { %3709 = vmatpush3.bf16.msra.mxu1 %v1799_v36 }
 0xeb8   :  { %3710 = vmatprep.subr.bf16.mxu1 %v4180_v1 }
 0xeba   :  { %v1725_v39 = vpop.permute.xlu1 %1724  ;;  %v1795_v40 = vpop.permute.xlu0 %1794 }
 0xebb   :  { %3691 = vmatpush3.bf16.msra.mxu0 %v1725_v39  ;;  %3711 = vmatpush3.bf16.msra.mxu1 %v1797_v37 }
 0xebc   :  { %v4097_v60 = vpop.eup %4096  ;;  %3692 = vmatprep.subr.bf16.mxu0 %v4180_v1  ;;  %3712 = vmatprep.subr.bf16.mxu1 %v4180_v1 }
 0xebd   :  { %1696 = vadd.xlane.f32.xlu1 %v4097_v60 }
 0xebe   :  { %v1723_v43 = vpop.permute.xlu1 %1722  ;;  %v1793_v46 = vpop.permute.xlu0 %1792 }
 0xebf   :  { %3693 = vmatpush3.bf16.msra.mxu0 %v1723_v43  ;;  %3713 = vmatpush3.bf16.msra.mxu1 %v1795_v40 }
 0xec0   :  { %v4099_v45 = vpop.eup %4098  ;;  %3694 = vmatprep.subr.bf16.mxu0 %v4180_v1  ;;  %3714 = vmatprep.subr.bf16.mxu1 %v4180_v1 }
 0xec1   :  { %1698 = vadd.xlane.f32.xlu0 %v4099_v45 }
 0xec2   :  { %v1721_v49 = vpop.permute.xlu1 %1720  ;;  %v1791_v50 = vpop.permute.xlu0 %1790 }
 0xec3   :  { %3695 = vmatpush3.bf16.msra.mxu0 %v1721_v49  ;;  %3715 = vmatpush3.bf16.msra.mxu1 %v1793_v46 }
 0xec4   :  { %3696 = vmatprep.subr.bf16.mxu0 %v4180_v1  ;;  %3716 = vmatprep.subr.bf16.mxu1 %v4180_v1 }
 0xec6   :  { %v1719_v51 = vpop.permute.xlu1 %1718  ;;  %v1789_v52 = vpop.permute.xlu0 %1788 }
 0xec7   :  { %3697 = vmatpush3.bf16.msra.mxu0 %v1719_v51  ;;  %3717 = vmatpush3.bf16.msra.mxu1 %v1791_v50 }
 0xec8   :  { %3698 = vmatprep.subr.bf16.mxu0 %v4180_v1  ;;  %3718 = vmatprep.subr.bf16.mxu1 %v4180_v1 }
 0xeca   :  { %v1717_v53 = vpop.permute.xlu1 %1716  ;;  %v1787_v55 = vpop.permute.xlu0 %1786 }
 0xecb   :  { %3699 = vmatpush3.bf16.msra.mxu0 %v1717_v53  ;;  %3719 = vmatpush3.bf16.msra.mxu1 %v1789_v52 }
 0xecc   :  { %3700 = vmatprep.subr.bf16.mxu0 %v4180_v1  ;;  %3720 = vmatprep.subr.bf16.mxu1 %v4180_v1 }
 0xece   :  { %v1715_v56 = vpop.permute.xlu1 %1714  ;;  %1866 = vrot.lane.b32.xlu1 %v4700_v28, %s4185_s30 }
 0xecf   :  { %3701 = vmatpush3.bf16.msra.mxu0 %v1715_v56  ;;  %3721 = vmatpush3.bf16.msra.mxu1 %v1787_v55 }
 0xed0   :  { %3726 = vmatprep.subr.bf16.mxu0 %v4180_v1  ;;  %3746 = vmatprep.subr.bf16.mxu1 %v4180_v1 }
 0xed2   :  { %1864 = vrot.lane.b32.xlu1 %v4703_v31, %s4185_s30 }
 0xed6   :  { %1862 = vrot.lane.b32.xlu1 %v4692_v20, %s4185_s30 }
 0xed7   :  { %1951 = vrot.lane.b32.xlu0 %v4716_v62, %s4185_s30 }
 0xeda   :  { %1860 = vrot.lane.b32.xlu1 %v4695_v4, %s4185_s30 }
 0xedb   :  { %1949 = vrot.lane.b32.xlu0 %v4721_v44, %s4185_s30 }
 0xede   :  { %1858 = vrot.lane.b32.xlu1 %v4684_v9, %s4185_s30 }
 0xedf   :  { %1947 = vrot.lane.b32.xlu0 %v4728_v6, %s4185_s30 }
 0xee2   :  { %1856 = vrot.lane.b32.xlu1 %v4687_v13, %s4185_s30 }
 0xee3   :  { %1945 = vrot.lane.b32.xlu0 %v4735_v12, %s4185_s30 }
 0xee6   :  { %1854 = vrot.lane.b32.xlu1 %v4675_v0, %s4185_s30 }
 0xee7   :  { %1943 = vrot.lane.b32.xlu0 %v4742_v17, %s4185_s30 }
 0xeea   :  { %1852 = vrot.lane.b32.xlu1 %v4678_v47, %s4185_s30 }
 0xeeb   :  { %1941 = vrot.lane.b32.xlu0 %v4749_v21, %s4185_s30 }
 0xeee   :  { %1850 = vrot.lane.b32.xlu1 %v4805_v61, %s4185_s30 }
 0xeef   :  { %1939 = vrot.lane.b32.xlu0 %v4708_v38, %s4185_s30 }
 0xef3   :  { %1937 = vrot.lane.b32.xlu0 %v4711_v41, %s4185_s30 }
 0xef7   :  { %1935 = vrot.lane.b32.xlu0 %v4811_v2, %s4185_s30  ;;  %s5452_s30 = smov 72  }
 0xf46   :  { %v1697_v58 = vpop.xlane.xlu1 %1696 }
 0xf47   :  { %4100 = vrcp.f32 %v1697_v58 }
 0xf4a   :  { %v1699_v59 = vpop.xlane.xlu0 %1698  ;;  %v1867_v48 = vpop.permute.xlu1 %1866 }
 0xf4b   :  { %4102 = vrcp.f32 %v1699_v59  ;;  %v1893_v8 = vsel %vm191_vm2, %v1867_v48, 0 }
 0xf4e   :  { %v1952_v14 = vpop.permute.xlu0 %1951  ;;  %v1865_v19 = vpop.permute.xlu1 %1864 }
 0xf4f   :  { %v1978_v18 = vsel %vm191_vm2, %v1952_v14, 0  ;;  %v1890_v3 = vsel %vm191_vm2, %v1865_v19, 0 }
 0xf52   :  { %v1950_v22 = vpop.permute.xlu0 %1949  ;;  %v1863_v24 = vpop.permute.xlu1 %1862 }
 0xf53   :  { %v1975_v23 = vsel %vm191_vm2, %v1950_v22, 0  ;;  %v1887_v25 = vsel %vm191_vm2, %v1863_v24, 0 }
 0xf54   :  { %v4101_v63 = vpop.eup %4100 }
 0xf55   :  { %v4905_v10 = vmul.f32 %v4101_v63, %v4097_v60 }
 0xf56   :  { %v1948_v54 = vpop.permute.xlu0 %1947  ;;  %v1861_v27 = vpop.permute.xlu1 %1860 }
 0xf57   :  { %v1704_v5 = vpack.c.bf16 %v4905_v10, %v4905_v10  ;;  %v1972_v26 = vsel %vm191_vm2, %v1948_v54, 0  ;;  %v1884_v29 = vsel %vm191_vm2, %v1861_v27, 0 }
 0xf58   :  { %v4103_v7 = vpop.eup %4102 }
 0xf59   :  { %3703 = vmatmul.mubr.bf16.vlgmr.msra.gmra.mxu0 %v1704_v5  ;;  %v4910_v15 = vmul.f32 %v4103_v7, %v4099_v45 }
 0xf5a   :  { %3727 = vmatpush3.bf16.xpose.msra.mxu0 %v1893_v8  ;;  %3742 = vmatprep.mubr.msk.bf16.mxu0 %vm4181_vm0, %v4180_v1  ;;  %v1946_v30 = vpop.permute.xlu0 %1945  ;;  %v1859_v33 = vpop.permute.xlu1 %1858 }
 0xf5b   :  { %v1705_v16 = vpack.c.bf16 %v4910_v15, %v4910_v15  ;;  %3728 = vmatprep.subr.bf16.mxu0 %v4180_v1  ;;  %v1969_v32 = vsel %vm191_vm2, %v1946_v30, 0  ;;  %v1881_v34 = vsel %vm191_vm2, %v1859_v33, 0 }
 0xf5d   :  { %3723 = vmatmul.mubr.bf16.vlgmr.msra.gmra.mxu1 %v1705_v16 }
 0xf5e   :  { %3747 = vmatpush3.bf16.xpose.msra.mxu1 %v1978_v18  ;;  %3762 = vmatprep.mubr.msk.bf16.mxu1 %vm4181_vm0, %v4180_v1  ;;  %v1944_v35 = vpop.permute.xlu0 %1943  ;;  %v1857_v37 = vpop.permute.xlu1 %1856 }
 0xf5f   :  { %3748 = vmatprep.subr.bf16.mxu1 %v4180_v1  ;;  %v1966_v36 = vsel %vm191_vm2, %v1944_v35, 0  ;;  %v1878_v39 = vsel %vm191_vm2, %v1857_v37, 0 }
 0xf62   :  { %3729 = vmatpush3.bf16.xpose.msra.mxu0 %v1890_v3  ;;  %v1942_v40 = vpop.permute.xlu0 %1941  ;;  %v1855_v43 = vpop.permute.xlu1 %1854 }
 0xf63   :  { %3730 = vmatprep.subr.bf16.mxu0 %v4180_v1  ;;  %v1963_v60 = vsel %vm191_vm2, %v1942_v40, 0  ;;  %v1875_v46 = vsel %vm191_vm2, %v1855_v43, 0 }
 0xf66   :  { %3749 = vmatpush3.bf16.xpose.msra.mxu1 %v1975_v23  ;;  %v1940_v45 = vpop.permute.xlu0 %1939  ;;  %v1853_v50 = vpop.permute.xlu1 %1852 }
 0xf67   :  { %3750 = vmatprep.subr.bf16.mxu1 %v4180_v1  ;;  %v1960_v49 = vsel %vm191_vm2, %v1940_v45, 0  ;;  %v1872_v51 = vsel %vm191_vm2, %v1853_v50, 0 }
 0xf6a   :  { %3731 = vmatpush3.bf16.xpose.msra.mxu0 %v1887_v25  ;;  %v1938_v52 = vpop.permute.xlu0 %1937  ;;  %v1851_v55 = vpop.permute.xlu1 %1850 }
 0xf6b   :  { %3732 = vmatprep.subr.bf16.mxu0 %v4180_v1  ;;  %v1957_v53 = vsel %vm191_vm2, %v1938_v52, 0 }
 0xf6e   :  { %3751 = vmatpush3.bf16.xpose.msra.mxu1 %v1972_v26  ;;  %v1936_v56 = vpop.permute.xlu0 %1935 }
 0xf6f   :  { %3752 = vmatprep.subr.bf16.mxu1 %v4180_v1 }
 0xf72   :  { %3733 = vmatpush3.bf16.xpose.msra.mxu0 %v1884_v29 }
 0xf73   :  { %3734 = vmatprep.subr.bf16.mxu0 %v4180_v1 }
 0xf76   :  { %3753 = vmatpush3.bf16.xpose.msra.mxu1 %v1969_v32 }
 0xf77   :  { %3754 = vmatprep.subr.bf16.mxu1 %v4180_v1 }
 0xf7a   :  { %3735 = vmatpush3.bf16.xpose.msra.mxu0 %v1881_v34 }
 0xf7b   :  { %3736 = vmatprep.subr.bf16.mxu0 %v4180_v1 }
 0xf7e   :  { %3755 = vmatpush3.bf16.xpose.msra.mxu1 %v1966_v36 }
 0xf7f   :  { %3756 = vmatprep.subr.bf16.mxu1 %v4180_v1 }
 0xf82   :  { %3737 = vmatpush3.bf16.xpose.msra.mxu0 %v1878_v39 }
 0xf83   :  { %3738 = vmatprep.subr.bf16.mxu0 %v4180_v1 }
 0xf86   :  { %3757 = vmatpush3.bf16.xpose.msra.mxu1 %v1963_v60 }
 0xf87   :  { %3758 = vmatprep.subr.bf16.mxu1 %v4180_v1 }
 0xf8a   :  { %3739 = vmatpush3.bf16.xpose.msra.mxu0 %v1875_v46 }
 0xf8b   :  { %3740 = vmatprep.subr.bf16.mxu0 %v4180_v1 }
 0xf8e   :  { %3759 = vmatpush3.bf16.xpose.msra.mxu1 %v1960_v49 }
 0xf8f   :  { %3760 = vmatprep.subr.bf16.mxu1 %v4180_v1 }
 0xf92   :  { %3741 = vmatpush3.bf16.xpose.msra.mxu0 %v1872_v51 }
 0xf93   :  { %3766 = vmatprep.subr.bf16.mxu0 %v4180_v1 }
 0xf96   :  { %3761 = vmatpush3.bf16.xpose.msra.mxu1 %v1957_v53 }
 0xf97   :  { %3786 = vmatprep.subr.bf16.mxu1 %v4180_v1 }
 0xf99   :  { %3743 = vmatmul.mubr.msk.bf16.vlgmr.msra.gmra.mxu0 %vm191_vm2, %v1851_v55 }
 0xf9a   :  { %3782 = vmatprep.mubr.msk.bf16.mxu0 %vm4181_vm0, %v4180_v1 }
 0xf9d   :  { %3763 = vmatmul.mubr.msk.bf16.vlgmr.msra.gmra.mxu1 %vm191_vm2, %v1936_v56 }
 0xf9e   :  { %3802 = vmatprep.mubr.msk.bf16.mxu1 %vm4181_vm0, %v4180_v1 }
0x1019   :  { %v4955_v58 = vpop.f32.mrf.mxu0 }
0x101b   :  { %v3704_v59 = vpop.f32.mrf.mxu0 }
0x101d   :  { %v1775_v63 = vpop.f32.mrf.mxu0  ;;  %v4957_v48 = vpop.f32.mrf.mxu1 }
0x101f   :  { %v3705_v5 = vpop.f32.mrf.mxu0  ;;  %v3724_v7 = vpop.f32.mrf.mxu1 }
0x1021   :  { %v1847_v8 = vpop.f32.mrf.mxu1 }
0x1023   :  { %v3725_v14 = vpop.f32.mrf.mxu1 }
0x1059   :  { %v1929_v16 = vpop.f32.mrf.mxu0 }
0x105a   :  { %v1930_v18 = vadd.f32 %v1929_v16, %v4817_v11 }
0x105b   :  { %v3744_v19 = vpop.f32.mrf.mxu0 }
0x105c   :  { %2020 = vmax.xlane.f32.xlu1 %v1930_v18 }
0x105d   :  { %v1932_v3 = vpop.f32.mrf.mxu0  ;;  %v2014_v22 = vpop.f32.mrf.mxu1 }
0x105e   :  { %v2015_v23 = vadd.f32 %v2014_v22, %v4817_v11 }
0x105f   :  { %v3745_v24 = vpop.f32.mrf.mxu0  ;;  %v3764_v25 = vpop.f32.mrf.mxu1 }
0x1060   :  { %2022 = vmax.xlane.f32.xlu0 %v2015_v23 }
0x1061   :  { %v2017_v54 = vpop.f32.mrf.mxu1 }
0x1063   :  { %v3765_v26 = vpop.f32.mrf.mxu1 }
0x106d   :  { %2118 = vrot.lane.b32.xlu1 %v4716_v62, %s4184_s4 }
0x1071   :  { %2116 = vrot.lane.b32.xlu1 %v4721_v44, %s4184_s4 }
0x1075   :  { %2050 = vrot.lane.b32.xlu1 %v4692_v20, %s4184_s4 }
0x1076   :  { %2054 = vrot.lane.b32.xlu0 %v4700_v28, %s4184_s4 }
0x1079   :  { %2048 = vrot.lane.b32.xlu1 %v4695_v4, %s4184_s4 }
0x107a   :  { %2052 = vrot.lane.b32.xlu0 %v4703_v31, %s4184_s4 }
0x107d   :  { %2046 = vrot.lane.b32.xlu1 %v4684_v9, %s4184_s4 }
0x107e   :  { %2114 = vrot.lane.b32.xlu0 %v4728_v6, %s4184_s4 }
0x1081   :  { %2044 = vrot.lane.b32.xlu1 %v4687_v13, %s4184_s4 }
0x1082   :  { %2112 = vrot.lane.b32.xlu0 %v4735_v12, %s4184_s4 }
0x1085   :  { %2042 = vrot.lane.b32.xlu1 %v4675_v0, %s4184_s4 }
0x1086   :  { %2110 = vrot.lane.b32.xlu0 %v4742_v17, %s4184_s4 }
0x1089   :  { %2040 = vrot.lane.b32.xlu1 %v4678_v47, %s4184_s4 }
0x108a   :  { %2108 = vrot.lane.b32.xlu0 %v4749_v21, %s4184_s4 }
0x108e   :  { %2106 = vrot.lane.b32.xlu0 %v4708_v38, %s4184_s4 }
0x1092   :  { %2104 = vrot.lane.b32.xlu0 %v4711_v41, %s4184_s4  ;;  %s5451_s4 = smov 104  }
0x10e5   :  { %v2021_v27 = vpop.xlane.xlu1 %2020 }
0x10e6   :  { %v2024_v29 = vsub.f32 %v1930_v18, %v2021_v27 }
0x10e8   :  { %v2026_v30 = vmul.f32 1.442695, %v2024_v29 }
0x10e9   :  { %v2023_v32 = vpop.xlane.xlu0 %2022  ;;  %v2119_v33 = vpop.permute.xlu1 %2118 }
0x10ea   :  { %4104 = vpow2.f32 %v2026_v30  ;;  %v2025_v34 = vsub.f32 %v2015_v23, %v2023_v32  ;;  %3787 = vmatpush3.bf16.msra.mxu1 %v2119_v33 }
0x10eb   :  { %3788 = vmatprep.subr.bf16.mxu1 %v4180_v1 }
0x10ec   :  { %v2028_v35 = vmul.f32 1.442695, %v2025_v34 }
0x10ed   :  { %v2055_v36 = vpop.permute.xlu0 %2054  ;;  %v2117_v37 = vpop.permute.xlu1 %2116 }
0x10ee   :  { %4106 = vpow2.f32 %v2028_v35  ;;  %3767 = vmatpush3.bf16.msra.mxu0 %v2055_v36  ;;  %3789 = vmatpush3.bf16.msra.mxu1 %v2117_v37 }
0x10ef   :  { %3768 = vmatprep.subr.bf16.mxu0 %v4180_v1  ;;  %3790 = vmatprep.subr.bf16.mxu1 %v4180_v1 }
0x10f1   :  { %v2053_v39 = vpop.permute.xlu0 %2052  ;;  %v2051_v40 = vpop.permute.xlu1 %2050 }
0x10f2   :  { %3769 = vmatpush3.bf16.msra.mxu0 %v2053_v39 }
0x10f3   :  { %3770 = vmatprep.subr.bf16.mxu0 %v4180_v1 }
0x10f5   :  { %v2115_v60 = vpop.permute.xlu0 %2114  ;;  %v2049_v43 = vpop.permute.xlu1 %2048 }
0x10f6   :  { %3771 = vmatpush3.bf16.msra.mxu0 %v2051_v40  ;;  %3791 = vmatpush3.bf16.msra.mxu1 %v2115_v60 }
0x10f7   :  { %v4105_v46 = vpop.eup %4104  ;;  %3772 = vmatprep.subr.bf16.mxu0 %v4180_v1  ;;  %3792 = vmatprep.subr.bf16.mxu1 %v4180_v1 }
0x10f8   :  { %2030 = vadd.xlane.f32.xlu1 %v4105_v46 }
0x10f9   :  { %v2113_v45 = vpop.permute.xlu0 %2112  ;;  %v2047_v49 = vpop.permute.xlu1 %2046 }
0x10fa   :  { %3773 = vmatpush3.bf16.msra.mxu0 %v2049_v43  ;;  %3793 = vmatpush3.bf16.msra.mxu1 %v2113_v45 }
0x10fb   :  { %v4107_v50 = vpop.eup %4106  ;;  %3774 = vmatprep.subr.bf16.mxu0 %v4180_v1  ;;  %3794 = vmatprep.subr.bf16.mxu1 %v4180_v1 }
0x10fc   :  { %2032 = vadd.xlane.f32.xlu0 %v4107_v50 }
0x10fd   :  { %v2111_v51 = vpop.permute.xlu0 %2110  ;;  %v2045_v52 = vpop.permute.xlu1 %2044 }
0x10fe   :  { %3775 = vmatpush3.bf16.msra.mxu0 %v2047_v49  ;;  %3795 = vmatpush3.bf16.msra.mxu1 %v2111_v51 }
0x10ff   :  { %3776 = vmatprep.subr.bf16.mxu0 %v4180_v1  ;;  %3796 = vmatprep.subr.bf16.mxu1 %v4180_v1 }
0x1101   :  { %v2109_v53 = vpop.permute.xlu0 %2108  ;;  %v2043_v55 = vpop.permute.xlu1 %2042 }
0x1102   :  { %3777 = vmatpush3.bf16.msra.mxu0 %v2045_v52  ;;  %3797 = vmatpush3.bf16.msra.mxu1 %v2109_v53 }
0x1103   :  { %3778 = vmatprep.subr.bf16.mxu0 %v4180_v1  ;;  %3798 = vmatprep.subr.bf16.mxu1 %v4180_v1 }
0x1105   :  { %v2107_v56 = vpop.permute.xlu0 %2106  ;;  %v2041_v59 = vpop.permute.xlu1 %2040 }
0x1106   :  { %3779 = vmatpush3.bf16.msra.mxu0 %v2043_v55  ;;  %3799 = vmatpush3.bf16.msra.mxu1 %v2107_v56 }
0x1107   :  { %3780 = vmatprep.subr.bf16.mxu0 %v4180_v1  ;;  %3800 = vmatprep.subr.bf16.mxu1 %v4180_v1 }
0x1109   :  { %v2105_v63 = vpop.permute.xlu0 %2104  ;;  %2186 = vrot.lane.b32.xlu1 %v4700_v28, %s4188_s5 }
0x110a   :  { %3781 = vmatpush3.bf16.msra.mxu0 %v2041_v59  ;;  %3801 = vmatpush3.bf16.msra.mxu1 %v2105_v63 }
0x110b   :  { %3806 = vmatprep.subr.bf16.mxu0 %v4180_v1  ;;  %3826 = vmatprep.subr.bf16.mxu1 %v4180_v1 }
0x110d   :  { %2184 = vrot.lane.b32.xlu1 %v4703_v31, %s4188_s5 }
0x1111   :  { %2182 = vrot.lane.b32.xlu1 %v4692_v20, %s4188_s5 }
0x1112   :  { %2271 = vrot.lane.b32.xlu0 %v4716_v62, %s4188_s5 }
0x1115   :  { %2180 = vrot.lane.b32.xlu1 %v4695_v4, %s4188_s5 }
0x1116   :  { %2269 = vrot.lane.b32.xlu0 %v4721_v44, %s4188_s5 }
0x1119   :  { %2178 = vrot.lane.b32.xlu1 %v4684_v9, %s4188_s5 }
0x111a   :  { %2267 = vrot.lane.b32.xlu0 %v4728_v6, %s4188_s5 }
0x111d   :  { %2176 = vrot.lane.b32.xlu1 %v4687_v13, %s4188_s5 }
0x111e   :  { %2265 = vrot.lane.b32.xlu0 %v4735_v12, %s4188_s5 }
0x1121   :  { %2174 = vrot.lane.b32.xlu1 %v4675_v0, %s4188_s5 }
0x1122   :  { %2263 = vrot.lane.b32.xlu0 %v4742_v17, %s4188_s5 }
0x1125   :  { %2172 = vrot.lane.b32.xlu1 %v4678_v47, %s4188_s5 }
0x1126   :  { %2261 = vrot.lane.b32.xlu0 %v4749_v21, %s4188_s5 }
0x1129   :  { %2170 = vrot.lane.b32.xlu1 %v4805_v61, %s4188_s5 }
0x112a   :  { %2259 = vrot.lane.b32.xlu0 %v4708_v38, %s4188_s5 }
0x112e   :  { %2257 = vrot.lane.b32.xlu0 %v4711_v41, %s4188_s5 }
0x1132   :  { %2255 = vrot.lane.b32.xlu0 %v4811_v2, %s4188_s5  ;;  %s5453_s5 = smov 8  }
0x1181   :  { %v2031_v5 = vpop.xlane.xlu1 %2030 }
0x1182   :  { %4108 = vrcp.f32 %v2031_v5 }
0x1185   :  { %v2033_v7 = vpop.xlane.xlu0 %2032  ;;  %v2187_v16 = vpop.permute.xlu1 %2186 }
0x1186   :  { %4110 = vrcp.f32 %v2033_v7  ;;  %v2213_v3 = vsel %vm191_vm2, %v2187_v16, 0 }
0x1189   :  { %v2272_v23 = vpop.permute.xlu0 %2271  ;;  %v2185_v54 = vpop.permute.xlu1 %2184 }
0x118a   :  { %v2298_v25 = vsel %vm191_vm2, %v2272_v23, 0  ;;  %v2210_v26 = vsel %vm191_vm2, %v2185_v54, 0 }
0x118d   :  { %v2270_v27 = vpop.permute.xlu0 %2269  ;;  %v2183_v30 = vpop.permute.xlu1 %2182 }
0x118e   :  { %v2295_v29 = vsel %vm191_vm2, %v2270_v27, 0  ;;  %v2207_v32 = vsel %vm191_vm2, %v2183_v30, 0 }
0x118f   :  { %v4109_v8 = vpop.eup %4108 }
0x1190   :  { %v5045_v14 = vmul.f32 %v4109_v8, %v4105_v46 }
0x1191   :  { %v2268_v33 = vpop.permute.xlu0 %2267  ;;  %v2181_v35 = vpop.permute.xlu1 %2180 }
0x1192   :  { %v2038_v18 = vpack.c.bf16 %v5045_v14, %v5045_v14  ;;  %v2292_v34 = vsel %vm191_vm2, %v2268_v33, 0  ;;  %v2204_v36 = vsel %vm191_vm2, %v2181_v35, 0 }
0x1193   :  { %v4111_v19 = vpop.eup %4110 }
0x1194   :  { %3783 = vmatmul.mubr.bf16.vlgmr.msra.gmra.mxu0 %v2038_v18  ;;  %v5050_v22 = vmul.f32 %v4111_v19, %v4107_v50 }
0x1195   :  { %3807 = vmatpush3.bf16.xpose.msra.mxu0 %v2213_v3  ;;  %3822 = vmatprep.mubr.msk.bf16.mxu0 %vm4181_vm0, %v4180_v1  ;;  %v2266_v37 = vpop.permute.xlu0 %2265  ;;  %v2179_v40 = vpop.permute.xlu1 %2178 }
0x1196   :  { %v2039_v24 = vpack.c.bf16 %v5050_v22, %v5050_v22  ;;  %3808 = vmatprep.subr.bf16.mxu0 %v4180_v1  ;;  %v2289_v39 = vsel %vm191_vm2, %v2266_v37, 0  ;;  %v2201_v60 = vsel %vm191_vm2, %v2179_v40, 0 }
0x1198   :  { %3803 = vmatmul.mubr.bf16.vlgmr.msra.gmra.mxu1 %v2039_v24 }
0x1199   :  { %3827 = vmatpush3.bf16.xpose.msra.mxu1 %v2298_v25  ;;  %3842 = vmatprep.mubr.msk.bf16.mxu1 %vm4181_vm0, %v4180_v1  ;;  %v2264_v43 = vpop.permute.xlu0 %2263  ;;  %v2177_v45 = vpop.permute.xlu1 %2176 }
0x119a   :  { %3828 = vmatprep.subr.bf16.mxu1 %v4180_v1  ;;  %v2286_v46 = vsel %vm191_vm2, %v2264_v43, 0  ;;  %v2198_v49 = vsel %vm191_vm2, %v2177_v45, 0 }
0x119d   :  { %3809 = vmatpush3.bf16.xpose.msra.mxu0 %v2210_v26  ;;  %v2262_v50 = vpop.permute.xlu0 %2261  ;;  %v2175_v52 = vpop.permute.xlu1 %2174 }
0x119e   :  { %3810 = vmatprep.subr.bf16.mxu0 %v4180_v1  ;;  %v2283_v51 = vsel %vm191_vm2, %v2262_v50, 0  ;;  %v2195_v53 = vsel %vm191_vm2, %v2175_v52, 0 }
0x11a1   :  { %3829 = vmatpush3.bf16.xpose.msra.mxu1 %v2295_v29  ;;  %v2260_v55 = vpop.permute.xlu0 %2259  ;;  %v2173_v59 = vpop.permute.xlu1 %2172 }
0x11a2   :  { %3830 = vmatprep.subr.bf16.mxu1 %v4180_v1  ;;  %v2280_v56 = vsel %vm191_vm2, %v2260_v55, 0  ;;  %v2192_v63 = vsel %vm191_vm2, %v2173_v59, 0 }
0x11a5   :  { %3811 = vmatpush3.bf16.xpose.msra.mxu0 %v2207_v32  ;;  %v2258_v5 = vpop.permute.xlu0 %2257  ;;  %v2171_v8 = vpop.permute.xlu1 %2170 }
0x11a6   :  { %3812 = vmatprep.subr.bf16.mxu0 %v4180_v1  ;;  %v2277_v7 = vsel %vm191_vm2, %v2258_v5, 0 }
0x11a9   :  { %3831 = vmatpush3.bf16.xpose.msra.mxu1 %v2292_v34  ;;  %v2256_v16 = vpop.permute.xlu0 %2255 }
0x11aa   :  { %3832 = vmatprep.subr.bf16.mxu1 %v4180_v1 }
0x11ad   :  { %3813 = vmatpush3.bf16.xpose.msra.mxu0 %v2204_v36 }
0x11ae   :  { %3814 = vmatprep.subr.bf16.mxu0 %v4180_v1 }
0x11b1   :  { %3833 = vmatpush3.bf16.xpose.msra.mxu1 %v2289_v39 }
0x11b2   :  { %3834 = vmatprep.subr.bf16.mxu1 %v4180_v1 }
0x11b5   :  { %3815 = vmatpush3.bf16.xpose.msra.mxu0 %v2201_v60 }
0x11b6   :  { %3816 = vmatprep.subr.bf16.mxu0 %v4180_v1 }
0x11b9   :  { %3835 = vmatpush3.bf16.xpose.msra.mxu1 %v2286_v46 }
0x11ba   :  { %3836 = vmatprep.subr.bf16.mxu1 %v4180_v1 }
0x11bd   :  { %3817 = vmatpush3.bf16.xpose.msra.mxu0 %v2198_v49 }
0x11be   :  { %3818 = vmatprep.subr.bf16.mxu0 %v4180_v1 }
0x11c1   :  { %3837 = vmatpush3.bf16.xpose.msra.mxu1 %v2283_v51 }
0x11c2   :  { %3838 = vmatprep.subr.bf16.mxu1 %v4180_v1 }
0x11c5   :  { %3819 = vmatpush3.bf16.xpose.msra.mxu0 %v2195_v53 }
0x11c6   :  { %3820 = vmatprep.subr.bf16.mxu0 %v4180_v1 }
0x11c9   :  { %3839 = vmatpush3.bf16.xpose.msra.mxu1 %v2280_v56 }
0x11ca   :  { %3840 = vmatprep.subr.bf16.mxu1 %v4180_v1 }
0x11cd   :  { %3821 = vmatpush3.bf16.xpose.msra.mxu0 %v2192_v63 }
0x11ce   :  { %3846 = vmatprep.subr.bf16.mxu0 %v4180_v1 }
0x11d1   :  { %3841 = vmatpush3.bf16.xpose.msra.mxu1 %v2277_v7 }
0x11d2   :  { %3866 = vmatprep.subr.bf16.mxu1 %v4180_v1 }
0x11d4   :  { %3823 = vmatmul.mubr.msk.bf16.vlgmr.msra.gmra.mxu0 %vm191_vm2, %v2171_v8 }
0x11d5   :  { %3862 = vmatprep.mubr.msk.bf16.mxu0 %vm4181_vm0, %v4180_v1 }
0x11d8   :  { %3843 = vmatmul.mubr.msk.bf16.vlgmr.msra.gmra.mxu1 %vm191_vm2, %v2256_v16 }
0x11d9   :  { %3882 = vmatprep.mubr.msk.bf16.mxu1 %vm4181_vm0, %v4180_v1 }
0x1254   :  { %v5095_v18 = vpop.f32.mrf.mxu0 }
0x1256   :  { %v3784_v19 = vpop.f32.mrf.mxu0 }
0x1258   :  { %v2101_v3 = vpop.f32.mrf.mxu0  ;;  %v5097_v23 = vpop.f32.mrf.mxu1 }
0x1259   :  { %v4029_v24 = vpack.i.bf16 %v5097_v23, %v5095_v18 }
0x125a   :  { %v3785_v25 = vpop.f32.mrf.mxu0  ;;  %v3804_v54 = vpop.f32.mrf.mxu1 }
0x125c   :  { %v2165_v26 = vpop.f32.mrf.mxu1 }
0x125e   :  { %v3805_v27 = vpop.f32.mrf.mxu1 }
0x1294   :  { %v2249_v29 = vpop.f32.mrf.mxu0 }
0x1295   :  { %v2250_v30 = vadd.f32 %v2249_v29, %v4817_v11 }
0x1296   :  { %v3824_v32 = vpop.f32.mrf.mxu0 }
0x1297   :  { %2340 = vmax.xlane.f32.xlu1 %v2250_v30 }
0x1298   :  { %v2252_v33 = vpop.f32.mrf.mxu0  ;;  %v2334_v34 = vpop.f32.mrf.mxu1 }
0x1299   :  { %v2335_v35 = vadd.f32 %v2334_v34, %v4817_v11  ;;  %v2168_v34 = vadd.f32 %v5045_v14, %v4905_v10 }
0x129a   :  { %v3825_v36 = vpop.f32.mrf.mxu0  ;;  %v3844_v37 = vpop.f32.mrf.mxu1 }
0x129b   :  { %2342 = vmax.xlane.f32.xlu0 %v2335_v35 }
0x129c   :  { %v2337_v39 = vpop.f32.mrf.mxu1 }
0x129e   :  { %v3845_v40 = vpop.f32.mrf.mxu1 }
0x129f   :  { %v2169_v40 = vadd.f32 %v5050_v22, %v4910_v15 }
0x12a8   :  { %2438 = vrot.lane.b32.xlu1 %v4716_v62, %s5450_s3 }
0x12ac   :  { %2436 = vrot.lane.b32.xlu1 %v4721_v44, %s5450_s3 }
0x12b0   :  { %2370 = vrot.lane.b32.xlu1 %v4692_v20, %s5450_s3 }
0x12b1   :  { %2374 = vrot.lane.b32.xlu0 %v4700_v28, %s5450_s3 }
0x12b4   :  { %2368 = vrot.lane.b32.xlu1 %v4695_v4, %s5450_s3 }
0x12b5   :  { %2372 = vrot.lane.b32.xlu0 %v4703_v31, %s5450_s3 }
0x12b8   :  { %2366 = vrot.lane.b32.xlu1 %v4684_v9, %s5450_s3 }
0x12b9   :  { %2434 = vrot.lane.b32.xlu0 %v4728_v6, %s5450_s3 }
0x12bc   :  { %2364 = vrot.lane.b32.xlu1 %v4687_v13, %s5450_s3 }
0x12bd   :  { %2432 = vrot.lane.b32.xlu0 %v4735_v12, %s5450_s3 }
0x12c0   :  { %2362 = vrot.lane.b32.xlu1 %v4675_v0, %s5450_s3 }
0x12c1   :  { %2430 = vrot.lane.b32.xlu0 %v4742_v17, %s5450_s3 }
0x12c4   :  { %2360 = vrot.lane.b32.xlu1 %v4678_v47, %s5450_s3 }
0x12c5   :  { %2428 = vrot.lane.b32.xlu0 %v4749_v21, %s5450_s3 }
0x12c9   :  { %2426 = vrot.lane.b32.xlu0 %v4708_v38, %s5450_s3 }
0x12cd   :  { %2424 = vrot.lane.b32.xlu0 %v4711_v41, %s5450_s3 }
0x1320   :  { %v2341_v60 = vpop.xlane.xlu1 %2340 }
0x1321   :  { %v2344_v43 = vsub.f32 %v2250_v30, %v2341_v60 }
0x1323   :  { %v2346_v46 = vmul.f32 1.442695, %v2344_v43 }
0x1324   :  { %v2343_v45 = vpop.xlane.xlu0 %2342  ;;  %v2439_v49 = vpop.permute.xlu1 %2438 }
0x1325   :  { %4112 = vpow2.f32 %v2346_v46  ;;  %v2345_v50 = vsub.f32 %v2335_v35, %v2343_v45  ;;  %3867 = vmatpush3.bf16.msra.mxu1 %v2439_v49 }
0x1326   :  { %3868 = vmatprep.subr.bf16.mxu1 %v4180_v1 }
0x1327   :  { %v2348_v51 = vmul.f32 1.442695, %v2345_v50 }
0x1328   :  { %v2375_v52 = vpop.permute.xlu0 %2374  ;;  %v2437_v53 = vpop.permute.xlu1 %2436 }
0x1329   :  { %4114 = vpow2.f32 %v2348_v51  ;;  %3847 = vmatpush3.bf16.msra.mxu0 %v2375_v52  ;;  %3869 = vmatpush3.bf16.msra.mxu1 %v2437_v53 }
0x132a   :  { %3848 = vmatprep.subr.bf16.mxu0 %v4180_v1  ;;  %3870 = vmatprep.subr.bf16.mxu1 %v4180_v1 }
0x132c   :  { %v2373_v55 = vpop.permute.xlu0 %2372  ;;  %v2371_v56 = vpop.permute.xlu1 %2370 }
0x132d   :  { %3849 = vmatpush3.bf16.msra.mxu0 %v2373_v55 }
0x132e   :  { %3850 = vmatprep.subr.bf16.mxu0 %v4180_v1 }
0x1330   :  { %v2435_v59 = vpop.permute.xlu0 %2434  ;;  %v2369_v63 = vpop.permute.xlu1 %2368 }
0x1331   :  { %3851 = vmatpush3.bf16.msra.mxu0 %v2371_v56  ;;  %3871 = vmatpush3.bf16.msra.mxu1 %v2435_v59 }
0x1332   :  { %v4113_v5 = vpop.eup %4112  ;;  %3852 = vmatprep.subr.bf16.mxu0 %v4180_v1  ;;  %3872 = vmatprep.subr.bf16.mxu1 %v4180_v1 }
0x1333   :  { %2350 = vadd.xlane.f32.xlu1 %v4113_v5 }
0x1334   :  { %v2433_v7 = vpop.permute.xlu0 %2432  ;;  %v2367_v8 = vpop.permute.xlu1 %2366 }
0x1335   :  { %3853 = vmatpush3.bf16.msra.mxu0 %v2369_v63  ;;  %3873 = vmatpush3.bf16.msra.mxu1 %v2433_v7 }
0x1336   :  { %v4115_v16 = vpop.eup %4114  ;;  %3854 = vmatprep.subr.bf16.mxu0 %v4180_v1  ;;  %3874 = vmatprep.subr.bf16.mxu1 %v4180_v1 }
0x1337   :  { %2352 = vadd.xlane.f32.xlu0 %v4115_v16 }
0x1338   :  { %v2431_v19 = vpop.permute.xlu0 %2430  ;;  %v2365_v3 = vpop.permute.xlu1 %2364 }
0x1339   :  { %3855 = vmatpush3.bf16.msra.mxu0 %v2367_v8  ;;  %3875 = vmatpush3.bf16.msra.mxu1 %v2431_v19 }
0x133a   :  { %3856 = vmatprep.subr.bf16.mxu0 %v4180_v1  ;;  %3876 = vmatprep.subr.bf16.mxu1 %v4180_v1 }
0x133c   :  { %v2429_v25 = vpop.permute.xlu0 %2428  ;;  %v2363_v54 = vpop.permute.xlu1 %2362 }
0x133d   :  { %3857 = vmatpush3.bf16.msra.mxu0 %v2365_v3  ;;  %3877 = vmatpush3.bf16.msra.mxu1 %v2429_v25 }
0x133e   :  { %3858 = vmatprep.subr.bf16.mxu0 %v4180_v1  ;;  %3878 = vmatprep.subr.bf16.mxu1 %v4180_v1 }
0x1340   :  { %v2427_v26 = vpop.permute.xlu0 %2426  ;;  %v2361_v27 = vpop.permute.xlu1 %2360 }
0x1341   :  { %3859 = vmatpush3.bf16.msra.mxu0 %v2363_v54  ;;  %3879 = vmatpush3.bf16.msra.mxu1 %v2427_v26 }
0x1342   :  { %3860 = vmatprep.subr.bf16.mxu0 %v4180_v1  ;;  %3880 = vmatprep.subr.bf16.mxu1 %v4180_v1 }
0x1344   :  { %v2425_v29 = vpop.permute.xlu0 %2424  ;;  %2506 = vrot.lane.b32.xlu1 %v4700_v28, %s5451_s4 }
0x1345   :  { %3861 = vmatpush3.bf16.msra.mxu0 %v2361_v27  ;;  %3881 = vmatpush3.bf16.msra.mxu1 %v2425_v29 }
0x1346   :  { %3886 = vmatprep.subr.bf16.mxu0 %v4180_v1  ;;  %3906 = vmatprep.subr.bf16.mxu1 %v4180_v1 }
0x1348   :  { %2504 = vrot.lane.b32.xlu1 %v4703_v31, %s5451_s4 }
0x134c   :  { %2502 = vrot.lane.b32.xlu1 %v4692_v20, %s5451_s4 }
0x134d   :  { %2591 = vrot.lane.b32.xlu0 %v4716_v62, %s5451_s4 }
0x1350   :  { %2500 = vrot.lane.b32.xlu1 %v4695_v4, %s5451_s4 }
0x1351   :  { %2589 = vrot.lane.b32.xlu0 %v4721_v44, %s5451_s4 }
0x1354   :  { %2498 = vrot.lane.b32.xlu1 %v4684_v9, %s5451_s4 }
0x1355   :  { %2587 = vrot.lane.b32.xlu0 %v4728_v6, %s5451_s4 }
0x1358   :  { %2496 = vrot.lane.b32.xlu1 %v4687_v13, %s5451_s4 }
0x1359   :  { %2585 = vrot.lane.b32.xlu0 %v4735_v12, %s5451_s4 }
0x135c   :  { %2494 = vrot.lane.b32.xlu1 %v4675_v0, %s5451_s4 }
0x135d   :  { %2583 = vrot.lane.b32.xlu0 %v4742_v17, %s5451_s4 }
0x1360   :  { %2492 = vrot.lane.b32.xlu1 %v4678_v47, %s5451_s4 }
0x1361   :  { %2581 = vrot.lane.b32.xlu0 %v4749_v21, %s5451_s4 }
0x1364   :  { %2490 = vrot.lane.b32.xlu1 %v4805_v61, %s5451_s4 }
0x1365   :  { %2579 = vrot.lane.b32.xlu0 %v4708_v38, %s5451_s4 }
0x1369   :  { %2577 = vrot.lane.b32.xlu0 %v4711_v41, %s5451_s4 }
0x136d   :  { %2575 = vrot.lane.b32.xlu0 %v4811_v2, %s5451_s4 }
0x13bc   :  { %v2351_v30 = vpop.xlane.xlu1 %2350 }
0x13bd   :  { %4116 = vrcp.f32 %v2351_v30 }
0x13c0   :  { %v2353_v32 = vpop.xlane.xlu0 %2352  ;;  %v2507_v36 = vpop.permute.xlu1 %2506 }
0x13c1   :  { %4118 = vrcp.f32 %v2353_v32  ;;  %v2533_v60 = vsel %vm191_vm2, %v2507_v36, 0 }
0x13c4   :  { %v2592_v43 = vpop.permute.xlu0 %2591  ;;  %v2505_v45 = vpop.permute.xlu1 %2504 }
0x13c5   :  { %v2618_v14 = vsel %vm191_vm2, %v2592_v43, 0  ;;  %v2530_v15 = vsel %vm191_vm2, %v2505_v45, 0 }
0x13c8   :  { %v2590_v22 = vpop.permute.xlu0 %2589  ;;  %v2503_v50 = vpop.permute.xlu1 %2502 }
0x13c9   :  { %v2615_v49 = vsel %vm191_vm2, %v2590_v22, 0  ;;  %v2527_v51 = vsel %vm191_vm2, %v2503_v50, 0 }
0x13ca   :  { %v4117_v33 = vpop.eup %4116 }
0x13cb   :  { %v2356_v35 = vmul.f32 %v4117_v33, %v4113_v5 }
0x13cc   :  { %v2588_v52 = vpop.permute.xlu0 %2587  ;;  %v2501_v55 = vpop.permute.xlu1 %2500 }
0x13cd   :  { %v2358_v61 = vpack.c.bf16 %v2356_v35, %v2356_v35  ;;  %v5189_v37 = vadd.f32 %v2356_v35, %v2168_v34  ;;  %v2612_v53 = vsel %vm191_vm2, %v2588_v52, 0  ;;  %v2524_v56 = vsel %vm191_vm2, %v2501_v55, 0 }
0x13ce   :  { %v4119_v39 = vpop.eup %4118 }
0x13cf   :  { %3863 = vmatmul.mubr.bf16.vlgmr.msra.gmra.mxu0 %v2358_v61  ;;  %v2357_v2 = vmul.f32 %v4119_v39, %v4115_v16 }
0x13d0   :  { %3887 = vmatpush3.bf16.xpose.msra.mxu0 %v2533_v60  ;;  %3902 = vmatprep.mubr.msk.bf16.mxu0 %vm4181_vm0, %v4180_v1  ;;  %v2586_v59 = vpop.permute.xlu0 %2585  ;;  %v2499_v5 = vpop.permute.xlu1 %2498 }
0x13d1   :  { %v2359_v46 = vpack.c.bf16 %v2357_v2, %v2357_v2  ;;  %3888 = vmatprep.subr.bf16.mxu0 %v4180_v1  ;;  %v5197_v10 = vadd.f32 %v2357_v2, %v2169_v40  ;;  %v2609_v63 = vsel %vm191_vm2, %v2586_v59, 0  ;;  %v2521_v7 = vsel %vm191_vm2, %v2499_v5, 0 }
0x13d3   :  { %3883 = vmatmul.mubr.bf16.vlgmr.msra.gmra.mxu1 %v2359_v46 }
0x13d4   :  { %3907 = vmatpush3.bf16.xpose.msra.mxu1 %v2618_v14  ;;  %3922 = vmatprep.mubr.msk.bf16.mxu1 %vm4181_vm0, %v4180_v1  ;;  %v2584_v8 = vpop.permute.xlu0 %2583  ;;  %v2497_v19 = vpop.permute.xlu1 %2496 }
0x13d5   :  { %3908 = vmatprep.subr.bf16.mxu1 %v4180_v1  ;;  %v2606_v16 = vsel %vm191_vm2, %v2584_v8, 0  ;;  %v2518_v3 = vsel %vm191_vm2, %v2497_v19, 0 }
0x13d8   :  { %3889 = vmatpush3.bf16.xpose.msra.mxu0 %v2530_v15  ;;  %v2582_v25 = vpop.permute.xlu0 %2581  ;;  %v2495_v26 = vpop.permute.xlu1 %2494 }
0x13d9   :  { %3890 = vmatprep.subr.bf16.mxu0 %v4180_v1  ;;  %v2603_v54 = vsel %vm191_vm2, %v2582_v25, 0  ;;  %v2515_v27 = vsel %vm191_vm2, %v2495_v26, 0 }
0x13dc   :  { %3909 = vmatpush3.bf16.xpose.msra.mxu1 %v2615_v49  ;;  %v2580_v29 = vpop.permute.xlu0 %2579  ;;  %v2493_v32 = vpop.permute.xlu1 %2492 }
0x13dd   :  { %3910 = vmatprep.subr.bf16.mxu1 %v4180_v1  ;;  %v2600_v30 = vsel %vm191_vm2, %v2580_v29, 0  ;;  %v2512_v33 = vsel %vm191_vm2, %v2493_v32, 0 }
0x13e0   :  { %3891 = vmatpush3.bf16.xpose.msra.mxu0 %v2527_v51  ;;  %v2578_v34 = vpop.permute.xlu0 %2577  ;;  %v2491_v36 = vpop.permute.xlu1 %2490 }
0x13e1   :  { %3892 = vmatprep.subr.bf16.mxu0 %v4180_v1  ;;  %v2597_v35 = vsel %vm191_vm2, %v2578_v34, 0 }
0x13e4   :  { %3911 = vmatpush3.bf16.xpose.msra.mxu1 %v2612_v53  ;;  %v2576_v61 = vpop.permute.xlu0 %2575 }
0x13e5   :  { %3912 = vmatprep.subr.bf16.mxu1 %v4180_v1 }
0x13e8   :  { %3893 = vmatpush3.bf16.xpose.msra.mxu0 %v2524_v56 }
0x13e9   :  { %3894 = vmatprep.subr.bf16.mxu0 %v4180_v1 }
0x13ec   :  { %3913 = vmatpush3.bf16.xpose.msra.mxu1 %v2609_v63 }
0x13ed   :  { %3914 = vmatprep.subr.bf16.mxu1 %v4180_v1 }
0x13f0   :  { %3895 = vmatpush3.bf16.xpose.msra.mxu0 %v2521_v7 }
0x13f1   :  { %3896 = vmatprep.subr.bf16.mxu0 %v4180_v1 }
0x13f4   :  { %3915 = vmatpush3.bf16.xpose.msra.mxu1 %v2606_v16 }
0x13f5   :  { %3916 = vmatprep.subr.bf16.mxu1 %v4180_v1 }
0x13f8   :  { %3897 = vmatpush3.bf16.xpose.msra.mxu0 %v2518_v3 }
0x13f9   :  { %3898 = vmatprep.subr.bf16.mxu0 %v4180_v1 }
0x13fc   :  { %3917 = vmatpush3.bf16.xpose.msra.mxu1 %v2603_v54 }
0x13fd   :  { %3918 = vmatprep.subr.bf16.mxu1 %v4180_v1 }
0x1400   :  { %3899 = vmatpush3.bf16.xpose.msra.mxu0 %v2515_v27 }
0x1401   :  { %3900 = vmatprep.subr.bf16.mxu0 %v4180_v1 }
0x1404   :  { %3919 = vmatpush3.bf16.xpose.msra.mxu1 %v2600_v30 }
0x1405   :  { %3920 = vmatprep.subr.bf16.mxu1 %v4180_v1 }
0x1408   :  { %3901 = vmatpush3.bf16.xpose.msra.mxu0 %v2512_v33 }
0x1409   :  { %3926 = vmatprep.subr.bf16.mxu0 %v4180_v1 }
0x140c   :  { %3921 = vmatpush3.bf16.xpose.msra.mxu1 %v2597_v35 }
0x140d   :  { %3946 = vmatprep.subr.bf16.mxu1 %v4180_v1 }
0x140f   :  { %3903 = vmatmul.mubr.msk.bf16.vlgmr.msra.gmra.mxu0 %vm191_vm2, %v2491_v36  ;;  %v4053_v36 = vld [vmem:[%s5405_s10] sm:$0xff]  }
0x1410   :  { %3942 = vmatprep.mubr.msk.bf16.mxu0 %vm4181_vm0, %v4180_v1 }
0x1413   :  { %3923 = vmatmul.mubr.msk.bf16.vlgmr.msra.gmra.mxu1 %vm191_vm2, %v2576_v61 }
0x1414   :  { %3962 = vmatprep.mubr.msk.bf16.mxu1 %vm4181_vm0, %v4180_v1 }
0x148f   :  { %v5237_v39 = vpop.f32.mrf.mxu0 }
0x1491   :  { %v3864_v40 = vpop.f32.mrf.mxu0 }
0x1493   :  { %v2421_v60 = vpop.f32.mrf.mxu0  ;;  %v5239_v2 = vpop.f32.mrf.mxu1 }
0x1494   :  { %v4034_v43 = vpack.i.bf16 %v5239_v2, %v5237_v39 }
0x1495   :  { %v3865_v46 = vpop.f32.mrf.mxu0  ;;  %v3884_v14 = vpop.f32.mrf.mxu1 }
0x1497   :  { %v2485_v45 = vpop.f32.mrf.mxu1 }
0x1499   :  { %v3885_v15 = vpop.f32.mrf.mxu1 }
0x14cf   :  { %v2569_v22 = vpop.f32.mrf.mxu0 }
0x14d0   :  { %v2570_v49 = vadd.f32 %v2569_v22, %v4817_v11 }
0x14d1   :  { %v3904_v50 = vpop.f32.mrf.mxu0 }
0x14d2   :  { %2660 = vmax.xlane.f32.xlu1 %v2570_v49 }
0x14d3   :  { %v2572_v51 = vpop.f32.mrf.mxu0  ;;  %v2654_v52 = vpop.f32.mrf.mxu1 }
0x14d4   :  { %v2655_v53 = vadd.f32 %v2654_v52, %v4817_v11 }
0x14d5   :  { %v3905_v55 = vpop.f32.mrf.mxu0  ;;  %v3924_v56 = vpop.f32.mrf.mxu1 }
0x14d6   :  { %2662 = vmax.xlane.f32.xlu0 %v2655_v53 }
0x14d7   :  { %v2657_v59 = vpop.f32.mrf.mxu1 }
0x14d9   :  { %v3925_v63 = vpop.f32.mrf.mxu1 }
0x14e3   :  { %2758 = vrot.lane.b32.xlu1 %v4716_v62, %s5452_s30 }
0x14e7   :  { %2756 = vrot.lane.b32.xlu1 %v4721_v44, %s5452_s30 }
0x14eb   :  { %2690 = vrot.lane.b32.xlu1 %v4692_v20, %s5452_s30 }
0x14ec   :  { %2694 = vrot.lane.b32.xlu0 %v4700_v28, %s5452_s30 }
0x14ef   :  { %2688 = vrot.lane.b32.xlu1 %v4695_v4, %s5452_s30 }
0x14f0   :  { %2692 = vrot.lane.b32.xlu0 %v4703_v31, %s5452_s30 }
0x14f3   :  { %2686 = vrot.lane.b32.xlu1 %v4684_v9, %s5452_s30 }
0x14f4   :  { %2754 = vrot.lane.b32.xlu0 %v4728_v6, %s5452_s30 }
0x14f7   :  { %2684 = vrot.lane.b32.xlu1 %v4687_v13, %s5452_s30 }
0x14f8   :  { %2752 = vrot.lane.b32.xlu0 %v4735_v12, %s5452_s30 }
0x14fb   :  { %2682 = vrot.lane.b32.xlu1 %v4675_v0, %s5452_s30 }
0x14fc   :  { %2750 = vrot.lane.b32.xlu0 %v4742_v17, %s5452_s30 }
0x1500   :  { %2748 = vrot.lane.b32.xlu0 %v4749_v21, %s5452_s30 }
0x1504   :  { %2746 = vrot.lane.b32.xlu0 %v4708_v38, %s5452_s30 }
0x155b   :  { %v2661_v9 = vpop.xlane.xlu1 %2660 }
0x155c   :  { %v2664_v20 = vsub.f32 %v2570_v49, %v2661_v9 }
0x155e   :  { %v2666_v4 = vmul.f32 1.442695, %v2664_v20 }
0x155f   :  { %v2663_v28 = vpop.xlane.xlu0 %2662  ;;  %v2759_v13 = vpop.permute.xlu1 %2758 }
0x1560   :  { %4120 = vpow2.f32 %v2666_v4  ;;  %v2665_v31 = vsub.f32 %v2655_v53, %v2663_v28  ;;  %3947 = vmatpush3.bf16.msra.mxu1 %v2759_v13 }
0x1561   :  { %3948 = vmatprep.subr.bf16.mxu1 %v4180_v1 }
0x1562   :  { %v2668_v0 = vmul.f32 1.442695, %v2665_v31 }
0x1563   :  { %v2695_v62 = vpop.permute.xlu0 %2694  ;;  %v2757_v44 = vpop.permute.xlu1 %2756 }
0x1564   :  { %4122 = vpow2.f32 %v2668_v0  ;;  %3927 = vmatpush3.bf16.msra.mxu0 %v2695_v62  ;;  %3949 = vmatpush3.bf16.msra.mxu1 %v2757_v44 }
0x1565   :  { %3928 = vmatprep.subr.bf16.mxu0 %v4180_v1  ;;  %3950 = vmatprep.subr.bf16.mxu1 %v4180_v1 }
0x1567   :  { %v2693_v38 = vpop.permute.xlu0 %2692  ;;  %v2691_v6 = vpop.permute.xlu1 %2690 }
0x1568   :  { %3929 = vmatpush3.bf16.msra.mxu0 %v2693_v38 }
0x1569   :  { %3930 = vmatprep.subr.bf16.mxu0 %v4180_v1 }
0x156b   :  { %v2755_v12 = vpop.permute.xlu0 %2754  ;;  %v2689_v17 = vpop.permute.xlu1 %2688 }
0x156c   :  { %3931 = vmatpush3.bf16.msra.mxu0 %v2691_v6  ;;  %3951 = vmatpush3.bf16.msra.mxu1 %v2755_v12 }
0x156d   :  { %v4121_v21 = vpop.eup %4120  ;;  %3932 = vmatprep.subr.bf16.mxu0 %v4180_v1  ;;  %3952 = vmatprep.subr.bf16.mxu1 %v4180_v1 }
0x156e   :  { %2670 = vadd.xlane.f32.xlu1 %v4121_v21 }
0x156f   :  { %v2753_v11 = vpop.permute.xlu0 %2752  ;;  %v2687_v5 = vpop.permute.xlu1 %2686 }
0x1570   :  { %3933 = vmatpush3.bf16.msra.mxu0 %v2689_v17  ;;  %3953 = vmatpush3.bf16.msra.mxu1 %v2753_v11 }
0x1571   :  { %v4123_v7 = vpop.eup %4122  ;;  %3934 = vmatprep.subr.bf16.mxu0 %v4180_v1  ;;  %3954 = vmatprep.subr.bf16.mxu1 %v4180_v1 }
0x1572   :  { %2672 = vadd.xlane.f32.xlu0 %v4123_v7 }
0x1573   :  { %v2751_v8 = vpop.permute.xlu0 %2750  ;;  %v2685_v16 = vpop.permute.xlu1 %2684 }
0x1574   :  { %3935 = vmatpush3.bf16.msra.mxu0 %v2687_v5  ;;  %3955 = vmatpush3.bf16.msra.mxu1 %v2751_v8 }
0x1575   :  { %3936 = vmatprep.subr.bf16.mxu0 %v4180_v1  ;;  %3956 = vmatprep.subr.bf16.mxu1 %v4180_v1 }
0x1577   :  { %v2749_v19 = vpop.permute.xlu0 %2748  ;;  %v2683_v3 = vpop.permute.xlu1 %2682 }
0x1578   :  { %3937 = vmatpush3.bf16.msra.mxu0 %v2685_v16  ;;  %3957 = vmatpush3.bf16.msra.mxu1 %v2749_v19 }
0x1579   :  { %3938 = vmatprep.subr.bf16.mxu0 %v4180_v1  ;;  %3958 = vmatprep.subr.bf16.mxu1 %v4180_v1 }
0x157b   :  { %v2747_v25 = vpop.permute.xlu0 %2746 }
0x157c   :  { %3939 = vmatpush3.bf16.msra.mxu0 %v2683_v3  ;;  %3959 = vmatpush3.bf16.msra.mxu1 %v2747_v25 }
0x157d   :  { %3940 = vmatprep.subr.bf16.mxu0 %v4180_v1  ;;  %3960 = vmatprep.subr.bf16.mxu1 %v4180_v1 }
0x157f   :  { %2680 = vrot.lane.b32.xlu1 %v4678_v47, %s5452_s30 }
0x1583   :  { %4030 = vrot.lane.b32.xlu1 %v4029_v24, %s5453_s5 }
0x1588   :  { %2744 = vrot.lane.b32.xlu0 %v4711_v41, %s5452_s30 }
0x158c   :  { %4035 = vrot.lane.b32.xlu0 %v4034_v43, %s5454_s27 }
0x15f7   :  { %v2671_v54 = vpop.xlane.xlu1 %2670 }
0x15f8   :  { %4124 = vrcp.f32 %v2671_v54  ;;  %v4055_v54 = vld [vmem:[%s5407_s12] sm:$0xff]  }
0x15fb   :  { %v2673_v26 = vpop.xlane.xlu0 %2672  ;;  %v2681_v27 = vpop.permute.xlu1 %2680 }
0x15fc   :  { %4126 = vrcp.f32 %v2673_v26  ;;  %3941 = vmatpush3.bf16.msra.mxu0 %v2681_v27  ;;  %v4056_v26 = vld [vmem:[%s5409_s14 + $0x18] sm:$0xff]  }
0x15fd   :  { %3966 = vmatprep.subr.bf16.mxu0 %v4180_v1 }
0x15ff   :  { %v2745_v47 = vpop.permute.xlu0 %2744  ;;  %v4031_v45 = vpop.permute.xlu1 %4030 }
0x1600   :  { %3961 = vmatpush3.bf16.msra.mxu1 %v2745_v47  ;;  %v4033_v22 = vunpack.i.h.bf16 %v4031_v45  ;;  %v4032_v49 = vunpack.i.l.bf16 %v4031_v45 }
0x1601   :  { %3974 = vmatprep.subr.bf16.mxu1 %v4180_v1 }
0x1602   :  { %v2835_v53 = vsel %vm191_vm2, %v4957_v48, %v4033_v22  ;;  %v2834_v55 = vsel %vm191_vm2, %v4955_v58, %v4032_v49  ;;  %v3254_v58 = vld [vmem:[%s5406_s11] ss:$0 sm:$0xff] }
0x1603   :  { %v4036_v15 = vpop.permute.xlu0 %4035 }
0x1604   :  { %v4038_v50 = vunpack.i.h.bf16 %v4036_v15  ;;  %v4037_v51 = vunpack.i.l.bf16 %v4036_v15 }
0x1605   :  { %v4125_v18 = vpop.eup %4124 }
0x1606   :  { %v2676_v23 = vmul.f32 %v4125_v18, %v4121_v21  ;;  %v2836_v63 = vsel %vm1093_vm4, %v2834_v55, %v4037_v51  ;;  %v2837_v9 = vsel %vm1093_vm4, %v2835_v53, %v4038_v50 }
0x1608   :  { %v2678_v41 = vpack.c.bf16 %v2676_v23, %v2676_v23  ;;  %v2808_v24 = vadd.f32 %v2676_v23, %v5189_v37  ;;  %v4052_v37 = vld [vmem:[%s5405_s10 + $0x8] sm:$0xff]  }
0x1609   :  { %v4127_v29 = vpop.eup %4126 }
0x160a   :  { %3943 = vmatmul.mubr.bf16.vlgmr.msra.gmra.mxu0 %v2678_v41  ;;  %v2677_v30 = vmul.f32 %v4127_v29, %v4123_v7  ;;  %v2908_v32 = vmul.f32 0.25, %v2808_v24 }
0x160b   :  { %3970 = vmatprep.mubr.msk.bf16.mxu0 %vm4181_vm0, %v4180_v1  ;;  %3967 = vmatpush3.bf16.msra.mxu0 %v4052_v37  ;;  %v3259_v37 = vld [vmem:[%s5414_s19] ss:$0 sm:$0xff] }
0x160c   :  { %v2679_v33 = vpack.c.bf16 %v2677_v30, %v2677_v30  ;;  %v2809_v34 = vadd.f32 %v2677_v30, %v5197_v10  ;;  %3159 = vst [vmem:[#allocation4] sm:$0xff] %v2908_v32  ;;  %3968 = vmatprep.subr.bf16.mxu0 %v4180_v1  ;;  %v3258_v32 = vld [vmem:[%s5413_s18] ss:$0 sm:$0xff] }
0x160e   :  { %3963 = vmatmul.mubr.bf16.vlgmr.msra.gmra.mxu1 %v2679_v33  ;;  %v2909_v35 = vmul.f32 0.25, %v2809_v34 }
0x160f   :  { %3978 = vmatprep.mubr.msk.bf16.mxu1 %vm4181_vm0, %v4180_v1  ;;  %3969 = vmatpush3.bf16.msra.mxu0 %v4053_v36 }
0x1610   :  { %3160 = vst [vmem:[#allocation4 + $0x8] sm:$0xff] %v2909_v35  ;;  %3982 = vmatprep.subr.bf16.mxu0 %v4180_v1 }
0x16ca   :  { %v2738_v10 = vpop.f32.mrf.mxu0 }
0x16cc   :  { %v3944_v61 = vpop.f32.mrf.mxu0 }
0x16ce   :  { %v2741_v39 = vpop.f32.mrf.mxu0  ;;  %v2802_v40 = vpop.f32.mrf.mxu1 }
0x16cf   :  { %v4039_v60 = vpack.i.bf16 %v2802_v40, %v2738_v10  ;;  %v4057_v40 = vld [vmem:[%s5409_s14 + $0x10] sm:$0xff]  }
0x16d0   :  { %v3945_v2 = vpop.f32.mrf.mxu0  ;;  %v3964_v43 = vpop.f32.mrf.mxu1 }
0x16d1   :  { %4040 = vrot.lane.b32.xlu1 %v4039_v60, %s5455_s24  ;;  %v4058_v60 = vld [vmem:[%s5409_s14 + $0x8] sm:$0xff]   ;;  %v4059_v2 = vld [vmem:[%s5409_s14] sm:$0xff]  }
0x16d2   :  { %v2805_v46 = vpop.f32.mrf.mxu1  ;;  %v3260_v43 = vld [vmem:[%s5408_s13] ss:$0 sm:$0xff]  ;;  %s4197_s13 = smov [#allocation4]  }
0x16d3   :  { %s3178_s14 = sshll.u32 %s4197_s13, 4  ;;  %s3179_s14 = int_to_ptr.vmem [resolvable:$true] %s3178_s14 }
0x16d4   :  { %v3965_v14 = vpop.f32.mrf.mxu1  ;;  %p4141_p1 = scmp.lt.s32.totalorder %s3179_s14, %s3179_s14 }
0x1743   :  { %v4041_v52 = vpop.permute.xlu1 %4040 }
0x1744   :  { %v4043_v56 = vunpack.i.h.bf16 %v4041_v52  ;;  %v4042_v59 = vunpack.i.l.bf16 %v4041_v52 }
0x1746   :  { %v2839_v20 = vsel %vm1096_vm5, %v2837_v9, %v4043_v56  ;;  %v2838_v4 = vsel %vm1096_vm5, %v2836_v63, %v4042_v59 }
0x1747   :  { %v2840_v28 = vpack.c.bf16 %v2839_v20, %v2838_v4 }
0x1749   :  { %3971 = vmatmul.mubr.msk.bf16.vlgmr.msra.gmra.mxu0 %vm138_vm1, %v2840_v28 }
0x174a   :  { %3990 = vmatprep.mubr.msk.bf16.mxu0 %vm4181_vm0, %v4180_v1  ;;  %3983 = vmatpush3.bf16.msra.mxu0 %v4056_v26 }
0x174b   :  { %3984 = vmatprep.subr.bf16.mxu0 %v4180_v1 }
0x174e   :  { %3985 = vmatpush3.bf16.msra.mxu0 %v4057_v40 }
0x174f   :  { %3986 = vmatprep.subr.bf16.mxu0 %v4180_v1 }
0x1752   :  { %3987 = vmatpush3.bf16.msra.mxu0 %v4058_v60 }
0x1753   :  { %3988 = vmatprep.subr.bf16.mxu0 %v4180_v1 }
0x1756   :  { %3989 = vmatpush3.bf16.msra.mxu0 %v4059_v2 }
0x1809   :  { %v2901_v48 = vpop.f32.mrf.mxu0 }
0x180a   :  { %v2902_v13 = vadd.f32 %v3254_v58, %v2901_v48 }
0x180b   :  { %v3972_v31 = vpop.f32.mrf.mxu0 }
0x180c   :  { %v2910_v0 = vadd.f32 %v2902_v13, %v4769_v42 }
0x180d   :  { %v2904_v62 = vpop.f32.mrf.mxu0 }
0x180e   :  { %v2905_v44 = vadd.f32 %v3254_v58, %v2904_v62  ;;  %v2912_v38 = vsel %vm138_vm1, %v2910_v0, 0.0 }
0x180f   :  { %2913 = vadd.xlane.f32.xlu0 %v2912_v38  ;;  %v3973_v6 = vpop.f32.mrf.mxu0 }
0x1810   :  { %v2911_v12 = vadd.f32 %v2905_v44, %v4771_v57  ;;  %v4054_v57 = vld [vmem:[%s5407_s12 + $0x8] sm:$0xff]  }
0x1811   :  { %3975 = vmatpush3.bf16.msra.mxu1 %v4054_v57 }
0x1812   :  { %v2915_v17 = vsel %vm138_vm1, %v2911_v12, 0.0  ;;  %3976 = vmatprep.subr.bf16.mxu1 %v4180_v1  ;;  %v3264_v1 = vld [vmem:[%s5410_s15] ss:$0 sm:$0xff]  ;;  %s4136_s15 = scalar_lea.vmem %s3179_s14, 256 }
0x1813   :  { %2916 = vadd.xlane.f32.xlu1 %v2915_v17  ;;  %p4137_p0 = scmp.ne.s32.totalorder %s3179_s14, %s4136_s15  ;;  %p4142_p2 = scmp.lt.s32.totalorder %s4136_s15, %s4136_s15 }
0x1815   :  { %3977 = vmatpush3.bf16.msra.mxu1 %v4055_v54  ;;  %p4143_p3 = por %p4142_p2, %p4141_p1 }
0x1817   :  { %p4144_p4 = pnand %p4143_p3, %p4137_p0 }
0x1898   :  { %v2914_v21 = vpop.xlane.xlu0 %2913 }
0x1899   :  { %v2918_v11 = vmul.f32 0.03125, %v2914_v21 }
0x189b   :  { %v2920_v5 = vsub.f32 %v2910_v0, %v2918_v11 }
0x189c   :  { %v2917_v7 = vpop.xlane.xlu1 %2916 }
0x189d   :  { %v2919_v8 = vmul.f32 0.03125, %v2917_v7  ;;  %v2922_v16 = vmul.f32 %v2920_v5, %v2920_v5 }
0x189f   :  { %v2921_v19 = vsub.f32 %v2911_v12, %v2919_v8  ;;  %v2924_v42 = vsel %vm138_vm1, %v2922_v16, 0.0 }
0x18a0   :  { %2925 = vadd.xlane.f32.xlu0 %v2924_v42 }
0x18a1   :  { %v2923_v3 = vmul.f32 %v2921_v19, %v2921_v19 }
0x18a3   :  { %v2927_v25 = vsel %vm138_vm1, %v2923_v3, 0.0 }
0x18a4   :  { %2928 = vadd.xlane.f32.xlu0 %v2927_v25 }
0x1929   :  { %v2926_v27 = vpop.xlane.xlu0 %2925 }
0x192a   :  { %v2930_v47 = vmul.f32 0.03125, %v2926_v27 }
0x192c   :  { %v2932_v18 = vadd.f32 1e-05, %v2930_v47 }
0x192d   :  { %v2929_v23 = vpop.xlane.xlu0 %2928 }
0x192e   :  { %4128 = vrsqrt.f32 %v2932_v18  ;;  %v2931_v41 = vmul.f32 0.03125, %v2929_v23 }
0x1930   :  { %v2933_v24 = vadd.f32 1e-05, %v2931_v41 }
0x1932   :  { %4130 = vrsqrt.f32 %v2933_v24 }
0x193b   :  { %v4129_v29 = vpop.eup %4128 }
0x193c   :  { %v2936_v30 = vmul.f32 %v4129_v29, %v2920_v5 }
0x193e   :  { %v2945_v35 = vmul.f32 %v3258_v32, %v2936_v30 }
0x193f   :  { %v4131_v33 = vpop.eup %4130 }
0x1940   :  { %v2937_v34 = vmul.f32 %v4131_v33, %v2921_v19  ;;  %v2954_v10 = vadd.f32 %v3259_v37, %v2945_v35 }
0x1942   :  { %v2946_v36 = vmul.f32 %v3258_v32, %v2937_v34 }
0x1944   :  { %v2955_v61 = vadd.f32 %v3259_v37, %v2946_v36 }
0x1946   :  { %v2956_v39 = vpack.c.bf16 %v2955_v61, %v2954_v10 }
0x1948   :  { %3979 = vmatmul.mubr.msk.bf16.vlgmr.msra.gmra.mxu1 %vm138_vm1, %v2956_v39 }
0x1a08   :  { %v3017_v46 = vpop.f32.mrf.mxu1 }
0x1a09   :  { %v3018_v45 = vadd.f32 %v3260_v43, %v3017_v46 }
0x1a0a   :  { %v3980_v14 = vpop.f32.mrf.mxu1 }
0x1a0b   :  { %v3024_v50 = vmax.f32 %v3018_v45, 0.0 }
0x1a0c   :  { %v3020_v15 = vpop.f32.mrf.mxu1 }
0x1a0d   :  { %v3021_v22 = vadd.f32 %v3260_v43, %v3020_v15 }
0x1a0e   :  { %v3981_v49 = vpop.f32.mrf.mxu1 }
0x1a0f   :  { %v3025_v51 = vmax.f32 %v3021_v22, 0.0 }
0x1a11   :  { %v3026_v52 = vpack.c.bf16 %v3025_v51, %v3024_v50 }
0x1a13   :  { %3991 = vmatmul.mubr.msk.bf16.vlgmr.msra.gmra.mxu0 %vm3066_vm7, %v3026_v52 }
0x1ad3   :  { %v3104_v53 = vpop.f32.mrf.mxu0 }
0x1ad4   :  { %v3105_v55 = vadd.f32 %v3264_v1, %v3104_v53 }
0x1ad5   :  { %v3992_v56 = vpop.f32.mrf.mxu0 }
0x1ad6   :  { %v3111_v59 = vadd.f32 %v3105_v55, %v2954_v10 }
0x1ad7   :  { %v3107_v63 = vpop.f32.mrf.mxu0 }
0x1ad8   :  { %v3108_v9 = vadd.f32 %v3264_v1, %v3107_v63  ;;  %v3113_v20 = vsel %vm138_vm1, %v3111_v59, 0.0 }
0x1ad9   :  { %3114 = vadd.xlane.f32.xlu1 %v3113_v20  ;;  %v3993_v4 = vpop.f32.mrf.mxu0 }
0x1ada   :  { %v3112_v28 = vadd.f32 %v3108_v9, %v2955_v61 }
0x1adc   :  { %v3116_v58 = vsel %vm138_vm1, %v3112_v28, 0.0 }
0x1add   :  { %3117 = vadd.xlane.f32.xlu0 %v3116_v58 }
0x1b62   :  { %v3115_v48 = vpop.xlane.xlu1 %3114 }
0x1b63   :  { %v3119_v13 = vmul.f32 0.03125, %v3115_v48 }
0x1b65   :  { %v3121_v31 = vsub.f32 %v3111_v59, %v3119_v13 }
0x1b66   :  { %v3118_v0 = vpop.xlane.xlu0 %3117 }
0x1b67   :  { %v3120_v62 = vmul.f32 0.03125, %v3118_v0  ;;  %v3123_v44 = vmul.f32 %v3121_v31, %v3121_v31 }
0x1b69   :  { %v3122_v38 = vsub.f32 %v3112_v28, %v3120_v62  ;;  %v3125_v6 = vsel %vm138_vm1, %v3123_v44, 0.0 }
0x1b6a   :  { %3126 = vadd.xlane.f32.xlu1 %v3125_v6 }
0x1b6b   :  { %v3124_v12 = vmul.f32 %v3122_v38, %v3122_v38 }
0x1b6d   :  { %v3128_v17 = vsel %vm138_vm1, %v3124_v12, 0.0 }
0x1b6e   :  { %3129 = vadd.xlane.f32.xlu0 %v3128_v17 }
0x1b6f   :  { %4147 = shalt.err (!%p4144_p4)
}
0x1b70   :  { %s4198_s24 = smov 128   ;;  %v3270_v42 = vld [vmem:[%s5415_s20] ss:$0 sm:$0xff] }
0x1b71   :  { %3184 = dma.vmem_to_hbm [thread:$0]  %s3179_s14, 256, %s5418_s23, [#allocation5], %s4198_s24, %s4198_s24, %s5453_s5  }
0x1b72   :  { %v3271_v25 = vld [vmem:[%s5416_s21] ss:$0 sm:$0xff]  ;;  %s4199_s23 = smov [#allocation2]  }
0x1b73   :  { %s3166_s8 = sshll.u32 %s4199_s23, 4  ;;  %s3167_s8 = int_to_ptr.vmem [resolvable:$true] %s3166_s8 }
0x1b74   :  { %s4156_s6 = scalar_lea.vmem %s3167_s8, 256  ;;  %p4161_p6 = scmp.lt.s32.totalorder %s3167_s8, %s3167_s8 }
0x1b75   :  { %p4157_p5 = scmp.ne.s32.totalorder %s3167_s8, %s4156_s6  ;;  %p4162_p7 = scmp.lt.s32.totalorder %s4156_s6, %s4156_s6 }
0x1b77   :  { %p4163_p8 = por %p4162_p7, %p4161_p6 }
0x1b79   :  { %p4164_p9 = pnand %p4163_p8, %p4157_p5 }
0x1bf3   :  { %v3127_v21 = vpop.xlane.xlu1 %3126 }
0x1bf4   :  { %v3131_v11 = vmul.f32 0.03125, %v3127_v21 }
0x1bf6   :  { %v3133_v5 = vadd.f32 1e-05, %v3131_v11 }
0x1bf7   :  { %v3130_v7 = vpop.xlane.xlu0 %3129 }
0x1bf8   :  { %4132 = vrsqrt.f32 %v3133_v5  ;;  %v3132_v8 = vmul.f32 0.03125, %v3130_v7 }
0x1bfa   :  { %v3134_v16 = vadd.f32 1e-05, %v3132_v8 }
0x1bfc   :  { %4134 = vrsqrt.f32 %v3134_v16 }
0x1c05   :  { %v4133_v19 = vpop.eup %4132 }
0x1c06   :  { %v3137_v3 = vmul.f32 %v4133_v19, %v3121_v31 }
0x1c08   :  { %v3146_v57 = vmul.f32 %v3270_v42, %v3137_v3 }
0x1c09   :  { %v4135_v54 = vpop.eup %4134 }
0x1c0a   :  { %v3138_v26 = vmul.f32 %v4135_v54, %v3122_v38  ;;  %v3155_v27 = vadd.f32 %v3271_v25, %v3146_v57 }
0x1c0c   :  { %v3147_v47 = vmul.f32 %v3270_v42, %v3138_v26  ;;  %3157 = vst.msk [vmem:[#allocation2] sm:$0xff] %vm138_vm1, %v3155_v27 }
0x1c0e   :  { %v3156_v18 = vadd.f32 %v3271_v25, %v3147_v47 }
0x1c10   :  { %3158 = vst.msk [vmem:[#allocation2 + $0x8] sm:$0xff] %vm138_vm1, %v3156_v18 }
0x1c11   :  { %4167 = shalt.err (!%p4164_p9)
}
0x1c12   :  { %3172 = dma.vmem_to_hbm [thread:$0]  %s3167_s8, 256, %s5417_s22, [#allocation3], %s4198_s24, %s4198_s24, %s5453_s5  }
0x1c13   :  { %4176 = dma.done.wait [#allocation3], 256  }
0x1c14   :  { %4177 = vsyncadd [#allocation3], 4294967040 }
0x1c15   :  { %4178 = dma.done.wait [#allocation5], 256  }
0x1c16   :  { %4179 = vsyncadd [#allocation5], 4294967040 }
0x1c17   :  { %3191 = vsyncpa [#allocation3], 1 }
0x1c18   :  { %3192 = vsyncpa [#allocation5], 1 }

</bundles_post_ra>
